<compile_context>
chip_gen: v7x
topology: tpu7x:2x2x1
jax: 0.10.0
libtpu: 0.0.40
codegen_flags: <defaults>
</compile_context>

<pallas_src>
import math
import functools

import jax
import jax.numpy as jnp
from jax import lax
from jax.experimental import pallas as pl
from jax.experimental.pallas import tpu as pltpu

NEG_INF = -1.0e30          # additive-mask "minus infinity" (f32-safe)
LN_EPS = 1e-5              # PyTorch LayerNorm default
LANES = 128
NUM_PACKED_VECS = 10       # sa_bo, ca_bq, ca_bo, b2, n1w, n1b, n2w, n2b, n3w, n3b
VMEM_LIMIT = 64 * 1024 * 1024


# ----------------------------- in-kernel helpers -----------------------------

def _layernorm(x, w, b):
    """x: (..., D) f32; w, b: (1, D) f32."""
    mu = jnp.mean(x, axis=-1, keepdims=True)
    xc = x - mu
    var = jnp.mean(xc * xc, axis=-1, keepdims=True)
    return xc * lax.rsqrt(var + LN_EPS) * w + b


def _matmul2d(x, w_bf16):
    """x: (N, din), w: (din, dout) bf16 -> (N, dout) f32 (bf16 MXU, f32 accumulate)."""
    return jnp.dot(x.astype(jnp.bfloat16), w_bf16, preferred_element_type=jnp.float32)


def _mha(q, k, v, wo_t, bo, nhead, add_mask):
    """Multi-head attention core, batched over the batch block.

    q: (Bb, Tq, D) f32, ALREADY scaled by 1/sqrt(dh) (folded into projection weights).
    k, v: (Bb, Tk, D).  wo_t: (D, D) bf16 (in, out).  bo: (1, D) f32.
    add_mask: (Bb, Tq, Tk) f32 additive mask or None.
    """
    Bb, Tq, D = q.shape
    dh = D // nhead
    ctxs = []
    for h in range(nhead):                      # static unroll over heads
        lo, hi = h * dh, (h + 1) * dh
        qh = q[..., lo:hi].astype(jnp.bfloat16)
        kh = k[..., lo:hi].astype(jnp.bfloat16)
        vh = v[..., lo:hi].astype(jnp.bfloat16)
        s = jnp.einsum('bqd,bkd->bqk', qh, kh,
                       preferred_element_type=jnp.float32)            # (Bb, Tq, Tk) f32
        if add_mask is not None:
            s = s + add_mask
        s = s - jnp.max(s, axis=-1, keepdims=True)
        p = jnp.exp(s)
        p = p * pl.reciprocal(jnp.sum(p, axis=-1, keepdims=True), approx=True)
        ctxs.append(jnp.einsum('bqk,bkd->bqd', p.astype(jnp.bfloat16), vh,
                               preferred_element_type=jnp.float32))    # (Bb, Tq, dh)
    # Concatenate heads -> one lane-dense tensor, then a single full-K output projection.
    ctx = jnp.concatenate(ctxs, axis=-1)                               # (Bb, Tq, D) f32
    out = _matmul2d(ctx.reshape(Bb * Tq, D), wo_t) + bo                # (Bb*Tq, D) f32
    return out.reshape(Bb, Tq, D)


# --------------------------- decoder-stack Pallas kernel ---------------------------

def decoder_stack_kernel(nhead,
                         emb_ref, smask_ref, k_ref, v_ref,
                         wqkv_ref, bqkv_ref, sa_wo_ref,
                         ca_wq_ref, ca_wo_ref,
                         w1_ref, b1_ref, w2_ref, vec_ref,
                         out_ref):
    """Grid = (batch_block, layer).  One nn.TransformerDecoderLayer per (bb, l) step.
    The residual stream lives in the resident output block (index map independent of l)."""
    l = pl.program_id(1)
    Bb, T, D = out_ref.shape

    @pl.when(l == 0)
    def _():                                     # initialize residual stream for this block
        out_ref[...] = emb_ref[...]

    x = out_ref[...]                             # (Bb, T, D) f32
    smask = smask_ref[...]                       # (Bb, T, T) f32 (causal + key padding)

    # packed per-layer (D,)-wide vectors: (NUM_PACKED_VECS, D) f32
    vec = vec_ref[0]
    sa_bo, ca_bq, ca_bo, b2 = vec[0:1], vec[1:2], vec[2:3], vec[3:4]
    n1w, n1b = vec[4:5], vec[5:6]
    n2w, n2b = vec[6:7], vec[7:8]
    n3w, n3b = vec[8:9], vec[9:10]

    # ---- self-attention block (fused QKV projection; q pre-scaled) ----
    qkv = (_matmul2d(x.reshape(Bb * T, D), wqkv_ref[0])
           + bqkv_ref[0]).reshape(Bb, T, 3 * D)                        # (Bb, T, 3D) f32
    sa = _mha(qkv[..., 0:D], qkv[..., D:2 * D], qkv[..., 2 * D:3 * D],
              sa_wo_ref[0], sa_bo, nhead, smask)
    x = _layernorm(x + sa, n1w, n1b)

    # ---- cross-attention block (K/V precomputed in the wrapper, bf16) ----
    q = (_matmul2d(x.reshape(Bb * T, D), ca_wq_ref[0]) + ca_bq).reshape(Bb, T, D)
    ca = _mha(q, k_ref[0], v_ref[0], ca_wo_ref[0], ca_bo, nhead, None)
    x = _layernorm(x + ca, n2w, n2b)

    # ---- feed-forward block (ReLU) ----
    x2 = x.reshape(Bb * T, D)
    hmid = jnp.maximum(_matmul2d(x2, w1_ref[0]) + b1_ref[0], 0.0)      # (Bb*T, dff)
    ff = (_matmul2d(hmid, w2_ref[0]) + b2).reshape(Bb, T, D)
    x = _layernorm(x + ff, n3w, n3b)

    out_ref[...] = x


def _pick_batch_block(B, max_bb=8):
    for bb in range(min(B, max_bb), 0, -1):
        if B % bb == 0:
            return bb
    return 1


def run_decoder_stack(emb, smask, k_all, v_all, kp, nhead):
    B, T, D = emb.shape
    L = kp["sa_wqkv"].shape[0]
    Bb = _pick_batch_block(B)
    NB = B // Bb

    def batch_spec(shape):                       # (B, ...) -> block (Bb, full...)
        trail = tuple(shape[1:])
        return pl.BlockSpec((Bb,) + trail, lambda bb, l, _n=len(trail): (bb,) + (0,) * _n)

    def layer_batch_spec(shape):                 # (L, B, ...) -> block (1, Bb, full...)
        trail = tuple(shape[2:])
        return pl.BlockSpec((1, Bb) + trail,
                            lambda bb, l, _n=len(trail): (l, bb) + (0,) * _n)

    def layer_spec(shape):                       # (L, ...) -> block (1, full...)
        trail = tuple(shape[1:])
        return pl.BlockSpec((1,) + trail, lambda bb, l, _n=len(trail): (l,) + (0,) * _n)

    inputs = [emb, smask, k_all, v_all,
              kp["sa_wqkv"], kp["sa_bqkv"], kp["sa_wo"],
              kp["ca_wq"], kp["ca_wo"],
              kp["w1"], kp["b1"], kp["w2"], kp["vecs"]]
    in_specs = [batch_spec(emb.shape), batch_spec(smask.shape),
                layer_batch_spec(k_all.shape), layer_batch_spec(v_all.shape),
                layer_spec(kp["sa_wqkv"].shape), layer_spec(kp["sa_bqkv"].shape),
                layer_spec(kp["sa_wo"].shape),
                layer_spec(kp["ca_wq"].shape), layer_spec(kp["ca_wo"].shape),
                layer_spec(kp["w1"].shape), layer_spec(kp["b1"].shape),
                layer_spec(kp["w2"].shape), layer_spec(kp["vecs"].shape)]

    return pl.pallas_call(
        functools.partial(decoder_stack_kernel, nhead),
        out_shape=jax.ShapeDtypeStruct((B, T, D), jnp.float32),
        grid_spec=pltpu.PrefetchScalarGridSpec(
            num_scalar_prefetch=0,
            grid=(NB, L),
            in_specs=in_specs,
            out_specs=pl.BlockSpec((Bb, T, D), lambda bb, l: (bb, 0, 0))),
        compiler_params=pltpu.CompilerParams(
            dimension_semantics=("parallel", "arbitrary"),
            vmem_limit_bytes=VMEM_LIMIT),
    )(*inputs)


# --------------------------- fc_out Pallas kernel (tiled) ---------------------------

def fc_out_kernel(x_ref, w_ref, b_ref, o_ref):
    o_ref[...] = (jnp.dot(x_ref[...].astype(jnp.bfloat16), w_ref[...],
                          preferred_element_type=jnp.float32)
                  + b_ref[...]).astype(o_ref.dtype)


def _pick_tile(total, candidates):
    for c in candidates:
        if c <= total and total % c == 0:
            return c
    return total


def run_fc_out(hidden2d, fc_w, fc_b):
    """hidden2d: (M, D) f32, fc_w: (D, Vp) bf16, fc_b: (1, Vp) f32 -> (M, Vp) f32."""
    M, D = hidden2d.shape
    Vp = fc_w.shape[1]
    tm = _pick_tile(M, (256, 128, 64, 32, 16, 8))
    tv = _pick_tile(Vp, (512, 256, 128))
    return pl.pallas_call(
        fc_out_kernel,
        out_shape=jax.ShapeDtypeStruct((M, Vp), jnp.float32),
        grid_spec=pltpu.PrefetchScalarGridSpec(
            num_scalar_prefetch=0,
            grid=(M // tm, Vp // tv),
            in_specs=[pl.BlockSpec((tm, D), lambda i, j: (i, 0)),
                      pl.BlockSpec((D, tv), lambda i, j: (0, j)),
                      pl.BlockSpec((1, tv), lambda i, j: (0, j))],
            out_specs=pl.BlockSpec((tm, tv), lambda i, j: (i, j))),
        compiler_params=pltpu.CompilerParams(
            dimension_semantics=("parallel", "parallel"),
            vmem_limit_bytes=VMEM_LIMIT),
    )(hidden2d, fc_w, fc_b)


# ------------------------------- JAX glue -------------------------------------

def sinusoidal_pe(T, d_model):
    pos = jnp.arange(T, dtype=jnp.float32)[:, None]
    div = jnp.exp(jnp.arange(0, d_model, 2, dtype=jnp.float32)
                  * (-math.log(10000.0) / d_model))
    pe = jnp.zeros((T, d_model), jnp.float32)
    pe = pe.at[:, 0::2].set(jnp.sin(pos * div))
    pe = pe.at[:, 1::2].set(jnp.cos(pos * div))
    return pe


def init_params(key, vocab_size, d_model, nhead, dff, num_layers):
    """Parameters in PyTorch layout (weights are (out, in))."""
    keys = iter(jax.random.split(key, 4 + 12 * num_layers))

    def w(shape, scale=0.05):
        return scale * jax.random.normal(next(keys), shape, jnp.float32)

    emb = w((vocab_size, d_model))
    emb = emb.at[0].set(0.0)                                 # padding_idx=0

    layers = []
    for _ in range(num_layers):
        ones = jnp.ones((d_model,), jnp.float32)
        zeros = jnp.zeros((d_model,), jnp.float32)
        layers.append({
            "sa_in_w": w((3 * d_model, d_model)), "sa_in_b": w((3 * d_model,)),
            "sa_out_w": w((d_model, d_model)),    "sa_out_b": w((d_model,)),
            "ca_in_w": w((3 * d_model, d_model)), "ca_in_b": w((3 * d_model,)),
            "ca_out_w": w((d_model, d_model)),    "ca_out_b": w((d_model,)),
            "lin1_w": w((dff, d_model)),          "lin1_b": w((dff,)),
            "lin2_w": w((d_model, dff)),          "lin2_b": w((d_model,)),
            "n1_w": ones, "n1_b": zeros,
            "n2_w": ones, "n2_b": zeros,
            "n3_w": ones, "n3_b": zeros,
        })

    fc_w = w((vocab_size, d_model))
    fc_b = w((vocab_size,))
    return {"embedding": emb, "layers": layers, "fc_w": fc_w, "fc_b": fc_b}


def prepare_kernel_params(params, d_model, nhead, vocab_size):
    """PyTorch-layout params -> kernel layout: stacked over layers, transposed to (in, out),
    q-scale folded in, cross-attn in_proj split into q / k / v, matmul weights bf16,
    small (D,)-wide vectors packed into one (L, 10, D) array, vocab padded to lanes."""
    D = d_model
    dh = D // nhead
    qscale = 1.0 / math.sqrt(dh)
    Vp = ((vocab_size + LANES - 1) // LANES) * LANES

    def per_layer(fn):
        return jnp.stack([fn(lp) for lp in params["layers"]], axis=0)

    def pack_vecs(lp):
        return jnp.stack([
            lp["sa_out_b"],                     # sa_bo
            lp["ca_in_b"][:D] * qscale,         # ca_bq (pre-scaled)
            lp["ca_out_b"],                     # ca_bo
            lp["lin2_b"],                       # b2
            lp["n1_w"], lp["n1_b"],
            lp["n2_w"], lp["n2_b"],
            lp["n3_w"], lp["n3_b"],
        ], axis=0)                              # (NUM_PACKED_VECS, D)

    kp = {
        "sa_wqkv": per_layer(lambda lp: jnp.concatenate(
            [lp["sa_in_w"][:D] * qscale, lp["sa_in_w"][D:]], axis=0).T.astype(jnp.bfloat16)),
        "sa_bqkv": per_layer(lambda lp: jnp.concatenate(
            [lp["sa_in_b"][:D] * qscale, lp["sa_in_b"][D:]]).reshape(1, 3 * D)),
        "sa_wo": per_layer(lambda lp: lp["sa_out_w"].T.astype(jnp.bfloat16)),
        "ca_wq": per_layer(lambda lp: (lp["ca_in_w"][:D] * qscale).T.astype(jnp.bfloat16)),
        "ca_wo": per_layer(lambda lp: lp["ca_out_w"].T.astype(jnp.bfloat16)),
        # cross-attn K/V projection weights -- used only in the wrapper precompute
        "ca_wk": per_layer(lambda lp: lp["ca_in_w"][D:2 * D].T.astype(jnp.bfloat16)),
        "ca_wv": per_layer(lambda lp: lp["ca_in_w"][2 * D:3 * D].T.astype(jnp.bfloat16)),
        "ca_bk": per_layer(lambda lp: lp["ca_in_b"][D:2 * D]),
        "ca_bv": per_layer(lambda lp: lp["ca_in_b"][2 * D:3 * D]),
        "w1": per_layer(lambda lp: lp["lin1_w"].T.astype(jnp.bfloat16)),
        "b1": per_layer(lambda lp: lp["lin1_b"].reshape(1, -1)),
        "w2": per_layer(lambda lp: lp["lin2_w"].T.astype(jnp.bfloat16)),
        "vecs": per_layer(pack_vecs),
    }

    fc_wt = jnp.zeros((D, Vp), jnp.float32).at[:, :vocab_size].set(params["fc_w"].T)
    fc_b = jnp.zeros((1, Vp), jnp.float32).at[:, :vocab_size].set(
        params["fc_b"].reshape(1, -1))
    kp["fc_w"] = fc_wt.astype(jnp.bfloat16)
    kp["fc_b"] = fc_b
    return kp


def transformer_decoder_forward(params, features, tgt, tgt_mask, nhead, vocab_size):
    d_model = params["embedding"].shape[1]
    B, T = tgt.shape

    # embedding + sinusoidal positional encoding (dropout = identity, eval semantics)
    padding = (tgt == 0)                                               # tgt.eq(0)
    emb = jnp.take(params["embedding"], tgt, axis=0) * math.sqrt(d_model)
    emb = (emb + sinusoidal_pe(T, d_model)[None, :, :]).astype(jnp.float32)

    # combined additive self-attention mask: causal tgt_mask + key-padding mask
    smask = (tgt_mask[None, :, :]
             + jnp.where(padding, NEG_INF, 0.0)[:, None, :]).astype(jnp.float32)

    kp = prepare_kernel_params(params, d_model, nhead, vocab_size)

    # Hoisted cross-attention K/V projection: depends only on (layer, batch), so compute it
    # once with batched XLA matmuls and stream it into the kernel as bf16.
    mem_bf16 = features.astype(jnp.bfloat16)
    k_all = (jnp.einsum('bsd,lde->lbse', mem_bf16, kp["ca_wk"],
                        preferred_element_type=jnp.float32)
             + kp["ca_bk"][:, None, None, :]).astype(jnp.bfloat16)     # (L, B, S, D)
    v_all = (jnp.einsum('bsd,lde->lbse', mem_bf16, kp["ca_wv"],
                        preferred_element_type=jnp.float32)
             + kp["ca_bv"][:, None, None, :]).astype(jnp.bfloat16)     # (L, B, S, D)

    hidden = run_decoder_stack(emb, smask, k_all, v_all, kp, nhead)    # (B, T, D) f32

    logits_padded = run_fc_out(hidden.reshape(B * T, d_model), kp["fc_w"], kp["fc_b"])
    return logits_padded.reshape(B, T, -1)[:, :, :vocab_size]


# --------------------------------- main ---------------------------------------

if __name__ == "__main__":
    vocab_size, d_model, nhead, dff, num_layers = 64, 32, 4, 64, 2
    B, T, S = 2, 8, 16

    key = jax.random.PRNGKey(0)
    kparams, kfeat = jax.random.split(key)
    params = init_params(kparams, vocab_size, d_model, nhead, dff, num_layers)

    features = 0.1 * jax.random.normal(kfeat, (B, S, d_model), jnp.float32)  # encoder memory
    tgt = jnp.array([[5, 7, 3, 9, 2, 11, 0, 0],
                     [4, 1, 8, 6, 3, 2, 7, 0]], dtype=jnp.int32)
    # causal mask (0 on/below diag, -inf above), as from generate_square_subsequent_mask
    idx = jnp.arange(T)
    tgt_mask = jnp.where(idx[None, :] > idx[:, None], NEG_INF, 0.0).astype(jnp.float32)

    fwd = jax.jit(functools.partial(transformer_decoder_forward,
                                    nhead=nhead, vocab_size=vocab_size))
    logits = fwd(params, features, tgt, tgt_mask)
    logits = jax.block_until_ready(logits)

    assert logits.shape == (B, T, vocab_size), logits.shape
    assert bool(jnp.all(jnp.isfinite(logits)))
    print("KERNEL_OK")
</pallas_src>

<mosaic_0001>
module attributes {stable_mosaic.version = 11 : i64} {
  func.func @fc_out_kernel(%arg0: i32, %arg1: i32, %arg2: memref<16x32xf32, #tpu.memory_space<vmem>>, %arg3: memref<32x128xbf16, #tpu.memory_space<vmem>>, %arg4: memref<1x128xf32, #tpu.memory_space<vmem>>, %arg5: memref<16x128xf32, #tpu.memory_space<vmem>>) attributes {dimension_semantics = [#tpu.dimension_semantics<parallel>, #tpu.dimension_semantics<parallel>], iteration_bounds = array<i64: 1, 1>, scalar_prefetch = 0 : i64, scratch_operands = 0 : i64, tpu.core_type = #tpu.core_type<tc>, window_params = [{transform_indices = @transform_0, window_bounds = array<i64: 16, 32>}, {transform_indices = @transform_1, window_bounds = array<i64: 32, 128>}, {transform_indices = @transform_2, window_bounds = array<i64: 1, 128>}, {transform_indices = @transform_3, window_bounds = array<i64: 16, 128>}]} {
    %c0 = arith.constant 0 : index
    %c0_0 = arith.constant 0 : index
    %0 = vector.load %arg2[%c0, %c0_0] : memref<16x32xf32, #tpu.memory_space<vmem>>, vector<16x32xf32>
    %1 = arith.truncf %0 : vector<16x32xf32> to vector<16x32xbf16>
    %c0_1 = arith.constant 0 : index
    %c0_2 = arith.constant 0 : index
    %2 = vector.load %arg3[%c0_1, %c0_2] : memref<32x128xbf16, #tpu.memory_space<vmem>>, vector<32x128xbf16>
    %cst = arith.constant dense<0.000000e+00> : vector<16x128xf32>
    %3 = tpu.matmul %1, %2, %cst {dimension_numbers = #tpu.dot_dimension_numbers<[1], [0], [0], [1], [0, 0, 1, 1], [], []>} : vector<16x32xbf16>, vector<32x128xbf16>, vector<16x128xf32> -> vector<16x128xf32>
    %c0_3 = arith.constant 0 : index
    %c0_4 = arith.constant 0 : index
    %4 = vector.load %arg4[%c0_3, %c0_4] : memref<1x128xf32, #tpu.memory_space<vmem>>, vector<1x128xf32>
    %5 = vector.broadcast %4 : vector<1x128xf32> to vector<16x128xf32>
    %6 = arith.addf %3, %5 : vector<16x128xf32>
    %c0_5 = arith.constant 0 : index
    %c0_6 = arith.constant 0 : index
    %7 = vector.load %arg5[%c0_5, %c0_6] : memref<16x128xf32, #tpu.memory_space<vmem>>, vector<16x128xf32>
    tpu.vector_store %arg5[%c0_5, %c0_6], %6 {strides = array<i32>} : memref<16x128xf32, #tpu.memory_space<vmem>>, vector<16x128xf32>,
    return
  }
  func.func @transform_0(%arg0: i32, %arg1: i32) -> (i32, i32) {
    %c0_i32 = arith.constant 0 : i32
    %c0_i32_0 = arith.constant 0 : i32
    return %arg0, %c0_i32 : i32, i32
  }
  func.func @transform_1(%arg0: i32, %arg1: i32) -> (i32, i32) {
    %c0_i32 = arith.constant 0 : i32
    %c0_i32_0 = arith.constant 0 : i32
    return %c0_i32, %arg1 : i32, i32
  }
  func.func @transform_2(%arg0: i32, %arg1: i32) -> (i32, i32) {
    %c0_i32 = arith.constant 0 : i32
    %c0_i32_0 = arith.constant 0 : i32
    return %c0_i32, %arg1 : i32, i32
  }
  func.func @transform_3(%arg0: i32, %arg1: i32) -> (i32, i32) {
    %c0_i32 = arith.constant 0 : i32
    return %arg0, %arg1 : i32, i32
  }
}

module attributes {stable_mosaic.version = 11 : i64} {
  func.func @decoder_stack_kernel(%arg0: i32, %arg1: i32, %arg2: memref<2x8x32xf32, #tpu.memory_space<vmem>>, %arg3: memref<2x8x8xf32, #tpu.memory_space<vmem>>, %arg4: memref<1x2x16x32xbf16, #tpu.memory_space<vmem>>, %arg5: memref<1x2x16x32xbf16, #tpu.memory_space<vmem>>, %arg6: memref<1x32x96xbf16, #tpu.memory_space<vmem>>, %arg7: memref<1x1x96xf32, #tpu.memory_space<vmem>>, %arg8: memref<1x32x32xbf16, #tpu.memory_space<vmem>>, %arg9: memref<1x32x32xbf16, #tpu.memory_space<vmem>>, %arg10: memref<1x32x32xbf16, #tpu.memory_space<vmem>>, %arg11: memref<1x32x64xbf16, #tpu.memory_space<vmem>>, %arg12: memref<1x1x64xf32, #tpu.memory_space<vmem>>, %arg13: memref<1x64x32xbf16, #tpu.memory_space<vmem>>, %arg14: memref<1x10x32xf32, #tpu.memory_space<vmem>>, %arg15: memref<2x8x32xf32, #tpu.memory_space<vmem>>) attributes {dimension_semantics = [#tpu.dimension_semantics<parallel>, #tpu.dimension_semantics<arbitrary>], iteration_bounds = array<i64: 1, 2>, scalar_prefetch = 0 : i64, scratch_operands = 0 : i64, tpu.core_type = #tpu.core_type<tc>, window_params = [{transform_indices = @transform_0, window_bounds = array<i64: 2, 8, 32>}, {transform_indices = @transform_1, window_bounds = array<i64: 2, 8, 8>}, {transform_indices = @transform_2, window_bounds = array<i64: 1, 2, 16, 32>}, {transform_indices = @transform_3, window_bounds = array<i64: 1, 2, 16, 32>}, {transform_indices = @transform_4, window_bounds = array<i64: 1, 32, 96>}, {transform_indices = @transform_5, window_bounds = array<i64: 1, 1, 96>}, {transform_indices = @transform_6, window_bounds = array<i64: 1, 32, 32>}, {transform_indices = @transform_7, window_bounds = array<i64: 1, 32, 32>}, {transform_indices = @transform_8, window_bounds = array<i64: 1, 32, 32>}, {transform_indices = @transform_9, window_bounds = array<i64: 1, 32, 64>}, {transform_indices = @transform_10, window_bounds = array<i64: 1, 1, 64>}, {transform_indices = @transform_11, window_bounds = array<i64: 1, 64, 32>}, {transform_indices = @transform_12, window_bounds = array<i64: 1, 10, 32>}, {transform_indices = @transform_13, window_bounds = array<i64: 2, 8, 32>}]} {
    %c0_i32 = arith.constant 0 : i32
    %0 = arith.cmpi eq, %arg1, %c0_i32 : i32
    %1 = arith.extui %0 : i1 to i32
    %c0_i32_0 = arith.constant 0 : i32
    %2 = arith.cmpi ne, %1, %c0_i32_0 : i32
    scf.if %2 {
      %c0_97 = arith.constant 0 : index
      %c0_98 = arith.constant 0 : index
      %c0_99 = arith.constant 0 : index
      %296 = vector.load %arg2[%c0_97, %c0_98, %c0_99] : memref<2x8x32xf32, #tpu.memory_space<vmem>>, vector<2x8x32xf32>
      %c0_100 = arith.constant 0 : index
      %c0_101 = arith.constant 0 : index
      %c0_102 = arith.constant 0 : index
      %297 = vector.load %arg15[%c0_100, %c0_101, %c0_102] : memref<2x8x32xf32, #tpu.memory_space<vmem>>, vector<2x8x32xf32>
      tpu.vector_store %arg15[%c0_100, %c0_101, %c0_102], %296 {strides = array<i32>} : memref<2x8x32xf32, #tpu.memory_space<vmem>>, vector<2x8x32xf32>,
    } else {
    }
    %c0 = arith.constant 0 : index
    %c0_1 = arith.constant 0 : index
    %c0_2 = arith.constant 0 : index
    %3 = vector.load %arg15[%c0, %c0_1, %c0_2] : memref<2x8x32xf32, #tpu.memory_space<vmem>>, vector<2x8x32xf32>
    %c0_3 = arith.constant 0 : index
    %c0_4 = arith.constant 0 : index
    %c0_5 = arith.constant 0 : index
    %4 = vector.load %arg3[%c0_3, %c0_4, %c0_5] : memref<2x8x8xf32, #tpu.memory_space<vmem>>, vector<2x8x8xf32>
    %c0_6 = arith.constant 0 : index
    %c0_7 = arith.constant 0 : index
    %c0_8 = arith.constant 0 : index
    %5 = vector.load %arg14[%c0_6, %c0_7, %c0_8] : memref<1x10x32xf32, #tpu.memory_space<vmem>>, vector<1x10x32xf32>
    %6 = vector.shape_cast %5 : vector<1x10x32xf32> to vector<10x32xf32>
    %7 = vector.extract_strided_slice %6 {offsets = [0, 0], sizes = [1, 32], strides = [1, 1]} : vector<10x32xf32> to vector<1x32xf32>
    %8 = vector.extract_strided_slice %6 {offsets = [1, 0], sizes = [1, 32], strides = [1, 1]} : vector<10x32xf32> to vector<1x32xf32>
    %9 = vector.extract_strided_slice %6 {offsets = [2, 0], sizes = [1, 32], strides = [1, 1]} : vector<10x32xf32> to vector<1x32xf32>
    %10 = vector.extract_strided_slice %6 {offsets = [3, 0], sizes = [1, 32], strides = [1, 1]} : vector<10x32xf32> to vector<1x32xf32>
    %11 = vector.extract_strided_slice %6 {offsets = [4, 0], sizes = [1, 32], strides = [1, 1]} : vector<10x32xf32> to vector<1x32xf32>
    %12 = vector.extract_strided_slice %6 {offsets = [5, 0], sizes = [1, 32], strides = [1, 1]} : vector<10x32xf32> to vector<1x32xf32>
    %13 = vector.extract_strided_slice %6 {offsets = [6, 0], sizes = [1, 32], strides = [1, 1]} : vector<10x32xf32> to vector<1x32xf32>
    %14 = vector.extract_strided_slice %6 {offsets = [7, 0], sizes = [1, 32], strides = [1, 1]} : vector<10x32xf32> to vector<1x32xf32>
    %15 = vector.extract_strided_slice %6 {offsets = [8, 0], sizes = [1, 32], strides = [1, 1]} : vector<10x32xf32> to vector<1x32xf32>
    %16 = vector.extract_strided_slice %6 {offsets = [9, 0], sizes = [1, 32], strides = [1, 1]} : vector<10x32xf32> to vector<1x32xf32>
    %17 = vector.shape_cast %3 : vector<2x8x32xf32> to vector<16x32xf32>
    %c0_9 = arith.constant 0 : index
    %c0_10 = arith.constant 0 : index
    %c0_11 = arith.constant 0 : index
    %18 = vector.load %arg6[%c0_9, %c0_10, %c0_11] : memref<1x32x96xbf16, #tpu.memory_space<vmem>>, vector<1x32x96xbf16>
    %19 = vector.shape_cast %18 : vector<1x32x96xbf16> to vector<32x96xbf16>
    %20 = arith.truncf %17 : vector<16x32xf32> to vector<16x32xbf16>
    %cst = arith.constant dense<0.000000e+00> : vector<16x96xf32>
    %21 = tpu.matmul %20, %19, %cst {dimension_numbers = #tpu.dot_dimension_numbers<[1], [0], [0], [1], [0, 0, 1, 1], [], []>} : vector<16x32xbf16>, vector<32x96xbf16>, vector<16x96xf32> -> vector<16x96xf32>
    %c0_12 = arith.constant 0 : index
    %c0_13 = arith.constant 0 : index
    %c0_14 = arith.constant 0 : index
    %22 = vector.load %arg7[%c0_12, %c0_13, %c0_14] : memref<1x1x96xf32, #tpu.memory_space<vmem>>, vector<1x1x96xf32>
    %23 = vector.shape_cast %22 : vector<1x1x96xf32> to vector<1x96xf32>
    %24 = vector.broadcast %23 : vector<1x96xf32> to vector<16x96xf32>
    %25 = arith.addf %21, %24 : vector<16x96xf32>
    %26 = vector.shape_cast %25 : vector<16x96xf32> to vector<2x8x96xf32>
    %27 = vector.extract_strided_slice %26 {offsets = [0, 0, 0], sizes = [2, 8, 32], strides = [1, 1, 1]} : vector<2x8x96xf32> to vector<2x8x32xf32>
    %28 = vector.extract_strided_slice %26 {offsets = [0, 0, 32], sizes = [2, 8, 32], strides = [1, 1, 1]} : vector<2x8x96xf32> to vector<2x8x32xf32>
    %29 = vector.extract_strided_slice %26 {offsets = [0, 0, 64], sizes = [2, 8, 32], strides = [1, 1, 1]} : vector<2x8x96xf32> to vector<2x8x32xf32>
    %c0_15 = arith.constant 0 : index
    %c0_16 = arith.constant 0 : index
    %c0_17 = arith.constant 0 : index
    %30 = vector.load %arg8[%c0_15, %c0_16, %c0_17] : memref<1x32x32xbf16, #tpu.memory_space<vmem>>, vector<1x32x32xbf16>
    %31 = vector.shape_cast %30 : vector<1x32x32xbf16> to vector<32x32xbf16>
    %32 = vector.extract_strided_slice %27 {offsets = [0, 0, 0], sizes = [2, 8, 8], strides = [1, 1, 1]} : vector<2x8x32xf32> to vector<2x8x8xf32>
    %33 = arith.truncf %32 : vector<2x8x8xf32> to vector<2x8x8xbf16>
    %34 = vector.extract_strided_slice %28 {offsets = [0, 0, 0], sizes = [2, 8, 8], strides = [1, 1, 1]} : vector<2x8x32xf32> to vector<2x8x8xf32>
    %35 = arith.truncf %34 : vector<2x8x8xf32> to vector<2x8x8xbf16>
    %36 = vector.extract_strided_slice %29 {offsets = [0, 0, 0], sizes = [2, 8, 8], strides = [1, 1, 1]} : vector<2x8x32xf32> to vector<2x8x8xf32>
    %37 = arith.truncf %36 : vector<2x8x8xf32> to vector<2x8x8xbf16>
    "tpu.trace_start"() <{level = 10 : i32, message = "bqd,bkd->bqk"}> : () -> ()
    %cst_18 = arith.constant dense<0.000000e+00> : vector<2x8x8xf32>
    %38 = tpu.matmul %33, %35, %cst_18 {dimension_numbers = #tpu.dot_dimension_numbers<[2], [2], [1], [1], [0, 0, 0, 1, 1, 1], [0], [0]>} : vector<2x8x8xbf16>, vector<2x8x8xbf16>, vector<2x8x8xf32> -> vector<2x8x8xf32>
    "tpu.trace_stop"() : () -> ()
    %39 = arith.addf %38, %4 : vector<2x8x8xf32>
    %cst_19 = arith.constant dense<0xFF800000> : vector<2x8xf32>
    %40 = vector.multi_reduction <maximumf>, %39, %cst_19 [2] : vector<2x8x8xf32> to vector<2x8xf32>
    %41 = vector.shape_cast %40 : vector<2x8xf32> to vector<2x8x1xf32>
    %42 = vector.broadcast %41 : vector<2x8x1xf32> to vector<2x8x8xf32>
    %43 = arith.subf %39, %42 : vector<2x8x8xf32>
    %44 = math.exp %43 : vector<2x8x8xf32>
    %cst_20 = arith.constant dense<0.000000e+00> : vector<2x8xf32>
    %45 = vector.multi_reduction <add>, %44, %cst_20 [2] : vector<2x8x8xf32> to vector<2x8xf32>
    %46 = vector.shape_cast %45 : vector<2x8xf32> to vector<2x8x1xf32>
    %47 = tpu.reciprocal %46 {approx = true} : vector<2x8x1xf32> -> vector<2x8x1xf32>
    %48 = vector.broadcast %47 : vector<2x8x1xf32> to vector<2x8x8xf32>
    %49 = arith.mulf %44, %48 : vector<2x8x8xf32>
    %50 = arith.truncf %49 : vector<2x8x8xf32> to vector<2x8x8xbf16>
    "tpu.trace_start"() <{level = 10 : i32, message = "bqk,bkd->bqd"}> : () -> ()
    %cst_21 = arith.constant dense<0.000000e+00> : vector<2x8x8xf32>
    %51 = tpu.matmul %50, %37, %cst_21 {dimension_numbers = #tpu.dot_dimension_numbers<[2], [1], [1], [2], [0, 0, 0, 1, 1, 2], [0], [0]>} : vector<2x8x8xbf16>, vector<2x8x8xbf16>, vector<2x8x8xf32> -> vector<2x8x8xf32>
    "tpu.trace_stop"() : () -> ()
    %52 = vector.extract_strided_slice %27 {offsets = [0, 0, 8], sizes = [2, 8, 8], strides = [1, 1, 1]} : vector<2x8x32xf32> to vector<2x8x8xf32>
    %53 = arith.truncf %52 : vector<2x8x8xf32> to vector<2x8x8xbf16>
    %54 = vector.extract_strided_slice %28 {offsets = [0, 0, 8], sizes = [2, 8, 8], strides = [1, 1, 1]} : vector<2x8x32xf32> to vector<2x8x8xf32>
    %55 = arith.truncf %54 : vector<2x8x8xf32> to vector<2x8x8xbf16>
    %56 = vector.extract_strided_slice %29 {offsets = [0, 0, 8], sizes = [2, 8, 8], strides = [1, 1, 1]} : vector<2x8x32xf32> to vector<2x8x8xf32>
    %57 = arith.truncf %56 : vector<2x8x8xf32> to vector<2x8x8xbf16>
    "tpu.trace_start"() <{level = 10 : i32, message = "bqd,bkd->bqk"}> : () -> ()
    %cst_22 = arith.constant dense<0.000000e+00> : vector<2x8x8xf32>
    %58 = tpu.matmul %53, %55, %cst_22 {dimension_numbers = #tpu.dot_dimension_numbers<[2], [2], [1], [1], [0, 0, 0, 1, 1, 1], [0], [0]>} : vector<2x8x8xbf16>, vector<2x8x8xbf16>, vector<2x8x8xf32> -> vector<2x8x8xf32>
    "tpu.trace_stop"() : () -> ()
    %59 = arith.addf %58, %4 : vector<2x8x8xf32>
    %cst_23 = arith.constant dense<0xFF800000> : vector<2x8xf32>
    %60 = vector.multi_reduction <maximumf>, %59, %cst_23 [2] : vector<2x8x8xf32> to vector<2x8xf32>
    %61 = vector.shape_cast %60 : vector<2x8xf32> to vector<2x8x1xf32>
    %62 = vector.broadcast %61 : vector<2x8x1xf32> to vector<2x8x8xf32>
    %63 = arith.subf %59, %62 : vector<2x8x8xf32>
    %64 = math.exp %63 : vector<2x8x8xf32>
    %cst_24 = arith.constant dense<0.000000e+00> : vector<2x8xf32>
    %65 = vector.multi_reduction <add>, %64, %cst_24 [2] : vector<2x8x8xf32> to vector<2x8xf32>
    %66 = vector.shape_cast %65 : vector<2x8xf32> to vector<2x8x1xf32>
    %67 = tpu.reciprocal %66 {approx = true} : vector<2x8x1xf32> -> vector<2x8x1xf32>
    %68 = vector.broadcast %67 : vector<2x8x1xf32> to vector<2x8x8xf32>
    %69 = arith.mulf %64, %68 : vector<2x8x8xf32>
    %70 = arith.truncf %69 : vector<2x8x8xf32> to vector<2x8x8xbf16>
    "tpu.trace_start"() <{level = 10 : i32, message = "bqk,bkd->bqd"}> : () -> ()
    %cst_25 = arith.constant dense<0.000000e+00> : vector<2x8x8xf32>
    %71 = tpu.matmul %70, %57, %cst_25 {dimension_numbers = #tpu.dot_dimension_numbers<[2], [1], [1], [2], [0, 0, 0, 1, 1, 2], [0], [0]>} : vector<2x8x8xbf16>, vector<2x8x8xbf16>, vector<2x8x8xf32> -> vector<2x8x8xf32>
    "tpu.trace_stop"() : () -> ()
    %72 = vector.extract_strided_slice %27 {offsets = [0, 0, 16], sizes = [2, 8, 8], strides = [1, 1, 1]} : vector<2x8x32xf32> to vector<2x8x8xf32>
    %73 = arith.truncf %72 : vector<2x8x8xf32> to vector<2x8x8xbf16>
    %74 = vector.extract_strided_slice %28 {offsets = [0, 0, 16], sizes = [2, 8, 8], strides = [1, 1, 1]} : vector<2x8x32xf32> to vector<2x8x8xf32>
    %75 = arith.truncf %74 : vector<2x8x8xf32> to vector<2x8x8xbf16>
    %76 = vector.extract_strided_slice %29 {offsets = [0, 0, 16], sizes = [2, 8, 8], strides = [1, 1, 1]} : vector<2x8x32xf32> to vector<2x8x8xf32>
    %77 = arith.truncf %76 : vector<2x8x8xf32> to vector<2x8x8xbf16>
    "tpu.trace_start"() <{level = 10 : i32, message = "bqd,bkd->bqk"}> : () -> ()
    %cst_26 = arith.constant dense<0.000000e+00> : vector<2x8x8xf32>
    %78 = tpu.matmul %73, %75, %cst_26 {dimension_numbers = #tpu.dot_dimension_numbers<[2], [2], [1], [1], [0, 0, 0, 1, 1, 1], [0], [0]>} : vector<2x8x8xbf16>, vector<2x8x8xbf16>, vector<2x8x8xf32> -> vector<2x8x8xf32>
    "tpu.trace_stop"() : () -> ()
    %79 = arith.addf %78, %4 : vector<2x8x8xf32>
    %cst_27 = arith.constant dense<0xFF800000> : vector<2x8xf32>
    %80 = vector.multi_reduction <maximumf>, %79, %cst_27 [2] : vector<2x8x8xf32> to vector<2x8xf32>
    %81 = vector.shape_cast %80 : vector<2x8xf32> to vector<2x8x1xf32>
    %82 = vector.broadcast %81 : vector<2x8x1xf32> to vector<2x8x8xf32>
    %83 = arith.subf %79, %82 : vector<2x8x8xf32>
    %84 = math.exp %83 : vector<2x8x8xf32>
    %cst_28 = arith.constant dense<0.000000e+00> : vector<2x8xf32>
    %85 = vector.multi_reduction <add>, %84, %cst_28 [2] : vector<2x8x8xf32> to vector<2x8xf32>
    %86 = vector.shape_cast %85 : vector<2x8xf32> to vector<2x8x1xf32>
    %87 = tpu.reciprocal %86 {approx = true} : vector<2x8x1xf32> -> vector<2x8x1xf32>
    %88 = vector.broadcast %87 : vector<2x8x1xf32> to vector<2x8x8xf32>
    %89 = arith.mulf %84, %88 : vector<2x8x8xf32>
    %90 = arith.truncf %89 : vector<2x8x8xf32> to vector<2x8x8xbf16>
    "tpu.trace_start"() <{level = 10 : i32, message = "bqk,bkd->bqd"}> : () -> ()
    %cst_29 = arith.constant dense<0.000000e+00> : vector<2x8x8xf32>
    %91 = tpu.matmul %90, %77, %cst_29 {dimension_numbers = #tpu.dot_dimension_numbers<[2], [1], [1], [2], [0, 0, 0, 1, 1, 2], [0], [0]>} : vector<2x8x8xbf16>, vector<2x8x8xbf16>, vector<2x8x8xf32> -> vector<2x8x8xf32>
    "tpu.trace_stop"() : () -> ()
    %92 = vector.extract_strided_slice %27 {offsets = [0, 0, 24], sizes = [2, 8, 8], strides = [1, 1, 1]} : vector<2x8x32xf32> to vector<2x8x8xf32>
    %93 = arith.truncf %92 : vector<2x8x8xf32> to vector<2x8x8xbf16>
    %94 = vector.extract_strided_slice %28 {offsets = [0, 0, 24], sizes = [2, 8, 8], strides = [1, 1, 1]} : vector<2x8x32xf32> to vector<2x8x8xf32>
    %95 = arith.truncf %94 : vector<2x8x8xf32> to vector<2x8x8xbf16>
    %96 = vector.extract_strided_slice %29 {offsets = [0, 0, 24], sizes = [2, 8, 8], strides = [1, 1, 1]} : vector<2x8x32xf32> to vector<2x8x8xf32>
    %97 = arith.truncf %96 : vector<2x8x8xf32> to vector<2x8x8xbf16>
    "tpu.trace_start"() <{level = 10 : i32, message = "bqd,bkd->bqk"}> : () -> ()
    %cst_30 = arith.constant dense<0.000000e+00> : vector<2x8x8xf32>
    %98 = tpu.matmul %93, %95, %cst_30 {dimension_numbers = #tpu.dot_dimension_numbers<[2], [2], [1], [1], [0, 0, 0, 1, 1, 1], [0], [0]>} : vector<2x8x8xbf16>, vector<2x8x8xbf16>, vector<2x8x8xf32> -> vector<2x8x8xf32>
    "tpu.trace_stop"() : () -> ()
    %99 = arith.addf %98, %4 : vector<2x8x8xf32>
    %cst_31 = arith.constant dense<0xFF800000> : vector<2x8xf32>
    %100 = vector.multi_reduction <maximumf>, %99, %cst_31 [2] : vector<2x8x8xf32> to vector<2x8xf32>
    %101 = vector.shape_cast %100 : vector<2x8xf32> to vector<2x8x1xf32>
    %102 = vector.broadcast %101 : vector<2x8x1xf32> to vector<2x8x8xf32>
    %103 = arith.subf %99, %102 : vector<2x8x8xf32>
    %104 = math.exp %103 : vector<2x8x8xf32>
    %cst_32 = arith.constant dense<0.000000e+00> : vector<2x8xf32>
    %105 = vector.multi_reduction <add>, %104, %cst_32 [2] : vector<2x8x8xf32> to vector<2x8xf32>
    %106 = vector.shape_cast %105 : vector<2x8xf32> to vector<2x8x1xf32>
    %107 = tpu.reciprocal %106 {approx = true} : vector<2x8x1xf32> -> vector<2x8x1xf32>
    %108 = vector.broadcast %107 : vector<2x8x1xf32> to vector<2x8x8xf32>
    %109 = arith.mulf %104, %108 : vector<2x8x8xf32>
    %110 = arith.truncf %109 : vector<2x8x8xf32> to vector<2x8x8xbf16>
    "tpu.trace_start"() <{level = 10 : i32, message = "bqk,bkd->bqd"}> : () -> ()
    %cst_33 = arith.constant dense<0.000000e+00> : vector<2x8x8xf32>
    %111 = tpu.matmul %110, %97, %cst_33 {dimension_numbers = #tpu.dot_dimension_numbers<[2], [1], [1], [2], [0, 0, 0, 1, 1, 2], [0], [0]>} : vector<2x8x8xbf16>, vector<2x8x8xbf16>, vector<2x8x8xf32> -> vector<2x8x8xf32>
    "tpu.trace_stop"() : () -> ()
    %112 = tpu.concatenate %51, %71, %91, %111 in 2 : vector<2x8x8xf32>, vector<2x8x8xf32>, vector<2x8x8xf32>, vector<2x8x8xf32> -> vector<2x8x32xf32>
    %113 = vector.shape_cast %112 : vector<2x8x32xf32> to vector<16x32xf32>
    %114 = arith.truncf %113 : vector<16x32xf32> to vector<16x32xbf16>
    %cst_34 = arith.constant dense<0.000000e+00> : vector<16x32xf32>
    %115 = tpu.matmul %114, %31, %cst_34 {dimension_numbers = #tpu.dot_dimension_numbers<[1], [0], [0], [1], [0, 0, 1, 1], [], []>} : vector<16x32xbf16>, vector<32x32xbf16>, vector<16x32xf32> -> vector<16x32xf32>
    %116 = vector.broadcast %7 : vector<1x32xf32> to vector<16x32xf32>
    %117 = arith.addf %115, %116 : vector<16x32xf32>
    %118 = vector.shape_cast %117 : vector<16x32xf32> to vector<2x8x32xf32>
    %119 = arith.addf %3, %118 : vector<2x8x32xf32>
    %cst_35 = arith.constant dense<0.000000e+00> : vector<2x8xf32>
    %120 = vector.multi_reduction <add>, %119, %cst_35 [2] : vector<2x8x32xf32> to vector<2x8xf32>
    %121 = vector.shape_cast %120 : vector<2x8xf32> to vector<2x8x1xf32>
    %cst_36 = arith.constant 3.200000e+01 : f32
    %122 = vector.broadcast %cst_36 : f32 to vector<2x8x1xf32>
    %123 = arith.divf %121, %122 : vector<2x8x1xf32>
    %124 = vector.broadcast %123 : vector<2x8x1xf32> to vector<2x8x32xf32>
    %125 = arith.subf %119, %124 : vector<2x8x32xf32>
    %126 = arith.mulf %125, %125 : vector<2x8x32xf32>
    %cst_37 = arith.constant dense<0.000000e+00> : vector<2x8xf32>
    %127 = vector.multi_reduction <add>, %126, %cst_37 [2] : vector<2x8x32xf32> to vector<2x8xf32>
    %128 = vector.shape_cast %127 : vector<2x8xf32> to vector<2x8x1xf32>
    %cst_38 = arith.constant 3.200000e+01 : f32
    %129 = vector.broadcast %cst_38 : f32 to vector<2x8x1xf32>
    %130 = arith.divf %128, %129 : vector<2x8x1xf32>
    %cst_39 = arith.constant 9.99999974E-6 : f32
    %131 = vector.broadcast %cst_39 : f32 to vector<2x8x1xf32>
    %132 = arith.addf %130, %131 : vector<2x8x1xf32>
    %133 = math.rsqrt %132 : vector<2x8x1xf32>
    %134 = vector.broadcast %133 : vector<2x8x1xf32> to vector<2x8x32xf32>
    %135 = arith.mulf %125, %134 : vector<2x8x32xf32>
    %136 = vector.shape_cast %11 : vector<1x32xf32> to vector<1x1x32xf32>
    %137 = vector.broadcast %136 : vector<1x1x32xf32> to vector<2x8x32xf32>
    %138 = arith.mulf %135, %137 : vector<2x8x32xf32>
    %139 = vector.shape_cast %12 : vector<1x32xf32> to vector<1x1x32xf32>
    %140 = vector.broadcast %139 : vector<1x1x32xf32> to vector<2x8x32xf32>
    %141 = arith.addf %138, %140 : vector<2x8x32xf32>
    %142 = vector.shape_cast %141 : vector<2x8x32xf32> to vector<16x32xf32>
    %c0_40 = arith.constant 0 : index
    %c0_41 = arith.constant 0 : index
    %c0_42 = arith.constant 0 : index
    %143 = vector.load %arg9[%c0_40, %c0_41, %c0_42] : memref<1x32x32xbf16, #tpu.memory_space<vmem>>, vector<1x32x32xbf16>
    %144 = vector.shape_cast %143 : vector<1x32x32xbf16> to vector<32x32xbf16>
    %145 = arith.truncf %142 : vector<16x32xf32> to vector<16x32xbf16>
    %cst_43 = arith.constant dense<0.000000e+00> : vector<16x32xf32>
    %146 = tpu.matmul %145, %144, %cst_43 {dimension_numbers = #tpu.dot_dimension_numbers<[1], [0], [0], [1], [0, 0, 1, 1], [], []>} : vector<16x32xbf16>, vector<32x32xbf16>, vector<16x32xf32> -> vector<16x32xf32>
    %147 = vector.broadcast %8 : vector<1x32xf32> to vector<16x32xf32>
    %148 = arith.addf %146, %147 : vector<16x32xf32>
    %149 = vector.shape_cast %148 : vector<16x32xf32> to vector<2x8x32xf32>
    %c0_44 = arith.constant 0 : index
    %c0_45 = arith.constant 0 : index
    %c0_46 = arith.constant 0 : index
    %c0_47 = arith.constant 0 : index
    %150 = vector.load %arg4[%c0_44, %c0_45, %c0_46, %c0_47] : memref<1x2x16x32xbf16, #tpu.memory_space<vmem>>, vector<1x2x16x32xbf16>
    %151 = vector.shape_cast %150 : vector<1x2x16x32xbf16> to vector<2x16x32xbf16>
    %c0_48 = arith.constant 0 : index
    %c0_49 = arith.constant 0 : index
    %c0_50 = arith.constant 0 : index
    %c0_51 = arith.constant 0 : index
    %152 = vector.load %arg5[%c0_48, %c0_49, %c0_50, %c0_51] : memref<1x2x16x32xbf16, #tpu.memory_space<vmem>>, vector<1x2x16x32xbf16>
    %153 = vector.shape_cast %152 : vector<1x2x16x32xbf16> to vector<2x16x32xbf16>
    %c0_52 = arith.constant 0 : index
    %c0_53 = arith.constant 0 : index
    %c0_54 = arith.constant 0 : index
    %154 = vector.load %arg10[%c0_52, %c0_53, %c0_54] : memref<1x32x32xbf16, #tpu.memory_space<vmem>>, vector<1x32x32xbf16>
    %155 = vector.shape_cast %154 : vector<1x32x32xbf16> to vector<32x32xbf16>
    %156 = vector.extract_strided_slice %149 {offsets = [0, 0, 0], sizes = [2, 8, 8], strides = [1, 1, 1]} : vector<2x8x32xf32> to vector<2x8x8xf32>
    %157 = arith.truncf %156 : vector<2x8x8xf32> to vector<2x8x8xbf16>
    %158 = vector.extract_strided_slice %151 {offsets = [0, 0, 0], sizes = [2, 16, 8], strides = [1, 1, 1]} : vector<2x16x32xbf16> to vector<2x16x8xbf16>
    %159 = vector.extract_strided_slice %153 {offsets = [0, 0, 0], sizes = [2, 16, 8], strides = [1, 1, 1]} : vector<2x16x32xbf16> to vector<2x16x8xbf16>
    "tpu.trace_start"() <{level = 10 : i32, message = "bqd,bkd->bqk"}> : () -> ()
    %cst_55 = arith.constant dense<0.000000e+00> : vector<2x8x16xf32>
    %160 = tpu.matmul %157, %158, %cst_55 {dimension_numbers = #tpu.dot_dimension_numbers<[2], [2], [1], [1], [0, 0, 0, 1, 1, 1], [0], [0]>} : vector<2x8x8xbf16>, vector<2x16x8xbf16>, vector<2x8x16xf32> -> vector<2x8x16xf32>
    "tpu.trace_stop"() : () -> ()
    %cst_56 = arith.constant dense<0xFF800000> : vector<2x8xf32>
    %161 = vector.multi_reduction <maximumf>, %160, %cst_56 [2] : vector<2x8x16xf32> to vector<2x8xf32>
    %162 = vector.shape_cast %161 : vector<2x8xf32> to vector<2x8x1xf32>
    %163 = vector.broadcast %162 : vector<2x8x1xf32> to vector<2x8x16xf32>
    %164 = arith.subf %160, %163 : vector<2x8x16xf32>
    %165 = math.exp %164 : vector<2x8x16xf32>
    %cst_57 = arith.constant dense<0.000000e+00> : vector<2x8xf32>
    %166 = vector.multi_reduction <add>, %165, %cst_57 [2] : vector<2x8x16xf32> to vector<2x8xf32>
    %167 = vector.shape_cast %166 : vector<2x8xf32> to vector<2x8x1xf32>
    %168 = tpu.reciprocal %167 {approx = true} : vector<2x8x1xf32> -> vector<2x8x1xf32>
    %169 = vector.broadcast %168 : vector<2x8x1xf32> to vector<2x8x16xf32>
    %170 = arith.mulf %165, %169 : vector<2x8x16xf32>
    %171 = arith.truncf %170 : vector<2x8x16xf32> to vector<2x8x16xbf16>
    "tpu.trace_start"() <{level = 10 : i32, message = "bqk,bkd->bqd"}> : () -> ()
    %cst_58 = arith.constant dense<0.000000e+00> : vector<2x8x8xf32>
    %172 = tpu.matmul %171, %159, %cst_58 {dimension_numbers = #tpu.dot_dimension_numbers<[2], [1], [1], [2], [0, 0, 0, 1, 1, 2], [0], [0]>} : vector<2x8x16xbf16>, vector<2x16x8xbf16>, vector<2x8x8xf32> -> vector<2x8x8xf32>
    "tpu.trace_stop"() : () -> ()
    %173 = vector.extract_strided_slice %149 {offsets = [0, 0, 8], sizes = [2, 8, 8], strides = [1, 1, 1]} : vector<2x8x32xf32> to vector<2x8x8xf32>
    %174 = arith.truncf %173 : vector<2x8x8xf32> to vector<2x8x8xbf16>
    %175 = vector.extract_strided_slice %151 {offsets = [0, 0, 8], sizes = [2, 16, 8], strides = [1, 1, 1]} : vector<2x16x32xbf16> to vector<2x16x8xbf16>
    %176 = vector.extract_strided_slice %153 {offsets = [0, 0, 8], sizes = [2, 16, 8], strides = [1, 1, 1]} : vector<2x16x32xbf16> to vector<2x16x8xbf16>
    "tpu.trace_start"() <{level = 10 : i32, message = "bqd,bkd->bqk"}> : () -> ()
    %cst_59 = arith.constant dense<0.000000e+00> : vector<2x8x16xf32>
    %177 = tpu.matmul %174, %175, %cst_59 {dimension_numbers = #tpu.dot_dimension_numbers<[2], [2], [1], [1], [0, 0, 0, 1, 1, 1], [0], [0]>} : vector<2x8x8xbf16>, vector<2x16x8xbf16>, vector<2x8x16xf32> -> vector<2x8x16xf32>
    "tpu.trace_stop"() : () -> ()
    %cst_60 = arith.constant dense<0xFF800000> : vector<2x8xf32>
    %178 = vector.multi_reduction <maximumf>, %177, %cst_60 [2] : vector<2x8x16xf32> to vector<2x8xf32>
    %179 = vector.shape_cast %178 : vector<2x8xf32> to vector<2x8x1xf32>
    %180 = vector.broadcast %179 : vector<2x8x1xf32> to vector<2x8x16xf32>
    %181 = arith.subf %177, %180 : vector<2x8x16xf32>
    %182 = math.exp %181 : vector<2x8x16xf32>
    %cst_61 = arith.constant dense<0.000000e+00> : vector<2x8xf32>
    %183 = vector.multi_reduction <add>, %182, %cst_61 [2] : vector<2x8x16xf32> to vector<2x8xf32>
    %184 = vector.shape_cast %183 : vector<2x8xf32> to vector<2x8x1xf32>
    %185 = tpu.reciprocal %184 {approx = true} : vector<2x8x1xf32> -> vector<2x8x1xf32>
    %186 = vector.broadcast %185 : vector<2x8x1xf32> to vector<2x8x16xf32>
    %187 = arith.mulf %182, %186 : vector<2x8x16xf32>
    %188 = arith.truncf %187 : vector<2x8x16xf32> to vector<2x8x16xbf16>
    "tpu.trace_start"() <{level = 10 : i32, message = "bqk,bkd->bqd"}> : () -> ()
    %cst_62 = arith.constant dense<0.000000e+00> : vector<2x8x8xf32>
    %189 = tpu.matmul %188, %176, %cst_62 {dimension_numbers = #tpu.dot_dimension_numbers<[2], [1], [1], [2], [0, 0, 0, 1, 1, 2], [0], [0]>} : vector<2x8x16xbf16>, vector<2x16x8xbf16>, vector<2x8x8xf32> -> vector<2x8x8xf32>
    "tpu.trace_stop"() : () -> ()
    %190 = vector.extract_strided_slice %149 {offsets = [0, 0, 16], sizes = [2, 8, 8], strides = [1, 1, 1]} : vector<2x8x32xf32> to vector<2x8x8xf32>
    %191 = arith.truncf %190 : vector<2x8x8xf32> to vector<2x8x8xbf16>
    %192 = vector.extract_strided_slice %151 {offsets = [0, 0, 16], sizes = [2, 16, 8], strides = [1, 1, 1]} : vector<2x16x32xbf16> to vector<2x16x8xbf16>
    %193 = vector.extract_strided_slice %153 {offsets = [0, 0, 16], sizes = [2, 16, 8], strides = [1, 1, 1]} : vector<2x16x32xbf16> to vector<2x16x8xbf16>
    "tpu.trace_start"() <{level = 10 : i32, message = "bqd,bkd->bqk"}> : () -> ()
    %cst_63 = arith.constant dense<0.000000e+00> : vector<2x8x16xf32>
    %194 = tpu.matmul %191, %192, %cst_63 {dimension_numbers = #tpu.dot_dimension_numbers<[2], [2], [1], [1], [0, 0, 0, 1, 1, 1], [0], [0]>} : vector<2x8x8xbf16>, vector<2x16x8xbf16>, vector<2x8x16xf32> -> vector<2x8x16xf32>
    "tpu.trace_stop"() : () -> ()
    %cst_64 = arith.constant dense<0xFF800000> : vector<2x8xf32>
    %195 = vector.multi_reduction <maximumf>, %194, %cst_64 [2] : vector<2x8x16xf32> to vector<2x8xf32>
    %196 = vector.shape_cast %195 : vector<2x8xf32> to vector<2x8x1xf32>
    %197 = vector.broadcast %196 : vector<2x8x1xf32> to vector<2x8x16xf32>
    %198 = arith.subf %194, %197 : vector<2x8x16xf32>
    %199 = math.exp %198 : vector<2x8x16xf32>
    %cst_65 = arith.constant dense<0.000000e+00> : vector<2x8xf32>
    %200 = vector.multi_reduction <add>, %199, %cst_65 [2] : vector<2x8x16xf32> to vector<2x8xf32>
    %201 = vector.shape_cast %200 : vector<2x8xf32> to vector<2x8x1xf32>
    %202 = tpu.reciprocal %201 {approx = true} : vector<2x8x1xf32> -> vector<2x8x1xf32>
    %203 = vector.broadcast %202 : vector<2x8x1xf32> to vector<2x8x16xf32>
    %204 = arith.mulf %199, %203 : vector<2x8x16xf32>
    %205 = arith.truncf %204 : vector<2x8x16xf32> to vector<2x8x16xbf16>
    "tpu.trace_start"() <{level = 10 : i32, message = "bqk,bkd->bqd"}> : () -> ()
    %cst_66 = arith.constant dense<0.000000e+00> : vector<2x8x8xf32>
    %206 = tpu.matmul %205, %193, %cst_66 {dimension_numbers = #tpu.dot_dimension_numbers<[2], [1], [1], [2], [0, 0, 0, 1, 1, 2], [0], [0]>} : vector<2x8x16xbf16>, vector<2x16x8xbf16>, vector<2x8x8xf32> -> vector<2x8x8xf32>
    "tpu.trace_stop"() : () -> ()
    %207 = vector.extract_strided_slice %149 {offsets = [0, 0, 24], sizes = [2, 8, 8], strides = [1, 1, 1]} : vector<2x8x32xf32> to vector<2x8x8xf32>
    %208 = arith.truncf %207 : vector<2x8x8xf32> to vector<2x8x8xbf16>
    %209 = vector.extract_strided_slice %151 {offsets = [0, 0, 24], sizes = [2, 16, 8], strides = [1, 1, 1]} : vector<2x16x32xbf16> to vector<2x16x8xbf16>
    %210 = vector.extract_strided_slice %153 {offsets = [0, 0, 24], sizes = [2, 16, 8], strides = [1, 1, 1]} : vector<2x16x32xbf16> to vector<2x16x8xbf16>
    "tpu.trace_start"() <{level = 10 : i32, message = "bqd,bkd->bqk"}> : () -> ()
    %cst_67 = arith.constant dense<0.000000e+00> : vector<2x8x16xf32>
    %211 = tpu.matmul %208, %209, %cst_67 {dimension_numbers = #tpu.dot_dimension_numbers<[2], [2], [1], [1], [0, 0, 0, 1, 1, 1], [0], [0]>} : vector<2x8x8xbf16>, vector<2x16x8xbf16>, vector<2x8x16xf32> -> vector<2x8x16xf32>
    "tpu.trace_stop"() : () -> ()
    %cst_68 = arith.constant dense<0xFF800000> : vector<2x8xf32>
    %212 = vector.multi_reduction <maximumf>, %211, %cst_68 [2] : vector<2x8x16xf32> to vector<2x8xf32>
    %213 = vector.shape_cast %212 : vector<2x8xf32> to vector<2x8x1xf32>
    %214 = vector.broadcast %213 : vector<2x8x1xf32> to vector<2x8x16xf32>
    %215 = arith.subf %211, %214 : vector<2x8x16xf32>
    %216 = math.exp %215 : vector<2x8x16xf32>
    %cst_69 = arith.constant dense<0.000000e+00> : vector<2x8xf32>
    %217 = vector.multi_reduction <add>, %216, %cst_69 [2] : vector<2x8x16xf32> to vector<2x8xf32>
    %218 = vector.shape_cast %217 : vector<2x8xf32> to vector<2x8x1xf32>
    %219 = tpu.reciprocal %218 {approx = true} : vector<2x8x1xf32> -> vector<2x8x1xf32>
    %220 = vector.broadcast %219 : vector<2x8x1xf32> to vector<2x8x16xf32>
    %221 = arith.mulf %216, %220 : vector<2x8x16xf32>
    %222 = arith.truncf %221 : vector<2x8x16xf32> to vector<2x8x16xbf16>
    "tpu.trace_start"() <{level = 10 : i32, message = "bqk,bkd->bqd"}> : () -> ()
    %cst_70 = arith.constant dense<0.000000e+00> : vector<2x8x8xf32>
    %223 = tpu.matmul %222, %210, %cst_70 {dimension_numbers = #tpu.dot_dimension_numbers<[2], [1], [1], [2], [0, 0, 0, 1, 1, 2], [0], [0]>} : vector<2x8x16xbf16>, vector<2x16x8xbf16>, vector<2x8x8xf32> -> vector<2x8x8xf32>
    "tpu.trace_stop"() : () -> ()
    %224 = tpu.concatenate %172, %189, %206, %223 in 2 : vector<2x8x8xf32>, vector<2x8x8xf32>, vector<2x8x8xf32>, vector<2x8x8xf32> -> vector<2x8x32xf32>
    %225 = vector.shape_cast %224 : vector<2x8x32xf32> to vector<16x32xf32>
    %226 = arith.truncf %225 : vector<16x32xf32> to vector<16x32xbf16>
    %cst_71 = arith.constant dense<0.000000e+00> : vector<16x32xf32>
    %227 = tpu.matmul %226, %155, %cst_71 {dimension_numbers = #tpu.dot_dimension_numbers<[1], [0], [0], [1], [0, 0, 1, 1], [], []>} : vector<16x32xbf16>, vector<32x32xbf16>, vector<16x32xf32> -> vector<16x32xf32>
    %228 = vector.broadcast %9 : vector<1x32xf32> to vector<16x32xf32>
    %229 = arith.addf %227, %228 : vector<16x32xf32>
    %230 = vector.shape_cast %229 : vector<16x32xf32> to vector<2x8x32xf32>
    %231 = arith.addf %141, %230 : vector<2x8x32xf32>
    %cst_72 = arith.constant dense<0.000000e+00> : vector<2x8xf32>
    %232 = vector.multi_reduction <add>, %231, %cst_72 [2] : vector<2x8x32xf32> to vector<2x8xf32>
    %233 = vector.shape_cast %232 : vector<2x8xf32> to vector<2x8x1xf32>
    %cst_73 = arith.constant 3.200000e+01 : f32
    %234 = vector.broadcast %cst_73 : f32 to vector<2x8x1xf32>
    %235 = arith.divf %233, %234 : vector<2x8x1xf32>
    %236 = vector.broadcast %235 : vector<2x8x1xf32> to vector<2x8x32xf32>
    %237 = arith.subf %231, %236 : vector<2x8x32xf32>
    %238 = arith.mulf %237, %237 : vector<2x8x32xf32>
    %cst_74 = arith.constant dense<0.000000e+00> : vector<2x8xf32>
    %239 = vector.multi_reduction <add>, %238, %cst_74 [2] : vector<2x8x32xf32> to vector<2x8xf32>
    %240 = vector.shape_cast %239 : vector<2x8xf32> to vector<2x8x1xf32>
    %cst_75 = arith.constant 3.200000e+01 : f32
    %241 = vector.broadcast %cst_75 : f32 to vector<2x8x1xf32>
    %242 = arith.divf %240, %241 : vector<2x8x1xf32>
    %cst_76 = arith.constant 9.99999974E-6 : f32
    %243 = vector.broadcast %cst_76 : f32 to vector<2x8x1xf32>
    %244 = arith.addf %242, %243 : vector<2x8x1xf32>
    %245 = math.rsqrt %244 : vector<2x8x1xf32>
    %246 = vector.broadcast %245 : vector<2x8x1xf32> to vector<2x8x32xf32>
    %247 = arith.mulf %237, %246 : vector<2x8x32xf32>
    %248 = vector.shape_cast %13 : vector<1x32xf32> to vector<1x1x32xf32>
    %249 = vector.broadcast %248 : vector<1x1x32xf32> to vector<2x8x32xf32>
    %250 = arith.mulf %247, %249 : vector<2x8x32xf32>
    %251 = vector.shape_cast %14 : vector<1x32xf32> to vector<1x1x32xf32>
    %252 = vector.broadcast %251 : vector<1x1x32xf32> to vector<2x8x32xf32>
    %253 = arith.addf %250, %252 : vector<2x8x32xf32>
    %254 = vector.shape_cast %253 : vector<2x8x32xf32> to vector<16x32xf32>
    %c0_77 = arith.constant 0 : index
    %c0_78 = arith.constant 0 : index
    %c0_79 = arith.constant 0 : index
    %255 = vector.load %arg11[%c0_77, %c0_78, %c0_79] : memref<1x32x64xbf16, #tpu.memory_space<vmem>>, vector<1x32x64xbf16>
    %256 = vector.shape_cast %255 : vector<1x32x64xbf16> to vector<32x64xbf16>
    %257 = arith.truncf %254 : vector<16x32xf32> to vector<16x32xbf16>
    %cst_80 = arith.constant dense<0.000000e+00> : vector<16x64xf32>
    %258 = tpu.matmul %257, %256, %cst_80 {dimension_numbers = #tpu.dot_dimension_numbers<[1], [0], [0], [1], [0, 0, 1, 1], [], []>} : vector<16x32xbf16>, vector<32x64xbf16>, vector<16x64xf32> -> vector<16x64xf32>
    %c0_81 = arith.constant 0 : index
    %c0_82 = arith.constant 0 : index
    %c0_83 = arith.constant 0 : index
    %259 = vector.load %arg12[%c0_81, %c0_82, %c0_83] : memref<1x1x64xf32, #tpu.memory_space<vmem>>, vector<1x1x64xf32>
    %260 = vector.shape_cast %259 : vector<1x1x64xf32> to vector<1x64xf32>
    %261 = vector.broadcast %260 : vector<1x64xf32> to vector<16x64xf32>
    %262 = arith.addf %258, %261 : vector<16x64xf32>
    %cst_84 = arith.constant 0.000000e+00 : f32
    %263 = vector.broadcast %cst_84 : f32 to vector<16x64xf32>
    %264 = arith.maximumf %262, %263 : vector<16x64xf32>
    %c0_85 = arith.constant 0 : index
    %c0_86 = arith.constant 0 : index
    %c0_87 = arith.constant 0 : index
    %265 = vector.load %arg13[%c0_85, %c0_86, %c0_87] : memref<1x64x32xbf16, #tpu.memory_space<vmem>>, vector<1x64x32xbf16>
    %266 = vector.shape_cast %265 : vector<1x64x32xbf16> to vector<64x32xbf16>
    %267 = arith.truncf %264 : vector<16x64xf32> to vector<16x64xbf16>
    %cst_88 = arith.constant dense<0.000000e+00> : vector<16x32xf32>
    %268 = tpu.matmul %267, %266, %cst_88 {dimension_numbers = #tpu.dot_dimension_numbers<[1], [0], [0], [1], [0, 0, 1, 1], [], []>} : vector<16x64xbf16>, vector<64x32xbf16>, vector<16x32xf32> -> vector<16x32xf32>
    %269 = vector.broadcast %10 : vector<1x32xf32> to vector<16x32xf32>
    %270 = arith.addf %268, %269 : vector<16x32xf32>
    %271 = vector.shape_cast %270 : vector<16x32xf32> to vector<2x8x32xf32>
    %272 = arith.addf %253, %271 : vector<2x8x32xf32>
    %cst_89 = arith.constant dense<0.000000e+00> : vector<2x8xf32>
    %273 = vector.multi_reduction <add>, %272, %cst_89 [2] : vector<2x8x32xf32> to vector<2x8xf32>
    %274 = vector.shape_cast %273 : vector<2x8xf32> to vector<2x8x1xf32>
    %cst_90 = arith.constant 3.200000e+01 : f32
    %275 = vector.broadcast %cst_90 : f32 to vector<2x8x1xf32>
    %276 = arith.divf %274, %275 : vector<2x8x1xf32>
    %277 = vector.broadcast %276 : vector<2x8x1xf32> to vector<2x8x32xf32>
    %278 = arith.subf %272, %277 : vector<2x8x32xf32>
    %279 = arith.mulf %278, %278 : vector<2x8x32xf32>
    %cst_91 = arith.constant dense<0.000000e+00> : vector<2x8xf32>
    %280 = vector.multi_reduction <add>, %279, %cst_91 [2] : vector<2x8x32xf32> to vector<2x8xf32>
    %281 = vector.shape_cast %280 : vector<2x8xf32> to vector<2x8x1xf32>
    %cst_92 = arith.constant 3.200000e+01 : f32
    %282 = vector.broadcast %cst_92 : f32 to vector<2x8x1xf32>
    %283 = arith.divf %281, %282 : vector<2x8x1xf32>
    %cst_93 = arith.constant 9.99999974E-6 : f32
    %284 = vector.broadcast %cst_93 : f32 to vector<2x8x1xf32>
    %285 = arith.addf %283, %284 : vector<2x8x1xf32>
    %286 = math.rsqrt %285 : vector<2x8x1xf32>
    %287 = vector.broadcast %286 : vector<2x8x1xf32> to vector<2x8x32xf32>
    %288 = arith.mulf %278, %287 : vector<2x8x32xf32>
    %289 = vector.shape_cast %15 : vector<1x32xf32> to vector<1x1x32xf32>
    %290 = vector.broadcast %289 : vector<1x1x32xf32> to vector<2x8x32xf32>
    %291 = arith.mulf %288, %290 : vector<2x8x32xf32>
    %292 = vector.shape_cast %16 : vector<1x32xf32> to vector<1x1x32xf32>
    %293 = vector.broadcast %292 : vector<1x1x32xf32> to vector<2x8x32xf32>
    %294 = arith.addf %291, %293 : vector<2x8x32xf32>
    %c0_94 = arith.constant 0 : index
    %c0_95 = arith.constant 0 : index
    %c0_96 = arith.constant 0 : index
    %295 = vector.load %arg15[%c0_94, %c0_95, %c0_96] : memref<2x8x32xf32, #tpu.memory_space<vmem>>, vector<2x8x32xf32>
    tpu.vector_store %arg15[%c0_94, %c0_95, %c0_96], %294 {strides = array<i32>} : memref<2x8x32xf32, #tpu.memory_space<vmem>>, vector<2x8x32xf32>,
    return
  }
  func.func @transform_0(%arg0: i32, %arg1: i32) -> (i32, i32, i32) {
    %c0_i32 = arith.constant 0 : i32
    %c0_i32_0 = arith.constant 0 : i32
    %c0_i32_1 = arith.constant 0 : i32
    return %arg0, %c0_i32, %c0_i32_0 : i32, i32, i32
  }
  func.func @transform_1(%arg0: i32, %arg1: i32) -> (i32, i32, i32) {
    %c0_i32 = arith.constant 0 : i32
    %c0_i32_0 = arith.constant 0 : i32
    %c0_i32_1 = arith.constant 0 : i32
    return %arg0, %c0_i32, %c0_i32_0 : i32, i32, i32
  }
  func.func @transform_2(%arg0: i32, %arg1: i32) -> (i32, i32, i32, i32) {
    %c0_i32 = arith.constant 0 : i32
    %c0_i32_0 = arith.constant 0 : i32
    %c0_i32_1 = arith.constant 0 : i32
    return %arg1, %arg0, %c0_i32, %c0_i32_0 : i32, i32, i32, i32
  }
  func.func @transform_3(%arg0: i32, %arg1: i32) -> (i32, i32, i32, i32) {
    %c0_i32 = arith.constant 0 : i32
    %c0_i32_0 = arith.constant 0 : i32
    %c0_i32_1 = arith.constant 0 : i32
    return %arg1, %arg0, %c0_i32, %c0_i32_0 : i32, i32, i32, i32
  }
  func.func @transform_4(%arg0: i32, %arg1: i32) -> (i32, i32, i32) {
    %c0_i32 = arith.constant 0 : i32
    %c0_i32_0 = arith.constant 0 : i32
    %c0_i32_1 = arith.constant 0 : i32
    return %arg1, %c0_i32, %c0_i32_0 : i32, i32, i32
  }
  func.func @transform_5(%arg0: i32, %arg1: i32) -> (i32, i32, i32) {
    %c0_i32 = arith.constant 0 : i32
    %c0_i32_0 = arith.constant 0 : i32
    %c0_i32_1 = arith.constant 0 : i32
    return %arg1, %c0_i32, %c0_i32_0 : i32, i32, i32
  }
  func.func @transform_6(%arg0: i32, %arg1: i32) -> (i32, i32, i32) {
    %c0_i32 = arith.constant 0 : i32
    %c0_i32_0 = arith.constant 0 : i32
    %c0_i32_1 = arith.constant 0 : i32
    return %arg1, %c0_i32, %c0_i32_0 : i32, i32, i32
  }
  func.func @transform_7(%arg0: i32, %arg1: i32) -> (i32, i32, i32) {
    %c0_i32 = arith.constant 0 : i32
    %c0_i32_0 = arith.constant 0 : i32
    %c0_i32_1 = arith.constant 0 : i32
    return %arg1, %c0_i32, %c0_i32_0 : i32, i32, i32
  }
  func.func @transform_8(%arg0: i32, %arg1: i32) -> (i32, i32, i32) {
    %c0_i32 = arith.constant 0 : i32
    %c0_i32_0 = arith.constant 0 : i32
    %c0_i32_1 = arith.constant 0 : i32
    return %arg1, %c0_i32, %c0_i32_0 : i32, i32, i32
  }
  func.func @transform_9(%arg0: i32, %arg1: i32) -> (i32, i32, i32) {
    %c0_i32 = arith.constant 0 : i32
    %c0_i32_0 = arith.constant 0 : i32
    %c0_i32_1 = arith.constant 0 : i32
    return %arg1, %c0_i32, %c0_i32_0 : i32, i32, i32
  }
  func.func @transform_10(%arg0: i32, %arg1: i32) -> (i32, i32, i32) {
    %c0_i32 = arith.constant 0 : i32
    %c0_i32_0 = arith.constant 0 : i32
    %c0_i32_1 = arith.constant 0 : i32
    return %arg1, %c0_i32, %c0_i32_0 : i32, i32, i32
  }
  func.func @transform_11(%arg0: i32, %arg1: i32) -> (i32, i32, i32) {
    %c0_i32 = arith.constant 0 : i32
    %c0_i32_0 = arith.constant 0 : i32
    %c0_i32_1 = arith.constant 0 : i32
    return %arg1, %c0_i32, %c0_i32_0 : i32, i32, i32
  }
  func.func @transform_12(%arg0: i32, %arg1: i32) -> (i32, i32, i32) {
    %c0_i32 = arith.constant 0 : i32
    %c0_i32_0 = arith.constant 0 : i32
    %c0_i32_1 = arith.constant 0 : i32
    return %arg1, %c0_i32, %c0_i32_0 : i32, i32, i32
  }
  func.func @transform_13(%arg0: i32, %arg1: i32) -> (i32, i32, i32) {
    %c0_i32 = arith.constant 0 : i32
    %c0_i32_0 = arith.constant 0 : i32
    %c0_i32_1 = arith.constant 0 : i32
    return %arg0, %c0_i32, %c0_i32_0 : i32, i32, i32
  }
}

</mosaic_0001>

<bundles_post_ra>
// kernel: transformer_decoder_forward.3
= control target key start
LH: loop header
LB: loop body
LE: loop exit
PB: predicated region body
PF: predicated region fallthrough
CT: control target
= control target key end

     0   :  { %8 = vsyncpa [#allocation3], 0  ;;  %s351_s0 = inlined_call_operand.hbm [shape: f32[16,32], index: 0, kind: input, shape index: {}]   ;;  %s352_s1 = inlined_call_operand.hbm [shape: bf16[32,128], index: 1, kind: input, shape index: {}]   ;;  %s353_s2 = inlined_call_operand.hbm [shape: f32[1,128], index: 2, kind: input, shape index: {}]   ;;  %s354_s3 = inlined_call_operand.hbm [shape: f32[16,128], index: 3, kind: output, shape index: {}]  }
   0x1   :  { %9 = vsyncpa [#allocation6], 0 }
   0x2   :  { %10 = vsyncpa [#allocation4], 0  ;;  %s267_s12 = smov [#allocation5]   ;;  %s173_s16 = scalar_lea.hbm %s352_s1, 256 }
   0x3   :  { %s28_s13 = sshll.u32 %s267_s12, 4  ;;  %p174_p0 = scmp.ne.s32.totalorder %s352_s1, %s173_s16  ;;  %s29_s13 = int_to_ptr.vmem [resolvable:$true] %s28_s13 }
   0x4   :  { %p177_p1 = scmp.lt.u32.totalorder %s173_s16, %s352_s1 }
   0x6   :  { %p179_p2 = pnand %p177_p1, %p174_p0 }
   0x8   :  { %182 = shalt.err (!%p179_p2)
}
   0x9   :  { %s183_s21 = scalar_lea.vmem %s29_s13, 256  ;;  %p188_p4 = scmp.lt.s32.totalorder %s29_s13, %s29_s13 }
   0xa   :  { %p184_p3 = scmp.ne.s32.totalorder %s29_s13, %s183_s21  ;;  %p189_p5 = scmp.lt.s32.totalorder %s183_s21, %s183_s21 }
   0xc   :  { %p190_p6 = por %p189_p5, %p188_p4 }
   0xe   :  { %p191_p7 = pnand %p190_p6, %p184_p3 }
  0x10   :  { %194 = shalt.err (!%p191_p7)
}
  0x11   :  { %s268_s22 = smov 64   ;;  %s269_s23 = smov 4  }
  0x12   :  { %34 = dma.hbm_to_vmem [thread:$0]  %s352_s1, 256, %s29_s13, [#allocation6], %s268_s22, %s268_s22, %s269_s23  }
  0x13   :  { %s270_s26 = smov [#allocation2]   ;;  %s195_s30 = scalar_lea.hbm %s351_s0, 256 }
  0x14   :  { %s16_s27 = sshll.u32 %s270_s26, 4  ;;  %p196_p8 = scmp.ne.s32.totalorder %s351_s0, %s195_s30  ;;  %s17_s27 = int_to_ptr.vmem [resolvable:$true] %s16_s27 }
  0x15   :  { %p199_p9 = scmp.lt.u32.totalorder %s195_s30, %s351_s0 }
  0x17   :  { %p201_p10 = pnand %p199_p9, %p196_p8 }
  0x19   :  { %204 = shalt.err (!%p201_p10)
}
  0x1a   :  { %s205_s8 = scalar_lea.vmem %s17_s27, 256  ;;  %p210_p12 = scmp.lt.s32.totalorder %s17_s27, %s17_s27 }
  0x1b   :  { %p206_p11 = scmp.ne.s32.totalorder %s17_s27, %s205_s8  ;;  %p211_p13 = scmp.lt.s32.totalorder %s205_s8, %s205_s8 }
  0x1d   :  { %p212_p0 = por %p211_p13, %p210_p12 }
  0x1f   :  { %p213_p1 = pnand %p212_p0, %p206_p11 }
  0x21   :  { %216 = shalt.err (!%p213_p1)
}
  0x22   :  { %s271_s1 = smov 128   ;;  %s272_s9 = smov 8  }
  0x23   :  { %22 = dma.hbm_to_vmem [thread:$0]  %s351_s0, 256, %s17_s27, [#allocation3], %s271_s1, %s271_s1, %s272_s9  }
  0x24   :  { %s273_s12 = smov [#allocation7]   ;;  %s217_s16 = scalar_lea.hbm %s353_s2, 16 }
  0x25   :  { %s41_s13 = sshll.u32 %s273_s12, 4  ;;  %p218_p2 = scmp.ne.s32.totalorder %s353_s2, %s217_s16  ;;  %s42_s13 = int_to_ptr.vmem [resolvable:$true] %s41_s13 }
  0x26   :  { %p221_p3 = scmp.lt.u32.totalorder %s217_s16, %s353_s2 }
  0x28   :  { %p223_p4 = pnand %p221_p3, %p218_p2 }
  0x2a   :  { %226 = shalt.err (!%p223_p4)
}
  0x2b   :  { %s227_s21 = scalar_lea.vmem %s42_s13, 16  ;;  %s231_s0 = scalar_lea.vmem %s42_s13, 32 }
  0x2c   :  { %p228_p5 = scmp.ne.s32.totalorder %s42_s13, %s227_s21  ;;  %p232_p6 = scmp.lt.s32.totalorder %s42_s13, %s42_s13 }
  0x2d   :  { %p233_p7 = scmp.lt.s32.totalorder %s231_s0, %s227_s21 }
  0x2f   :  { %p234_p8 = por %p233_p7, %p232_p6 }
  0x31   :  { %p235_p9 = pnand %p234_p8, %p228_p5 }
  0x33   :  { %238 = shalt.err (!%p235_p9)
}
  0x34   :  { %44 = dma.hbm_to_vmem [thread:$0]  %s353_s2, 16, %s42_s13, [#allocation6]  }
  0x35   :  { %261 = dma.done.wait [#allocation3], 256  }
  0x36   :  { %262 = vsyncadd [#allocation3], 4294967040 }
  0x37   :  { %263 = dma.done.wait [#allocation6], 272  }
  0x38   :  { %264 = vsyncadd [#allocation6], 4294967024  ;;  %v274_v0 = vmov 0.0   ;;  %vm275_vm0 = vmmov 0   ;;  %v171_v1 = vld [vmem:[#allocation5] sm:$0xff]   ;;  %v172_v2 = vld [vmem:[#allocation5 + $0x8] sm:$0xff]  }
  0x39   :  { %153 = vmatprep.subr.bf16.mxu0 %v274_v0  ;;  %157 = vmatprep.mubr.msk.bf16.mxu0 %vm275_vm0, %v274_v0  ;;  %v55_v3 = vld [vmem:[#allocation2] sm:$0xff]  ;;  %v56_v4 = vld [vmem:[#allocation2 + $0x8] sm:$0xff]  ;;  %vm81_vm1 = vcmask 261120   ;;  %s276_s2 = smov [#allocation8]  }
  0x3a   :  { %154 = vmatpush3.bf16.msra.mxu0 %v171_v1  ;;  %v57_v5 = vpack.c.bf16 %v56_v4, %v55_v3  ;;  %v146_v6 = vld [vmem:[#allocation7] ss:$0 sm:$0xff]  ;;  %s133_s24 = sshll.u32 %s276_s2, 4  ;;  %s134_s24 = int_to_ptr.vmem [resolvable:$true] %s133_s24 }
  0x3b   :  { %155 = vmatprep.subr.bf16.mxu0 %v274_v0  ;;  %s239_s25 = scalar_lea.vmem %s134_s24, 256  ;;  %p244_p11 = scmp.lt.s32.totalorder %s134_s24, %s134_s24 }
  0x3c   :  { %p240_p10 = scmp.ne.s32.totalorder %s134_s24, %s239_s25  ;;  %p245_p12 = scmp.lt.s32.totalorder %s239_s25, %s239_s25 }
  0x3e   :  { %156 = vmatpush3.bf16.msra.mxu0 %v172_v2  ;;  %p246_p13 = por %p245_p12, %p244_p11 }
  0x40   :  { %p247_p0 = pnand %p246_p13, %p240_p10 }
  0x41   :  { %158 = vmatmul.mubr.msk.bf16.vlgmr.msra.gmra.mrb[0].mxu0 %vm81_vm1, %v57_v5 }
 0x114   :  { %v119_v7 = vpop.f32.mrb[0].mxu0 }
 0x115   :  { %v120_v8 = vadd.f32 %v146_v6, %v119_v7  ;;  %v159_v9 = vpop.f32.mrb[1].mxu0 }
 0x116   :  { %v122_v10 = vpop.f32.mrb[2].mxu0 }
 0x117   :  { %126 = vst [vmem:[#allocation8] sm:$0xff] %v120_v8  ;;  %v123_v11 = vadd.f32 %v146_v6, %v122_v10  ;;  %v160_v12 = vpop.f32.mrb[3].mxu0 }
 0x119   :  { %127 = vst [vmem:[#allocation8 + $0x8] sm:$0xff] %v123_v11 }
 0x11a   :  { %250 = shalt.err (!%p247_p0)
}
 0x11b   :  { %s251_s28 = scalar_lea.hbm %s354_s3, 256 }
 0x11c   :  { %p252_p1 = scmp.ne.s32.totalorder %s354_s3, %s251_s28  ;;  %p255_p2 = scmp.lt.u32.totalorder %s251_s28, %s354_s3 }
 0x11e   :  { %p257_p3 = pnand %p255_p2, %p252_p1 }
 0x120   :  { %260 = shalt.err (!%p257_p3)
}
 0x121   :  { %139 = dma.vmem_to_hbm [thread:$0]  %s134_s24, 256, %s354_s3, [#allocation4], %s271_s1, %s271_s1, %s272_s9  }
 0x122   :  { %265 = dma.done.wait [#allocation4], 256  }
 0x123   :  { %266 = vsyncadd [#allocation4], 4294967040 }
 0x124   :  { %143 = vsyncpa [#allocation3], 1 }
 0x125   :  { %144 = vsyncpa [#allocation6], 1 }
 0x126   :  { %145 = vsyncpa [#allocation4], 1 }

// kernel: transformer_decoder_forward.2
= control target key start
LH: loop header
LB: loop body
LE: loop exit
PB: predicated region body
PF: predicated region fallthrough
CT: control target
= control target key end

     0   :  { %s5896_s0 = inlined_call_operand.hbm [shape: f32[2,8,32], index: 0, kind: input, shape index: {}]   ;;  %s5897_s1 = inlined_call_operand.hbm [shape: f32[2,8,8], index: 1, kind: input, shape index: {}]   ;;  %s5898_s2 = inlined_call_operand.hbm [shape: bf16[2,2,16,32], index: 2, kind: input, shape index: {}]   ;;  %s5899_s3 = inlined_call_operand.hbm [shape: bf16[2,2,16,32], index: 3, kind: input, shape index: {}]   ;;  %s5900_s4 = inlined_call_operand.hbm [shape: bf16[2,32,96], index: 4, kind: input, shape index: {}]   ;;  %s5901_s5 = inlined_call_operand.hbm [shape: f32[2,1,96], index: 5, kind: input, shape index: {}]   ;;  %s5902_s6 = inlined_call_operand.hbm [shape: bf16[2,32,32], index: 6, kind: input, shape index: {}]   ;;  %s5903_s7 = inlined_call_operand.hbm [shape: bf16[2,32,32], index: 7, kind: input, shape index: {}]   ;;  %s5904_s8 = inlined_call_operand.hbm [shape: bf16[2,32,32], index: 8, kind: input, shape index: {}]   ;;  %s5905_s9 = inlined_call_operand.hbm [shape: bf16[2,32,64], index: 9, kind: input, shape index: {}]   ;;  %s5906_s10 = inlined_call_operand.hbm [shape: f32[2,1,64], index: 10, kind: input, shape index: {}]   ;;  %s5907_s11 = inlined_call_operand.hbm [shape: bf16[2,64,32], index: 11, kind: input, shape index: {}]   ;;  %s5908_s12 = inlined_call_operand.hbm [shape: f32[2,10,32], index: 12, kind: input, shape index: {}]   ;;  %s5909_s13 = inlined_call_operand.hbm [shape: f32[2,8,32], index: 13, kind: output, shape index: {}]  }
   0x1   :  { %5939 = sst [smem:[#allocation32_spill]] %s5896_s0 }
   0x2   :  { %5940 = sst [smem:[#allocation33_spill]] %s5897_s1 }
   0x3   :  { %5941 = sst [smem:[#allocation34_spill]] %s5898_s2 }
   0x4   :  { %5942 = sst [smem:[#allocation35_spill]] %s5899_s3 }
   0x5   :  { %5943 = sst [smem:[#allocation36_spill]] %s5900_s4 }
   0x6   :  { %5944 = sst [smem:[#allocation37_spill]] %s5901_s5 }
   0x7   :  { %5945 = sst [smem:[#allocation38_spill]] %s5909_s13 }
   0x8   :  { %18 = vsyncpa [#allocation3], 0 }
   0x9   :  { %19 = vsyncpa [#allocation6], 0 }
   0xa   :  { %20 = vsyncpa [#allocation4], 0  ;;  %s4864_s25 = smov 0   ;;  %s4866_s26 = smov 0  }
   0xb   :  { %s4868_s27 = smov 0   ;;  %s4870_s28 = smov 0  }
   0xc   :  { %s4872_s29 = smov 0   ;;  %s4874_s30 = smov 0  }
   0xd LB: > { %5946 = sst [smem:[#allocation23_spill]] %s4741_s26  ;;  %s4893_s14 = sadd.s32 4294967295, %s4757_s30   ;;  %s4757_s30 = sphi %s4874_s30, %s26_s30   ;;  %s4753_s29 = sphi %s4872_s29, %s5998_s29   ;;  %s4749_s28 = sphi %s4870_s28, %s5997_s28   ;;  %s4745_s27 = sphi %s4868_s27, %s5995_s27   ;;  %s4741_s26 = sphi %s4866_s26, %s5994_s26   ;;  %s4737_s25 = sphi %s4864_s25, %s5993_s25  }
   0xe   : > { %5947 = sst [smem:[#allocation24_spill]] %s4745_s27  ;;  %s35_s15 = sadd.s32 1, %s4753_s29 }
   0xf   : > { %5948 = sst [smem:[#allocation25_spill]] %s4749_s28  ;;  %p36_p0 = scmp.ge.s32.totalorder %s35_s15, 2 }
  0x10   : > { %5949 = sst [smem:[#allocation26_spill]] %s4757_s30  ;;  %s99_s16 = sadd.s32 1, %s4745_s27 }
  0x11   : > { %5950 = sst [smem:[#allocation27_spill]] %s4893_s14  ;;  %p106_p1 = scmp.ne.s32.totalorder %s4745_s27, %s4741_s26 }
  0x12   : > { %p107_p2 = scmp.eq.s32.totalorder %s4757_s30, 0  ;;  %s6000_s15 = smov (%p36_p0, %s35_s15), 0 }
  0x13   : > { %5951 = sst [smem:[#allocation28_spill]] %s6000_s15  ;;  %p112_p4 = scmp.ne.s32.totalorder %s4741_s26, %s4737_s25 }
  0x14   : > { %p4902_p3 = por %p107_p2, %p106_p1  ;;  %s94_s18 = ssub.s32 %s4753_s29, %s6000_s15 }
  0x15   : > { %p5915_p5 = scmp.eq.s32.totalorder %s4893_s14, 0  ;;  %p97_p6 = scmp.eq.s32.totalorder %s94_s18, 0 }
  0x16   : > { %s5952_s17 = scalar_select %p4902_p3, 1, 0 }
  0x17   : > { %p3560_p7 = scmp.ge.s32.totalorder %s4757_s30, 1  ;;  %p4913_p8 = por %p5915_p5, %p112_p4 }
  0x18   : > { %p411_p9 = scmp.lt.s32.totalorder %s4757_s30, 3  ;;  %s4759_s22 = smov [#allocation2]  }
  0x19   : > { %s5953_s19 = scalar_select %p4913_p8, 1, 0 }
  0x1a   : > { %s4919_s20 = scalar_select %p97_p6, %s4745_s27, %s99_s16  }
  0x1b   : > { %5954 = sst [smem:[#allocation29_spill]] %s5953_s19  ;;  %p4921_p10 = pnand %p3560_p7, %p411_p9 }
  0x1c   : > { %5955 = sst [smem:[#allocation30_spill]] %s4919_s20  ;;  %s426_s23 = sshll.u32 %s4759_s22, 4  ;;  %s427_s23 = int_to_ptr.vmem [resolvable:$true] %s426_s23 }
  0x1d   : > { %s5956_s21 = scalar_select %p4921_p10, 1, 0 }
  0x1e   : > { %p4039_p11 = pneg %p4921_p10  ;;  %s4935_s25 = sand.u32 1, %s4745_s27  }
  0x1f   : > { %5957 = sst [smem:[#allocation31_spill]] %s5956_s21  ;;  %s4938_s16 = sshll.u32 %s4935_s25, 4 }
  0x20   : > { %p4929_p12 = pnand %p4039_p11, %p5915_p5  ;;  %s5959_s0 = sld [smem:[#allocation32_spill]] }
  0x22   : > { %s5958_s24 = scalar_select %p4929_p12, 1, 0 }
  0x23   : > { %p5926_p1 = pneg %p4929_p12 }
  0x26   : > { %s4283_s20 = scalar_lea.hbm %s5959_s0, 256 }
  0x27   : > { %p4284_p0 = scmp.ne.s32.totalorder %s5959_s0, %s4283_s20  ;;  %p4290_p6 = scmp.lt.u32.totalorder %s4283_s20, %s5959_s0 }
  0x29   : > { %p4286_p2 = pnand %p5926_p1, %p4284_p0 }
  0x2b   : > { %p4287_p4 = pneg %p4286_p2 }
  0x2d   : > { %p4292_p7 = pnand %p4290_p6, %p4287_p4 }
  0x2f   : > { %4295 = shalt.err (!%p4292_p7)
}
  0x30   : > { %s4296_s19 = scalar_lea.vmem %s427_s23, 256  ;;  %p4304_p13 = scmp.lt.s32.totalorder %s427_s23, %s427_s23 }
  0x31   : > { %p4297_p9 = scmp.ne.s32.totalorder %s427_s23, %s4296_s19  ;;  %p4305_p8 = scmp.lt.s32.totalorder %s4296_s19, %s4296_s19 }
  0x33   : > { %p4299_p11 = pnand %p4297_p9, %p5926_p1  ;;  %p4306_p10 = por %p4305_p8, %p4304_p13 }
  0x35   : > { %p4300_p5 = pneg %p4299_p11 }
  0x37   : > { %p4307_p3 = pnand %p4306_p10, %p4300_p5 }
  0x39   : > { %4310 = shalt.err (!%p4307_p3)
}
  0x3a   : > { %s5922_s13 = smov 128   ;;  %s5924_s27 = smov 8  }
  0x3b   : > { %4042 = dma.hbm_to_vmem [thread:$0]  (!%p4929_p12), %s5959_s0, 256, %s427_s23, [#allocation3], %s5922_s13, %s5922_s13, %s5924_s27  }
  0x3c   : > { %p5960_p0 = scmp.ne.s32.totalorder %s5952_s17, 0  ;;  %p5961_p8 = scmp.lt.s32.totalorder %s4757_s30, 2 }
  0x3d   : > { %s456_s20 = sand.u32 1, %s4757_s30   ;;  %s4975_s18 = sshll.u32 %s4753_s29, 8 }
  0x3e   : > { %p4969_p5 = pnand %p5961_p8, %p5960_p0  ;;  %s5963_s2 = sld [smem:[#allocation34_spill]] }
  0x3f   : > { %s460_s17 = scalar_lea.vmem [#allocation7], %s4938_s16  ;;  %s4986_s28 = scalar_lea.sflag [#allocation3], %s456_s20 }
  0x40   : > { %s5962_s19 = scalar_select %p4969_p5, 1, 0 }
  0x41   : > { %s470_s23 = sshll.u32 %s460_s17, 4  ;;  %p4992_p10 = pneg %p4969_p5  ;;  %s4984_s23 = int_to_ptr.vmem [resolvable:$true] %s470_s23 }
  0x43   : > { %s5964_s13 = scalar_select %p4992_p10, 1, 0 }
  0x44   : > { %s4981_s14 = scalar_lea.hbm %s5963_s2, %s4975_s18  ;;  %s4316_s27 = scalar_lea.hbm %s5963_s2, 512 }
  0x45   : > { %s4311_s15 = scalar_lea.hbm %s4981_s14, 256  ;;  %p4317_p4 = scmp.lt.u32.totalorder %s4981_s14, %s5963_s2 }
  0x46   : > { %p4312_p3 = scmp.ne.s32.totalorder %s4981_s14, %s4311_s15  ;;  %p4318_p6 = scmp.lt.u32.totalorder %s4316_s27, %s4311_s15 }
  0x47   : > { %p4320_p9 = scmp.lt.u32.totalorder %s4311_s15, %s4981_s14 }
  0x48   : > { %p4314_p13 = pnand %p4992_p10, %p4312_p3  ;;  %p4319_p7 = por %p4318_p6, %p4317_p4 }
  0x4a   : > { %p4315_p2 = pneg %p4314_p13  ;;  %p4321_p11 = por %p4320_p9, %p4319_p7 }
  0x4c   : > { %p4322_p0 = pnand %p4321_p11, %p4315_p2 }
  0x4e   : > { %4325 = shalt.err (!%p4322_p0)
}
  0x4f   : > { %s4326_s20 = scalar_lea.vmem %s4984_s23, 256  ;;  %s4762_s26 = smov [#allocation7]  }
  0x50   : > { %p4327_p8 = scmp.ne.s32.totalorder %s4984_s23, %s4326_s20  ;;  %s4331_s22 = sshll.u32 %s4762_s26, 4  ;;  %s4332_s22 = int_to_ptr.vmem [resolvable:$false] %s4331_s22 }
  0x51   : > { %s4333_s0 = scalar_lea.vmem %s4332_s22, 512  ;;  %p4334_p1 = scmp.lt.s32.totalorder %s4984_s23, %s4332_s22 }
  0x52   : > { %p4329_p3 = pnand %p4327_p8, %p4992_p10  ;;  %p4335_p12 = scmp.lt.s32.totalorder %s4333_s0, %s4326_s20 }
  0x54   : > { %p4330_p13 = pneg %p4329_p3  ;;  %p4336_p4 = por %p4335_p12, %p4334_p1 }
  0x56   : > { %p4337_p6 = pnand %p4336_p4, %p4330_p13 }
  0x58   : > { %4340 = shalt.err (!%p4337_p6)
}
  0x59   : > { %s4763_s27 = smov 64   ;;  %s4764_s15 = smov 4  }
  0x5a   : > { %4049 = dma.hbm_to_vmem [thread:$0]  (!%p4969_p5), %s4981_s14, 256, %s4984_s23, %s4986_s28, %s4763_s27, %s4763_s27, %s4764_s15  }
  0x5b   : > { %s5965_s3 = sld [smem:[#allocation35_spill]]  ;;  %s484_s22 = scalar_lea.vmem [#allocation8], %s4938_s16 }
  0x5c   : > { %s494_s0 = sshll.u32 %s484_s22, 4  ;;  %s5026_s0 = int_to_ptr.vmem [resolvable:$true] %s494_s0 }
  0x61   : > { %s5023_s20 = scalar_lea.hbm %s5965_s3, %s4975_s18  ;;  %s4346_s23 = scalar_lea.hbm %s5965_s3, 512 }
  0x62   : > { %s4341_s2 = scalar_lea.hbm %s5023_s20, 256  ;;  %p4347_p7 = scmp.lt.u32.totalorder %s5023_s20, %s5965_s3 }
  0x63   : > { %p4342_p12 = scmp.ne.s32.totalorder %s5023_s20, %s4341_s2  ;;  %p4348_p9 = scmp.lt.u32.totalorder %s4346_s23, %s4341_s2 }
  0x64   : > { %p4350_p0 = scmp.lt.u32.totalorder %s4341_s2, %s5023_s20 }
  0x65   : > { %p4344_p1 = pnand %p4342_p12, %p4992_p10  ;;  %p4349_p11 = por %p4348_p9, %p4347_p7 }
  0x67   : > { %p4345_p2 = pneg %p4344_p1  ;;  %p4351_p8 = por %p4350_p0, %p4349_p11 }
  0x69   : > { %p4352_p3 = pnand %p4351_p8, %p4345_p2 }
  0x6b   : > { %4355 = shalt.err (!%p4352_p3)
}
  0x6c   : > { %s4356_s22 = scalar_lea.vmem %s5026_s0, 256  ;;  %s4765_s30 = smov [#allocation8]  }
  0x6d   : > { %p4357_p13 = scmp.ne.s32.totalorder %s5026_s0, %s4356_s22  ;;  %s4361_s14 = sshll.u32 %s4765_s30, 4  ;;  %s4362_s14 = int_to_ptr.vmem [resolvable:$false] %s4361_s14 }
  0x6e   : > { %s4363_s17 = scalar_lea.vmem %s4362_s14, 512  ;;  %p4364_p12 = scmp.lt.s32.totalorder %s5026_s0, %s4362_s14 }
  0x6f   : > { %p4359_p4 = pnand %p4357_p13, %p4992_p10  ;;  %p4365_p1 = scmp.lt.s32.totalorder %s4363_s17, %s4356_s22 }
  0x71   : > { %p4360_p6 = pneg %p4359_p4  ;;  %p4366_p7 = por %p4365_p1, %p4364_p12 }
  0x73   : > { %p4367_p9 = pnand %p4366_p7, %p4360_p6 }
  0x75   : > { %4370 = shalt.err (!%p4367_p9)
}
  0x76   : > { %4052 = dma.hbm_to_vmem [thread:$0]  (!%p4969_p5), %s5023_s20, 256, %s5026_s0, %s4986_s28, %s4763_s27, %s4763_s27, %s4764_s15  }
  0x77   : > { %s5966_s4 = sld [smem:[#allocation36_spill]]  ;;  %s508_s22 = scalar_lea.vmem [#allocation9], %s4938_s16 }
  0x78   : > { %s515_s30 = sshll.u32 %s508_s22, 4  ;;  %s5060_s30 = int_to_ptr.vmem [resolvable:$true] %s515_s30 }
  0x7d   : > { %s5057_s26 = scalar_lea.hbm %s5966_s4, %s4975_s18  ;;  %s4376_s0 = scalar_lea.hbm %s5966_s4, 512 }
  0x7e   : > { %s4371_s14 = scalar_lea.hbm %s5057_s26, 256  ;;  %p4377_p8 = scmp.lt.u32.totalorder %s5057_s26, %s5966_s4 }
  0x7f   : > { %p4372_p2 = scmp.ne.s32.totalorder %s5057_s26, %s4371_s14  ;;  %p4378_p3 = scmp.lt.u32.totalorder %s4376_s0, %s4371_s14 }
  0x80   : > { %p4380_p4 = scmp.lt.u32.totalorder %s4371_s14, %s5057_s26 }
  0x81   : > { %p4374_p11 = pnand %p4372_p2, %p4992_p10  ;;  %p4379_p13 = por %p4378_p3, %p4377_p8 }
  0x83   : > { %p4375_p0 = pneg %p4374_p11  ;;  %p4381_p6 = por %p4380_p4, %p4379_p13 }
  0x85   : > { %p4382_p12 = pnand %p4381_p6, %p4375_p0 }
  0x87   : > { %4385 = shalt.err (!%p4382_p12)
}
  0x88   : > { %s4386_s22 = scalar_lea.vmem %s5060_s30, 256  ;;  %s4766_s17 = smov [#allocation9]  }
  0x89   : > { %p4387_p1 = scmp.ne.s32.totalorder %s5060_s30, %s4386_s22  ;;  %s4391_s20 = sshll.u32 %s4766_s17, 4  ;;  %s4392_s20 = int_to_ptr.vmem [resolvable:$false] %s4391_s20 }
  0x8a   : > { %s4393_s2 = scalar_lea.vmem %s4392_s20, 512  ;;  %p4394_p2 = scmp.lt.s32.totalorder %s5060_s30, %s4392_s20 }
  0x8b   : > { %p4389_p7 = pnand %p4387_p1, %p4992_p10  ;;  %p4395_p11 = scmp.lt.s32.totalorder %s4393_s2, %s4386_s22 }
  0x8d   : > { %p4390_p9 = pneg %p4389_p7  ;;  %p4396_p8 = por %p4395_p11, %p4394_p2 }
  0x8f   : > { %p4397_p3 = pnand %p4396_p8, %p4390_p9 }
  0x91   : > { %4400 = shalt.err (!%p4397_p3)
}
  0x92   : > { %4055 = dma.hbm_to_vmem [thread:$0]  (!%p4969_p5), %s5057_s26, 256, %s5060_s30, %s4986_s28, %s4763_s27, %s4763_s27, %s4764_s15  }
  0x93   : > { %s5934_s14 = sshll.u32 %s4753_s29, 4  ;;  %s528_s0 = scalar_lea.vmem [#allocation10], %s4935_s25 }
  0x94   : > { %s535_s23 = sshll.u32 %s528_s0, 4  ;;  %s5967_s5 = sld [smem:[#allocation37_spill]]  ;;  %s536_s23 = int_to_ptr.vmem [resolvable:$true] %s535_s23 }
  0x9a   : > { %s533_s20 = scalar_lea.hbm %s5967_s5, %s5934_s14  ;;  %s4406_s21 = scalar_lea.hbm %s5967_s5, 32 }
  0x9b   : > { %s4401_s2 = scalar_lea.hbm %s533_s20, 16  ;;  %p4407_p6 = scmp.lt.u32.totalorder %s533_s20, %s5967_s5 }
  0x9c   : > { %p4402_p0 = scmp.ne.s32.totalorder %s533_s20, %s4401_s2  ;;  %p4408_p12 = scmp.lt.u32.totalorder %s4406_s21, %s4401_s2 }
  0x9d   : > { %p4410_p7 = scmp.lt.u32.totalorder %s4401_s2, %s533_s20 }
  0x9e   : > { %p4404_p13 = pnand %p4402_p0, %p4992_p10  ;;  %p4409_p1 = por %p4408_p12, %p4407_p6 }
  0xa0   : > { %p4405_p4 = pneg %p4404_p13  ;;  %p4411_p9 = por %p4410_p7, %p4409_p1 }
  0xa2   : > { %p4412_p2 = pnand %p4411_p9, %p4405_p4 }
  0xa4   : > { %4415 = shalt.err (!%p4412_p2)
}
  0xa5   : > { %s4416_s30 = scalar_lea.vmem %s536_s23, 16  ;;  %s4767_s0 = smov [#allocation10]  }
  0xa6   : > { %p4417_p11 = scmp.ne.s32.totalorder %s536_s23, %s4416_s30  ;;  %s4421_s22 = sshll.u32 %s4767_s0, 4  ;;  %s4422_s22 = int_to_ptr.vmem [resolvable:$false] %s4421_s22 }
  0xa7   : > { %s4423_s3 = scalar_lea.vmem %s4422_s22, 32  ;;  %p4424_p0 = scmp.lt.s32.totalorder %s536_s23, %s4422_s22 }
  0xa8   : > { %p4419_p8 = pnand %p4417_p11, %p4992_p10  ;;  %p4425_p13 = scmp.lt.s32.totalorder %s4423_s3, %s4416_s30 }
  0xaa   : > { %p4420_p3 = pneg %p4419_p8  ;;  %p4426_p5 = por %p4425_p13, %p4424_p0 }
  0xac   : > { %p4427_p6 = pnand %p4426_p5, %p4420_p3 }
  0xae   : > { %4430 = shalt.err (!%p4427_p6)
}
  0xaf   : > { %p5968_p12 = scmp.ne.s32.totalorder %s5962_s19, 0  ;;  %s5111_s21 = scalar_lea.hbm %s5902_s6, %s4975_s18 }
  0xb0   : > { %s546_s17 = scalar_lea.vmem [#allocation11], %s4938_s16  ;;  %s5120_s0 = scalar_lea.hbm %s5903_s7, %s4975_s18 }
  0xb1   : > { %4058 = dma.hbm_to_vmem [thread:$0]  (!%p5968_p12), %s533_s20, 16, %s536_s23, %s4986_s28  }
  0xb2   : > { %s553_s2 = sshll.u32 %s546_s17, 4  ;;  %s4431_s22 = scalar_lea.hbm %s5111_s21, 256  ;;  %s5114_s2 = int_to_ptr.vmem [resolvable:$true] %s553_s2 }
  0xb3   : > { %p4432_p5 = scmp.ne.s32.totalorder %s5111_s21, %s4431_s22  ;;  %s4436_s3 = scalar_lea.hbm %s5902_s6, 512 }
  0xb4   : > { %p4437_p7 = scmp.lt.u32.totalorder %s5111_s21, %s5902_s6  ;;  %p4438_p9 = scmp.lt.u32.totalorder %s4436_s3, %s4431_s22 }
  0xb5   : > { %p4434_p4 = pnand %p4432_p5, %p4992_p10  ;;  %p4440_p11 = scmp.lt.u32.totalorder %s4431_s22, %s5111_s21 }
  0xb6   : > { %p4439_p2 = por %p4438_p9, %p4437_p7 }
  0xb7   : > { %p4435_p1 = pneg %p4434_p4 }
  0xb8   : > { %p4441_p8 = por %p4440_p11, %p4439_p2 }
  0xba   : > { %p4442_p3 = pnand %p4441_p8, %p4435_p1 }
  0xbc   : > { %4445 = shalt.err (!%p4442_p3)
}
  0xbd   : > { %s4446_s17 = scalar_lea.vmem %s5114_s2, 256  ;;  %s4768_s26 = smov [#allocation11]  }
  0xbe   : > { %p4447_p0 = scmp.ne.s32.totalorder %s5114_s2, %s4446_s17  ;;  %s4451_s30 = sshll.u32 %s4768_s26, 4  ;;  %s4452_s30 = int_to_ptr.vmem [resolvable:$false] %s4451_s30 }
  0xbf   : > { %s4453_s23 = scalar_lea.vmem %s4452_s30, 512  ;;  %p4454_p5 = scmp.lt.s32.totalorder %s5114_s2, %s4452_s30 }
  0xc0   : > { %p4449_p13 = pnand %p4447_p0, %p4992_p10  ;;  %p4455_p4 = scmp.lt.s32.totalorder %s4453_s23, %s4446_s17 }
  0xc2   : > { %p4450_p6 = pneg %p4449_p13  ;;  %p4456_p7 = por %p4455_p4, %p4454_p5 }
  0xc4   : > { %p4457_p9 = pnand %p4456_p7, %p4450_p6 }
  0xc6   : > { %4460 = shalt.err (!%p4457_p9)
}
  0xc7   : > { %4061 = dma.hbm_to_vmem [thread:$0]  (!%p5968_p12), %s5111_s21, 256, %s5114_s2, %s4986_s28, %s4763_s27, %s4763_s27, %s4764_s15  }
  0xc8   : > { %s567_s22 = scalar_lea.vmem [#allocation12], %s4938_s16  ;;  %s5154_s4 = scalar_lea.hbm %s5904_s8, %s4975_s18 }
  0xc9   : > { %s574_s20 = sshll.u32 %s567_s22, 4  ;;  %s4461_s17 = scalar_lea.hbm %s5120_s0, 256  ;;  %s5148_s20 = int_to_ptr.vmem [resolvable:$true] %s574_s20 }
  0xca   : > { %p4462_p1 = scmp.ne.s32.totalorder %s5120_s0, %s4461_s17  ;;  %s4466_s23 = scalar_lea.hbm %s5903_s7, 512 }
  0xcb   : > { %p4467_p8 = scmp.lt.u32.totalorder %s5120_s0, %s5903_s7  ;;  %p4468_p3 = scmp.lt.u32.totalorder %s4466_s23, %s4461_s17 }
  0xcc   : > { %p4464_p2 = pnand %p4462_p1, %p4992_p10  ;;  %p4470_p13 = scmp.lt.u32.totalorder %s4461_s17, %s5120_s0 }
  0xcd   : > { %p4469_p0 = por %p4468_p3, %p4467_p8 }
  0xce   : > { %p4465_p11 = pneg %p4464_p2 }
  0xcf   : > { %p4471_p6 = por %p4470_p13, %p4469_p0 }
  0xd1   : > { %p4472_p5 = pnand %p4471_p6, %p4465_p11 }
  0xd3   : > { %4475 = shalt.err (!%p4472_p5)
}
  0xd4   : > { %s4476_s2 = scalar_lea.vmem %s5148_s20, 256  ;;  %s4769_s22 = smov [#allocation12]  }
  0xd5   : > { %p4477_p4 = scmp.ne.s32.totalorder %s5148_s20, %s4476_s2  ;;  %s4481_s3 = sshll.u32 %s4769_s22, 4  ;;  %s4482_s3 = int_to_ptr.vmem [resolvable:$false] %s4481_s3 }
  0xd6   : > { %s4483_s14 = scalar_lea.vmem %s4482_s3, 512  ;;  %p4484_p1 = scmp.lt.s32.totalorder %s5148_s20, %s4482_s3 }
  0xd7   : > { %p4479_p7 = pnand %p4477_p4, %p4992_p10  ;;  %p4485_p2 = scmp.lt.s32.totalorder %s4483_s14, %s4476_s2 }
  0xd9   : > { %p4480_p9 = pneg %p4479_p7  ;;  %p4486_p8 = por %p4485_p2, %p4484_p1 }
  0xdb   : > { %p4487_p3 = pnand %p4486_p8, %p4480_p9 }
  0xdd   : > { %4490 = shalt.err (!%p4487_p3)
}
  0xde   : > { %4064 = dma.hbm_to_vmem [thread:$0]  (!%p5968_p12), %s5120_s0, 256, %s5148_s20, %s4986_s28, %s4763_s27, %s4763_s27, %s4764_s15  }
  0xdf   : > { %s588_s1 = scalar_lea.vmem [#allocation13], %s4938_s16  ;;  %s5188_s23 = scalar_lea.hbm %s5905_s9, %s4975_s18 }
  0xe0   : > { %s595_s17 = sshll.u32 %s588_s1, 4  ;;  %s4491_s21 = scalar_lea.hbm %s5154_s4, 256  ;;  %s5182_s17 = int_to_ptr.vmem [resolvable:$true] %s595_s17 }
  0xe1   : > { %p4492_p11 = scmp.ne.s32.totalorder %s5154_s4, %s4491_s21  ;;  %s4496_s3 = scalar_lea.hbm %s5904_s8, 512 }
  0xe2   : > { %p4497_p6 = scmp.lt.u32.totalorder %s5154_s4, %s5904_s8  ;;  %p4498_p5 = scmp.lt.u32.totalorder %s4496_s3, %s4491_s21 }
  0xe3   : > { %p4494_p0 = pnand %p4492_p11, %p4992_p10  ;;  %p4500_p7 = scmp.lt.u32.totalorder %s4491_s21, %s5154_s4 }
  0xe4   : > { %p4499_p4 = por %p4498_p5, %p4497_p6 }
  0xe5   : > { %p4495_p13 = pneg %p4494_p0 }
  0xe6   : > { %p4501_p9 = por %p4500_p7, %p4499_p4 }
  0xe8   : > { %p4502_p1 = pnand %p4501_p9, %p4495_p13 }
  0xea   : > { %4505 = shalt.err (!%p4502_p1)
}
  0xeb   : > { %s4506_s20 = scalar_lea.vmem %s5182_s17, 256  ;;  %s4770_s1 = smov [#allocation13]  }
  0xec   : > { %p4507_p2 = scmp.ne.s32.totalorder %s5182_s17, %s4506_s20  ;;  %s4511_s26 = sshll.u32 %s4770_s1, 4  ;;  %s4512_s26 = int_to_ptr.vmem [resolvable:$false] %s4511_s26 }
  0xed   : > { %s4513_s30 = scalar_lea.vmem %s4512_s26, 512  ;;  %p4514_p11 = scmp.lt.s32.totalorder %s5182_s17, %s4512_s26 }
  0xee   : > { %p4509_p8 = pnand %p4507_p2, %p4992_p10  ;;  %p4515_p0 = scmp.lt.s32.totalorder %s4513_s30, %s4506_s20 }
  0xf0   : > { %p4510_p3 = pneg %p4509_p8  ;;  %p4516_p6 = por %p4515_p0, %p4514_p11 }
  0xf2   : > { %p4517_p5 = pnand %p4516_p6, %p4510_p3 }
  0xf4   : > { %4520 = shalt.err (!%p4517_p5)
}
  0xf5   : > { %4067 = dma.hbm_to_vmem [thread:$0]  (!%p5968_p12), %s5154_s4, 256, %s5182_s17, %s4986_s28, %s4763_s27, %s4763_s27, %s4764_s15  }
  0xf6   : > { %s609_s21 = scalar_lea.vmem [#allocation14], %s4938_s16  ;;  %s5969_s22 = sshll.u32 %s4753_s29, 4 }
  0xf7   : > { %s616_s2 = sshll.u32 %s609_s21, 4  ;;  %s5223_s0 = scalar_lea.hbm %s5906_s10, %s5969_s22  ;;  %s5216_s2 = int_to_ptr.vmem [resolvable:$true] %s616_s2 }
  0xf8   : > { %s4521_s20 = scalar_lea.hbm %s5188_s23, 256  ;;  %s4526_s30 = scalar_lea.hbm %s5905_s9, 512 }
  0xf9   : > { %p4522_p13 = scmp.ne.s32.totalorder %s5188_s23, %s4521_s20  ;;  %p4527_p9 = scmp.lt.u32.totalorder %s5188_s23, %s5905_s9 }
  0xfa   : > { %p4528_p1 = scmp.lt.u32.totalorder %s4526_s30, %s4521_s20  ;;  %p4530_p8 = scmp.lt.u32.totalorder %s4521_s20, %s5188_s23 }
  0xfb   : > { %p4524_p4 = pnand %p4522_p13, %p4992_p10 }
  0xfc   : > { %p4529_p2 = por %p4528_p1, %p4527_p9 }
  0xfd   : > { %p4525_p7 = pneg %p4524_p4 }
  0xfe   : > { %p4531_p3 = por %p4530_p8, %p4529_p2 }
 0x100   : > { %p4532_p11 = pnand %p4531_p3, %p4525_p7 }
 0x102   : > { %4535 = shalt.err (!%p4532_p11)
}
 0x103   : > { %s4536_s21 = scalar_lea.vmem %s5216_s2, 256  ;;  %s4771_s22 = smov [#allocation14]  }
 0x104   : > { %p4537_p0 = scmp.ne.s32.totalorder %s5216_s2, %s4536_s21  ;;  %s4541_s3 = sshll.u32 %s4771_s22, 4  ;;  %s4542_s3 = int_to_ptr.vmem [resolvable:$false] %s4541_s3 }
 0x105   : > { %s4543_s14 = scalar_lea.vmem %s4542_s3, 512  ;;  %p4544_p13 = scmp.lt.s32.totalorder %s5216_s2, %s4542_s3 }
 0x106   : > { %p4539_p6 = pnand %p4537_p0, %p4992_p10  ;;  %p4545_p4 = scmp.lt.s32.totalorder %s4543_s14, %s4536_s21 }
 0x108   : > { %p4540_p5 = pneg %p4539_p6  ;;  %p4546_p9 = por %p4545_p4, %p4544_p13 }
 0x10a   : > { %p4547_p1 = pnand %p4546_p9, %p4540_p5 }
 0x10c   : > { %4550 = shalt.err (!%p4547_p1)
}
 0x10d   : > { %4070 = dma.hbm_to_vmem [thread:$0]  (!%p5968_p12), %s5188_s23, 256, %s5216_s2, %s4986_s28, %s4763_s27, %s4763_s27, %s4764_s15  }
 0x10e   : > { %s629_s20 = scalar_lea.vmem [#allocation15], %s4935_s25  ;;  %s3587_s26 = sshll.u32 %s4935_s25, 5 }
 0x10f   : > { %s636_s1 = sshll.u32 %s629_s20, 4  ;;  %s4551_s30 = scalar_lea.hbm %s5223_s0, 16  ;;  %s637_s1 = int_to_ptr.vmem [resolvable:$true] %s636_s1 }
 0x110   : > { %p4552_p7 = scmp.ne.s32.totalorder %s5223_s0, %s4551_s30  ;;  %s4556_s21 = scalar_lea.hbm %s5906_s10, 32 }
 0x111   : > { %p4557_p3 = scmp.lt.u32.totalorder %s5223_s0, %s5906_s10  ;;  %p4558_p11 = scmp.lt.u32.totalorder %s4556_s21, %s4551_s30 }
 0x112   : > { %p4554_p2 = pnand %p4552_p7, %p4992_p10  ;;  %p4560_p6 = scmp.lt.u32.totalorder %s4551_s30, %s5223_s0 }
 0x113   : > { %p4559_p0 = por %p4558_p11, %p4557_p3 }
 0x114   : > { %p4555_p8 = pneg %p4554_p2 }
 0x115   : > { %p4561_p5 = por %p4560_p6, %p4559_p0 }
 0x117   : > { %p4562_p13 = pnand %p4561_p5, %p4555_p8 }
 0x119   : > { %4565 = shalt.err (!%p4562_p13)
}
 0x11a   : > { %s4566_s23 = scalar_lea.vmem %s637_s1, 16  ;;  %s4772_s2 = smov [#allocation15]  }
 0x11b   : > { %p4567_p4 = scmp.ne.s32.totalorder %s637_s1, %s4566_s23  ;;  %s4571_s14 = sshll.u32 %s4772_s2, 4  ;;  %s4572_s14 = int_to_ptr.vmem [resolvable:$false] %s4571_s14 }
 0x11c   : > { %s4573_s20 = scalar_lea.vmem %s4572_s14, 32  ;;  %p4574_p7 = scmp.lt.s32.totalorder %s637_s1, %s4572_s14 }
 0x11d   : > { %p4569_p9 = pnand %p4567_p4, %p4992_p10  ;;  %p4575_p2 = scmp.lt.s32.totalorder %s4573_s20, %s4566_s23 }
 0x11f   : > { %p4570_p1 = pneg %p4569_p9  ;;  %p4576_p12 = por %p4575_p2, %p4574_p7 }
 0x121   : > { %p4577_p3 = pnand %p4576_p12, %p4570_p1 }
 0x123   : > { %4580 = shalt.err (!%p4577_p3)
}
 0x124   : > { %p5970_p11 = scmp.ne.s32.totalorder %s5962_s19, 0  ;;  %s3675_s30 = sshll.u32 %s4753_s29, 9 }
 0x125   : > { %s647_s4 = scalar_lea.vmem [#allocation16], %s3587_s26  ;;  %s5276_s3 = scalar_lea.hbm %s5907_s11, %s3675_s30 }
 0x126   : > { %4073 = dma.hbm_to_vmem [thread:$0]  (!%p5970_p11), %s5223_s0, 16, %s637_s1, %s4986_s28  }
 0x127   : > { %s654_s17 = sshll.u32 %s647_s4, 4  ;;  %s4581_s23 = scalar_lea.hbm %s5276_s3, 512  ;;  %s5278_s17 = int_to_ptr.vmem [resolvable:$true] %s654_s17 }
 0x128   : > { %p4582_p12 = scmp.ne.s32.totalorder %s5276_s3, %s4581_s23  ;;  %s4586_s1 = scalar_lea.hbm %s5907_s11, 1024 }
 0x129   : > { %p4587_p6 = scmp.lt.u32.totalorder %s5276_s3, %s5907_s11  ;;  %p4588_p5 = scmp.lt.u32.totalorder %s4586_s1, %s4581_s23 }
 0x12a   : > { %p4584_p8 = pnand %p4582_p12, %p4992_p10  ;;  %p4590_p4 = scmp.lt.u32.totalorder %s4581_s23, %s5276_s3 }
 0x12b   : > { %p4589_p13 = por %p4588_p5, %p4587_p6 }
 0x12c   : > { %p4585_p0 = pneg %p4584_p8 }
 0x12d   : > { %p4591_p9 = por %p4590_p4, %p4589_p13 }
 0x12f   : > { %p4592_p1 = pnand %p4591_p9, %p4585_p0 }
 0x131   : > { %4595 = shalt.err (!%p4592_p1)
}
 0x132   : > { %s4596_s14 = scalar_lea.vmem %s5278_s17, 512  ;;  %s4773_s20 = smov [#allocation16]  }
 0x133   : > { %p4597_p7 = scmp.ne.s32.totalorder %s5278_s17, %s4596_s14  ;;  %s4601_s30 = sshll.u32 %s4773_s20, 4  ;;  %s4602_s30 = int_to_ptr.vmem [resolvable:$false] %s4601_s30 }
 0x134   : > { %s4603_s4 = scalar_lea.vmem %s4602_s30, 1024  ;;  %p4604_p12 = scmp.lt.s32.totalorder %s5278_s17, %s4602_s30 }
 0x135   : > { %p4599_p2 = pnand %p4597_p7, %p4992_p10  ;;  %p4605_p8 = scmp.lt.s32.totalorder %s4603_s4, %s4596_s14 }
 0x137   : > { %p4600_p3 = pneg %p4599_p2  ;;  %p4606_p6 = por %p4605_p8, %p4604_p12 }
 0x139   : > { %p4607_p5 = pnand %p4606_p6, %p4600_p3 }
 0x13b   : > { %4610 = shalt.err (!%p4607_p5)
}
 0x13c   : > { %4076 = dma.hbm_to_vmem [thread:$0]  (!%p5970_p11), %s5276_s3, 512, %s5278_s17, %s4986_s28, %s4763_s27, %s4763_s27, %s4764_s15  }
 0x13d   : > { %s4774_s21 = smov [#allocation5]   ;;  %s5309_s25 = scalar_lea.hbm %s5908_s12, %s4975_s18 }
 0x13e   : > { %s442_s22 = sshll.u32 %s4774_s21, 4  ;;  %s668_s1 = scalar_lea.vmem [#allocation17], %s4938_s16  ;;  %s443_s22 = int_to_ptr.vmem [resolvable:$true] %s442_s22 }
 0x13f   : > { %s675_s26 = sshll.u32 %s668_s1, 4  ;;  %s5971_s20 = sld [smem:[#allocation33_spill]]  ;;  %s5335_s26 = int_to_ptr.vmem [resolvable:$true] %s675_s26 }
 0x140   : > { %p5972_p13 = scmp.ne.s32.totalorder %s5958_s24, 0 }
 0x142   : > { %p5973_p4 = pneg %p5972_p13 }
 0x145   : > { %s4611_s30 = scalar_lea.hbm %s5971_s20, 256 }
 0x146   : > { %p4612_p0 = scmp.ne.s32.totalorder %s5971_s20, %s4611_s30  ;;  %p4618_p7 = scmp.lt.u32.totalorder %s4611_s30, %s5971_s20 }
 0x148   : > { %p4614_p9 = pnand %p4612_p0, %p5973_p4 }
 0x14a   : > { %p4615_p1 = pneg %p4614_p9 }
 0x14c   : > { %p4620_p2 = pnand %p4618_p7, %p4615_p1 }
 0x14e   : > { %4623 = shalt.err (!%p4620_p2)
}
 0x14f   : > { %s4624_s16 = scalar_lea.vmem %s443_s22, 256  ;;  %p5974_p12 = pmov %p5973_p4 }
 0x150   : > { %p4625_p3 = scmp.ne.s32.totalorder %s443_s22, %s4624_s16  ;;  %p4632_p5 = scmp.lt.s32.totalorder %s443_s22, %s443_s22 }
 0x151   : > { %p4633_p11 = scmp.lt.s32.totalorder %s4624_s16, %s4624_s16 }
 0x152   : > { %p4627_p8 = pnand %p4625_p3, %p5974_p12 }
 0x153   : > { %p4634_p10 = por %p4633_p11, %p4632_p5 }
 0x154   : > { %p4628_p6 = pneg %p4627_p8 }
 0x156   : > { %p4635_p0 = pnand %p4634_p10, %p4628_p6 }
 0x158   : > { %4638 = shalt.err (!%p4635_p0)
}
 0x159   : > { %s5975_s5 = smov 8   ;;  %s5976_s18 = smov 128  }
 0x15a   : > { %4045 = dma.hbm_to_vmem [thread:$0]  (!%p5972_p13), %s5971_s20, 256, %s443_s22, [#allocation6], %s5976_s18, %s5976_s18, %s5975_s5  }
 0x15b   : > { %s4639_s21 = scalar_lea.hbm %s5309_s25, 256  ;;  %p5977_p10 = scmp.ne.s32.totalorder %s5964_s13, 0 }
 0x15c   : > { %p4640_p11 = scmp.ne.s32.totalorder %s5309_s25, %s4639_s21  ;;  %s4644_s0 = scalar_lea.hbm %s5908_s12, 512 }
 0x15d   : > { %p4645_p1 = scmp.lt.u32.totalorder %s5309_s25, %s5908_s12  ;;  %p4646_p7 = scmp.lt.u32.totalorder %s4644_s0, %s4639_s21 }
 0x15e   : > { %p4642_p4 = pnand %p4640_p11, %p5977_p10  ;;  %p4648_p3 = scmp.lt.u32.totalorder %s4639_s21, %s5309_s25 }
 0x15f   : > { %p4647_p2 = por %p4646_p7, %p4645_p1 }
 0x160   : > { %p4643_p9 = pneg %p4642_p4 }
 0x161   : > { %p4649_p12 = por %p4648_p3, %p4647_p2 }
 0x163   : > { %p4650_p13 = pnand %p4649_p12, %p4643_p9 }
 0x165   : > { %4653 = shalt.err (!%p4650_p13)
}
 0x166   : > { %s4654_s22 = scalar_lea.vmem %s5335_s26, 256  ;;  %s4775_s14 = smov [#allocation17]  }
 0x167   : > { %p4655_p8 = scmp.ne.s32.totalorder %s5335_s26, %s4654_s22  ;;  %s4659_s30 = sshll.u32 %s4775_s14, 4  ;;  %s4660_s30 = int_to_ptr.vmem [resolvable:$false] %s4659_s30 }
 0x168   : > { %s4661_s4 = scalar_lea.vmem %s4660_s30, 512  ;;  %p4662_p0 = scmp.lt.s32.totalorder %s5335_s26, %s4660_s30 }
 0x169   : > { %p4657_p6 = pnand %p4655_p8, %p5977_p10  ;;  %p4663_p11 = scmp.lt.s32.totalorder %s4661_s4, %s4654_s22 }
 0x16b   : > { %p4658_p5 = pneg %p4657_p6  ;;  %p4664_p4 = por %p4663_p11, %p4662_p0 }
 0x16d   : > { %p4665_p1 = pnand %p4664_p4, %p4658_p5 }
 0x16f   : > { %4668 = shalt.err (!%p4665_p1)
}
 0x170   : > { %p5978_p9 = scmp.ne.s32.totalorder %s5962_s19, 0  ;;  %s5979_s13 = sld [smem:[#allocation31_spill]] }
 0x172   : > { %4079 = dma.hbm_to_vmem [thread:$0]  (!%p5978_p9), %s5309_s25, 256, %s5335_s26, %s4986_s28, %s5976_s18, %s5976_s18, %s5975_s5  }
 0x176   : > { %p5980_p10 = scmp.ne.s32.totalorder %s5979_s13, 0 }
 0x177   : > { %s5981_s27 = sld [smem:[#allocation27_spill]] (!%p5980_p10) }
 0x178   : > { %687 = sbr.rel (%p5980_p10) target bundleno = 7777 (0x1e61), region = 72 }
 0x17d   : > { %p5982_p7 = scmp.eq.s32.totalorder (!%p5980_p10), %s5981_s27, 0 }
 0x17f   : > { %4720 = dma.done.wait (%p5982_p7), [#allocation3], 256   ;;  %p5983_p2 = pmov %p5982_p7 }
 0x181   : > { %4722 = vsyncadd (%p5983_p2), [#allocation3], 4294967040  ;;  %p5984_p3 = pmov %p5983_p2 }
 0x182   : > { %p5985_p12 = pmov %p5983_p2 }
 0x183   : > { %4724 = dma.done.wait (%p5984_p3), [#allocation6], 256  }
 0x184   : > { %4726 = vsyncadd (%p5985_p12), [#allocation6], 4294967040  ;;  %s5986_s19 = sld [smem:[#allocation23_spill]]  ;;  %s5987_s15 = sld [smem:[#allocation29_spill]] }
 0x185   : > { %s697_s16 = sand.u32 1, %s5981_s27  }
 0x186   : > { %s698_s26 = scalar_lea.sflag [#allocation3], %s697_s16 }
 0x18a   : > { %s5374_s28 = sand.u32 1, %s5986_s19   ;;  %p5988_p13 = scmp.ne.s32.totalorder %s5987_s15, 0 }
 0x18b   : > { %s5377_s25 = sshll.u32 %s5374_s28, 4 }
 0x18c   : > { %s701_s5 = scalar_lea.vmem [#allocation7], %s5377_s25 }
 0x18d   : > { %4728 = dma.done.wait (%p5988_p13), %s698_s26, 2592  }
 0x18e   : > { %4730 = vsyncadd (%p5988_p13), %s698_s26, 4294964704  ;;  %s3603_s18 = sshll.u32 %s5374_s28, 5  ;;  %s710_s17 = scalar_lea.vmem [#allocation8], %s5377_s25 }
 0x18f   : > { %s719_s3 = scalar_lea.vmem [#allocation9], %s5377_s25  ;;  %s727_s21 = scalar_lea.vmem [#allocation10], %s5374_s28 }
 0x190   : > { %s736_s24 = scalar_lea.vmem [#allocation11], %s5377_s25  ;;  %s745_s23 = scalar_lea.vmem [#allocation12], %s5377_s25 }
 0x191   : > { %s754_s0 = scalar_lea.vmem [#allocation13], %s5377_s25  ;;  %s763_s1 = scalar_lea.vmem [#allocation14], %s5377_s25 }
 0x192   : > { %s771_s2 = scalar_lea.vmem [#allocation15], %s5374_s28  ;;  %s5393_s22 = scalar_lea.vmem [#allocation16], %s3603_s18 }
 0x193   : > { %s789_s14 = scalar_lea.vmem [#allocation17], %s5377_s25  ;;  %s5989_s30 = sld [smem:[#allocation25_spill]] }
 0x199   : > { %p3605_p8 = scmp.ne.s32.totalorder %s5989_s30, 0 }
 0x19a   : > { %v885_v0 = vld [vmem:[#allocation2] sm:$0xff] (!%p3605_p8)  ;;  %vm887_vm0 = vcmask (!%p3605_p8), 261120   ;;  %v886_v1 = vld [vmem:[#allocation2 + $0x8] sm:$0xff] (!%p3605_p8) }
 0x19b   : > { %884 = sbr.rel (%p3605_p8) target bundleno = 418 (0x1a2), region = 128  ;;  %888 = vst.msk [vmem:[#allocation18] sm:$0xff] (!%p3605_p8), %vm887_vm0, %v885_v0  ;;  %889 = vst.msk [vmem:[#allocation18 + $0x8] sm:$0xff] (!%p3605_p8), %vm887_vm0, %v886_v1 }
 0x1a2 PF: > { %v4189_v2 = vld [vmem:[%s719_s3] sm:$0xff]   ;;  %v4776_v3 = vmov 0.0   ;;  %v4190_v4 = vld [vmem:[%s719_s3 + $0x8] sm:$0xff]   ;;  %vm4777_vm1 = vmmov 0   ;;  %vm920_vm2 = vcmask 261120   ;;  %s4778_s4 = smov 96  }
 0x1a3   : > { %3761 = vmatprep.subr.bf16.mxu0 %v4776_v3  ;;  %3769 = vmatprep.subr.bf16.mxu1 %v4776_v3  ;;  %v5401_v5 = vld [vmem:[#allocation18] sm:$0xff]  ;;  %v5403_v6 = vld [vmem:[#allocation18 + $0x8] sm:$0xff]  ;;  %v3606_v8 = vld [vmem:[%s727_s21] ss:$0 sm:$0xff]  ;;  %vm974_vm3 = vcmask 64512   ;;  %s4779_s13 = smov 64  }
 0x1a4   : > { %3762 = vmatpush3.bf16.msra.mxu0 %v4189_v2  ;;  %3765 = vmatprep.mubr.msk.bf16.mxu0 %vm4777_vm1, %v4776_v3  ;;  %v900_v7 = vpack.c.bf16 %v5403_v6, %v5401_v5  ;;  %v5434_v21 = vld [vmem:[#allocation5] sm:$0xff]  ;;  %v5437_v26 = vld [vmem:[#allocation5 + $0x8] sm:$0xff]  ;;  %s4780_s27 = smov 88   ;;  %vm1099_vm4 = vcmask 1043456   ;;  %s4781_s19 = smov 120   ;;  %vm1877_vm5 = vcmask 130048  }
 0x1a5   : > { %3763 = vmatprep.subr.bf16.mxu0 %v4776_v3  ;;  %3771 = vmatprep.mubr.msk.bf16.mxu1 %vm4777_vm1, %v4776_v3  ;;  %s4782_s15 = smov 56   ;;  %s4783_s16 = smov 80   ;;  %vm1880_vm6 = vcmask 195584   ;;  %vm3176_vm7 = vcmask 523264  }
 0x1a6   : > { %s4784_s26 = smov 112   ;;  %s4785_s18 = smov 48  }
 0x1a7   : > { %s4786_s3 = smov 72   ;;  %s4787_s21 = smov 104  }
 0x1a8   : > { %3764 = vmatpush3.bf16.msra.mxu0 %v4190_v4  ;;  %s4788_s30 = smov 40   ;;  %s5990_s28 = sld [smem:[#allocation27_spill]] }
 0x1a9   : > { %3775 = vmatprep.subr.bf16.mxu0 %v4776_v3 }
 0x1ab   : > { %3766 = vmatmul.mubr.msk.bf16.vlgmr.msra.gmra.mrb[0].mxu0 %vm920_vm2, %v900_v7 }
 0x1ac   : > { %3777 = vmatprep.mubr.msk.bf16.mxu0 %vm4777_vm1, %v4776_v3 }
 0x1ae   : > { %p4085_p6 = scmp.eq.s32.totalorder %s5990_s28, 1 }
 0x27e   : > { %v958_v9 = vpop.f32.mrb[0].mxu0 }
 0x27f   : > { %v959_v10 = vadd.f32 %v3606_v8, %v958_v9  ;;  %v3767_v11 = vpop.f32.mrb[1].mxu0 }
 0x280   : > { %v961_v12 = vpop.f32.mrb[2].mxu0 }
 0x281   : > { %v5416_v13 = vpack.c.bf16 %v959_v10, %v959_v10  ;;  %v962_v14 = vadd.f32 %v3606_v8, %v961_v12  ;;  %v3768_v15 = vpop.f32.mrb[3].mxu0 }
 0x283   : > { %972 = vrot.lane.b32.xlu0 %v5416_v13, %s4778_s4  ;;  %v5419_v16 = vpack.c.bf16 %v962_v14, %v962_v14 }
 0x287   : > { %1022 = vrot.lane.b32.xlu0 %v5419_v16, %s4778_s4  ;;  %s4789_s4 = smov 8  }
 0x2f5   : > { %v973_v17 = vpop.permute.xlu0 %972 }
 0x2f6   : > { %v979_v18 = vsel %vm974_vm3, %v973_v17, 0 }
 0x2f7   : > { %3770 = vmatpush3.bf16.xpose.msra.mxu1 %v979_v18 }
 0x2f8   : > { %3781 = vmatprep.subr.bf16.mxu1 %v4776_v3 }
 0x2f9   : > { %v1023_v19 = vpop.permute.xlu0 %1022 }
 0x2fa   : > { %v1028_v20 = vsel %vm974_vm3, %v1023_v19, 0 }
 0x2fb   : > { %3776 = vmatpush3.bf16.xpose.msra.mxu0 %v1028_v20 }
 0x2fc   : > { %3787 = vmatprep.subr.bf16.mxu0 %v4776_v3 }
 0x2fe   : > { %3772 = vmatmul.mubr.msk.bf16.vlgmr.msra.gmra.mrb[0].mxu1 %vm974_vm3, %v5416_v13 }
 0x2ff   : > { %3783 = vmatprep.mubr.msk.bf16.mxu1 %vm4777_vm1, %v4776_v3 }
 0x302   : > { %3778 = vmatmul.mubr.msk.bf16.vlgmr.msra.gmra.mrb[4].mxu0 %vm974_vm3, %v5419_v16 }
 0x303   : > { %3789 = vmatprep.mubr.msk.bf16.mxu0 %vm4777_vm1, %v4776_v3 }
 0x3d1   : > { %v1015_v22 = vpop.f32.mrb[0].mxu1 }
 0x3d2   : > { %v1016_v23 = vadd.f32 %v1015_v22, %v5434_v21  ;;  %v3773_v24 = vpop.f32.mrb[1].mxu1 }
 0x3d3   : > { %v1018_v25 = vpop.f32.mrb[2].mxu1 }
 0x3d4   : > { %v3774_v27 = vpop.f32.mrb[3].mxu1  ;;  %v1070_v28 = vsel %vm974_vm3, %v1016_v23, -inf }
 0x3d5   : > { %1071 = vmax.xlane.f32.xlu1 %v1070_v28  ;;  %v1064_v29 = vpop.f32.mrb[4].mxu0 }
 0x3d6   : > { %v1065_v30 = vadd.f32 %v1064_v29, %v5437_v26  ;;  %v3779_v31 = vpop.f32.mrb[5].mxu0 }
 0x3d7   : > { %v1067_v32 = vpop.f32.mrb[6].mxu0 }
 0x3d8   : > { %v3780_v33 = vpop.f32.mrb[7].mxu0  ;;  %v1073_v34 = vsel %vm974_vm3, %v1065_v30, -inf }
 0x3d9   : > { %1074 = vmax.xlane.f32.xlu1 %v1073_v34 }
 0x3ea   : > { %1094 = vrot.lane.b32.xlu1 %v5416_v13, %s4779_s13 }
 0x3ee   : > { %1143 = vrot.lane.b32.xlu1 %v5419_v16, %s4779_s13  ;;  %s4790_s13 = smov 16  }
 0x3f2   : > { %1193 = vrot.lane.b32.xlu1 %v5416_v13, %s4780_s27 }
 0x462   : > { %v1072_v35 = vpop.xlane.xlu1 %1071 }
 0x463   : > { %v1076_v36 = vsub.f32 %v1016_v23, %v1072_v35 }
 0x465   : > { %v1078_v37 = vmul.f32 1.442695, %v1076_v36 }
 0x466   : > { %v1075_v38 = vpop.xlane.xlu1 %1074 }
 0x467   : > { %4207 = vpow2.f32 %v1078_v37  ;;  %v1077_v39 = vsub.f32 %v1065_v30, %v1075_v38 }
 0x469   : > { %v1080_v40 = vmul.f32 1.442695, %v1077_v39 }
 0x46a   : > { %v1095_v41 = vpop.permute.xlu1 %1094 }
 0x46b   : > { %4209 = vpow2.f32 %v1080_v40  ;;  %v1101_v42 = vsel %vm1099_vm4, %v1095_v41, 0 }
 0x46c   : > { %3782 = vmatpush3.bf16.msra.mxu1 %v1101_v42 }
 0x46d   : > { %3793 = vmatprep.subr.bf16.mxu1 %v4776_v3 }
 0x46e   : > { %v1144_v43 = vpop.permute.xlu1 %1143 }
 0x46f   : > { %v1149_v44 = vsel %vm1099_vm4, %v1144_v43, 0 }
 0x470   : > { %3788 = vmatpush3.bf16.msra.mxu0 %v1149_v44 }
 0x471   : > { %v4208_v45 = vpop.eup %4207  ;;  %3799 = vmatprep.subr.bf16.mxu0 %v4776_v3 }
 0x472   : > { %v1082_v46 = vsel %vm974_vm3, %v4208_v45, 0.0  ;;  %v1194_v49 = vpop.permute.xlu1 %1193 }
 0x473   : > { %1083 = vadd.xlane.f32.xlu0 %v1082_v46  ;;  %v1199_v56 = vsel %vm974_vm3, %v1194_v49, 0 }
 0x475   : > { %v4210_v47 = vpop.eup %4209 }
 0x476   : > { %v1085_v48 = vsel %vm974_vm3, %v4210_v47, 0.0 }
 0x477   : > { %1086 = vadd.xlane.f32.xlu1 %v1085_v48 }
 0x488   : > { %1243 = vrot.lane.b32.xlu1 %v5419_v16, %s4780_s27  ;;  %s4791_s27 = smov 24  }
 0x489   : > { %1191 = vrot.lane.b32.xlu0 %v5416_v13, %s4781_s19 }
 0x48c   : > { %1241 = vrot.lane.b32.xlu1 %v5419_v16, %s4781_s19 }
 0x500   : > { %v1084_v50 = vpop.xlane.xlu0 %1083 }
 0x501   : > { %4211 = vrcp.f32 %v1084_v50 }
 0x504   : > { %v1087_v51 = vpop.xlane.xlu1 %1086  ;;  %v1192_v61 = vpop.permute.xlu0 %1191 }
 0x505   : > { %4213 = vrcp.f32 %v1087_v51 }
 0x508   : > { %v1244_v58 = vpop.permute.xlu1 %1243 }
 0x509   : > { %v1249_v60 = vsel %vm974_vm3, %v1244_v58, 0 }
 0x50b   : > { %v4212_v52 = vpop.eup %4211 }
 0x50c   : > { %v1090_v53 = vmul.f32 %v4212_v52, %v4208_v45  ;;  %v1242_v62 = vpop.permute.xlu1 %1241 }
 0x50e   : > { %v1092_v54 = vpack.c.bf16 %v1090_v53, %v1090_v53 }
 0x50f   : > { %v4214_v55 = vpop.eup %4213 }
 0x510   : > { %v1091_v57 = vmul.f32 %v4214_v55, %v4210_v47  ;;  %3784 = vmatmul.mubr.msk.bf16.vlgmr.msra.gmra.mrb[4].mxu1 %vm974_vm3, %v1092_v54 }
 0x511   : > { %3794 = vmatpush3.bf16.xpose.msra.mxu1 %v1199_v56  ;;  %3795 = vmatprep.mubr.msk.bf16.mxu1 %vm4777_vm1, %v4776_v3 }
 0x512   : > { %v1093_v59 = vpack.c.bf16 %v1091_v57, %v1091_v57  ;;  %3805 = vmatprep.subr.bf16.mxu1 %v4776_v3 }
 0x514   : > { %3790 = vmatmul.mubr.msk.bf16.vlgmr.msra.gmra.mrb[8].mxu0 %vm974_vm3, %v1093_v59 }
 0x515   : > { %3800 = vmatpush3.bf16.xpose.msra.mxu0 %v1249_v60  ;;  %3801 = vmatprep.mubr.msk.bf16.mxu0 %vm4777_vm1, %v4776_v3 }
 0x516   : > { %3811 = vmatprep.subr.bf16.mxu0 %v4776_v3 }
 0x518   : > { %3796 = vmatmul.mubr.msk.bf16.vlgmr.msra.gmra.mrb[8].mxu1 %vm974_vm3, %v1192_v61 }
 0x519   : > { %3807 = vmatprep.mubr.msk.bf16.mxu1 %vm4777_vm1, %v4776_v3 }
 0x51c   : > { %3802 = vmatmul.mubr.msk.bf16.vlgmr.msra.gmra.mrb[12].mxu0 %vm974_vm3, %v1242_v62 }
 0x51d   : > { %3813 = vmatprep.mubr.msk.bf16.mxu0 %vm4777_vm1, %v4776_v3 }
 0x5e3   : > { %v5472_v63 = vpop.f32.mrb[4].mxu1 }
 0x5e4   : > { %v3785_v0 = vpop.f32.mrb[5].mxu1 }
 0x5e5   : > { %v1140_v1 = vpop.f32.mrb[6].mxu1 }
 0x5e6   : > { %v3786_v2 = vpop.f32.mrb[7].mxu1 }
 0x5e7   : > { %v5474_v4 = vpop.f32.mrb[8].mxu0 }
 0x5e8   : > { %v3791_v7 = vpop.f32.mrb[9].mxu0 }
 0x5e9   : > { %v1188_v8 = vpop.f32.mrb[10].mxu0 }
 0x5ea   : > { %v3792_v9 = vpop.f32.mrb[11].mxu0 }
 0x5eb   : > { %v1235_v10 = vpop.f32.mrb[8].mxu1 }
 0x5ec   : > { %v1236_v11 = vadd.f32 %v1235_v10, %v5434_v21  ;;  %v3797_v12 = vpop.f32.mrb[9].mxu1 }
 0x5ed   : > { %v1238_v14 = vpop.f32.mrb[10].mxu1 }
 0x5ee   : > { %v3798_v15 = vpop.f32.mrb[11].mxu1  ;;  %v1291_v17 = vsel %vm974_vm3, %v1236_v11, -inf }
 0x5ef   : > { %1292 = vmax.xlane.f32.xlu1 %v1291_v17  ;;  %v1285_v18 = vpop.f32.mrb[12].mxu0 }
 0x5f0   : > { %v1286_v19 = vadd.f32 %v1285_v18, %v5437_v26  ;;  %v3803_v20 = vpop.f32.mrb[13].mxu0 }
 0x5f1   : > { %v1288_v22 = vpop.f32.mrb[14].mxu0 }
 0x5f2   : > { %v3804_v23 = vpop.f32.mrb[15].mxu0  ;;  %v1294_v24 = vsel %vm974_vm3, %v1286_v19, -inf }
 0x5f3   : > { %1295 = vmax.xlane.f32.xlu0 %v1294_v24 }
 0x600   : > { %1315 = vrot.lane.b32.xlu1 %v5416_v13, %s4782_s15 }
 0x604   : > { %1413 = vrot.lane.b32.xlu1 %v5416_v13, %s4783_s16 }
 0x609   : > { %1363 = vrot.lane.b32.xlu0 %v5419_v16, %s4782_s15 }
 0x60d   : > { %1411 = vrot.lane.b32.xlu0 %v5416_v13, %s4784_s26 }
 0x67c   : > { %v1293_v25 = vpop.xlane.xlu1 %1292 }
 0x67d   : > { %v1297_v27 = vsub.f32 %v1236_v11, %v1293_v25 }
 0x67f   : > { %v1299_v28 = vmul.f32 1.442695, %v1297_v27 }
 0x680   : > { %v1316_v29 = vpop.permute.xlu1 %1315  ;;  %v1296_v30 = vpop.xlane.xlu0 %1295 }
 0x681   : > { %4215 = vpow2.f32 %v1299_v28  ;;  %v1321_v31 = vsel %vm1099_vm4, %v1316_v29, 0  ;;  %v1298_v32 = vsub.f32 %v1286_v19, %v1296_v30 }
 0x682   : > { %3806 = vmatpush3.bf16.msra.mxu1 %v1321_v31 }
 0x683   : > { %v1301_v33 = vmul.f32 1.442695, %v1298_v32  ;;  %3817 = vmatprep.subr.bf16.mxu1 %v4776_v3 }
 0x684   : > { %v1364_v34 = vpop.permute.xlu0 %1363  ;;  %v1414_v40 = vpop.permute.xlu1 %1413 }
 0x685   : > { %4217 = vpow2.f32 %v1301_v33  ;;  %v1369_v35 = vsel %vm1099_vm4, %v1364_v34, 0  ;;  %v1419_v47 = vsel %vm974_vm3, %v1414_v40, 0 }
 0x686   : > { %3812 = vmatpush3.bf16.msra.mxu0 %v1369_v35 }
 0x687   : > { %3823 = vmatprep.subr.bf16.mxu0 %v4776_v3 }
 0x688   : > { %v1412_v52 = vpop.permute.xlu0 %1411 }
 0x68b   : > { %v4216_v36 = vpop.eup %4215 }
 0x68c   : > { %v1303_v37 = vsel %vm974_vm3, %v4216_v36, 0.0 }
 0x68d   : > { %1304 = vadd.xlane.f32.xlu1 %v1303_v37 }
 0x68f   : > { %v4218_v38 = vpop.eup %4217 }
 0x690   : > { %v1306_v39 = vsel %vm974_vm3, %v4218_v38, 0.0 }
 0x691   : > { %1307 = vadd.xlane.f32.xlu1 %v1306_v39 }
 0x6a2   : > { %1463 = vrot.lane.b32.xlu1 %v5419_v16, %s4783_s16 }
 0x6a6   : > { %1461 = vrot.lane.b32.xlu1 %v5419_v16, %s4784_s26 }
 0x71a   : > { %v1305_v41 = vpop.xlane.xlu1 %1304 }
 0x71b   : > { %4219 = vrcp.f32 %v1305_v41 }
 0x71e   : > { %v1308_v42 = vpop.xlane.xlu1 %1307 }
 0x71f   : > { %4221 = vrcp.f32 %v1308_v42 }
 0x722   : > { %v1464_v49 = vpop.permute.xlu1 %1463 }
 0x723   : > { %v1469_v51 = vsel %vm974_vm3, %v1464_v49, 0 }
 0x725   : > { %v4220_v43 = vpop.eup %4219 }
 0x726   : > { %v1311_v44 = vmul.f32 %v4220_v43, %v4216_v36  ;;  %v1462_v53 = vpop.permute.xlu1 %1461 }
 0x728   : > { %v1313_v45 = vpack.c.bf16 %v1311_v44, %v1311_v44 }
 0x729   : > { %v4222_v46 = vpop.eup %4221 }
 0x72a   : > { %v1312_v48 = vmul.f32 %v4222_v46, %v4218_v38  ;;  %3808 = vmatmul.mubr.msk.bf16.vlgmr.msra.gmra.mrb[12].mxu1 %vm974_vm3, %v1313_v45 }
 0x72b   : > { %3818 = vmatpush3.bf16.xpose.msra.mxu1 %v1419_v47  ;;  %3819 = vmatprep.mubr.msk.bf16.mxu1 %vm4777_vm1, %v4776_v3 }
 0x72c   : > { %v1314_v50 = vpack.c.bf16 %v1312_v48, %v1312_v48  ;;  %3829 = vmatprep.subr.bf16.mxu1 %v4776_v3 }
 0x72e   : > { %3814 = vmatmul.mubr.msk.bf16.vlgmr.msra.gmra.mrb[16].mxu0 %vm974_vm3, %v1314_v50 }
 0x72f   : > { %3824 = vmatpush3.bf16.xpose.msra.mxu0 %v1469_v51  ;;  %3825 = vmatprep.mubr.msk.bf16.mxu0 %vm4777_vm1, %v4776_v3 }
 0x730   : > { %3835 = vmatprep.subr.bf16.mxu0 %v4776_v3 }
 0x732   : > { %3820 = vmatmul.mubr.msk.bf16.vlgmr.msra.gmra.mrb[16].mxu1 %vm974_vm3, %v1412_v52 }
 0x733   : > { %3831 = vmatprep.mubr.msk.bf16.mxu1 %vm4777_vm1, %v4776_v3 }
 0x736   : > { %3826 = vmatmul.mubr.msk.bf16.vlgmr.msra.gmra.mrb[20].mxu0 %vm974_vm3, %v1462_v53 }
 0x737   : > { %3837 = vmatprep.mubr.msk.bf16.mxu0 %vm4777_vm1, %v4776_v3 }
 0x7fd   : > { %v5510_v54 = vpop.f32.mrb[12].mxu1 }
 0x7fe   : > { %v3809_v55 = vpop.f32.mrb[13].mxu1 }
 0x7ff   : > { %v1360_v56 = vpop.f32.mrb[14].mxu1 }
 0x800   : > { %v3810_v57 = vpop.f32.mrb[15].mxu1 }
 0x801   : > { %v5512_v58 = vpop.f32.mrb[16].mxu0 }
 0x802   : > { %v4159_v59 = vpack.i.bf16 %v5512_v58, %v5510_v54  ;;  %v3815_v60 = vpop.f32.mrb[17].mxu0 }
 0x803   : > { %v1408_v61 = vpop.f32.mrb[18].mxu0 }
 0x804   : > { %v3816_v62 = vpop.f32.mrb[19].mxu0 }
 0x805   : > { %v1455_v0 = vpop.f32.mrb[16].mxu1 }
 0x806   : > { %v1456_v1 = vadd.f32 %v1455_v0, %v5434_v21  ;;  %v3821_v2 = vpop.f32.mrb[17].mxu1 }
 0x807   : > { %v1458_v7 = vpop.f32.mrb[18].mxu1 }
 0x808   : > { %v3822_v8 = vpop.f32.mrb[19].mxu1  ;;  %v1511_v9 = vsel %vm974_vm3, %v1456_v1, -inf }
 0x809   : > { %1512 = vmax.xlane.f32.xlu0 %v1511_v9  ;;  %v1505_v10 = vpop.f32.mrb[20].mxu0 }
 0x80a   : > { %v1506_v11 = vadd.f32 %v1505_v10, %v5437_v26  ;;  %v3827_v12 = vpop.f32.mrb[21].mxu0 }
 0x80b   : > { %v1508_v14 = vpop.f32.mrb[22].mxu0 }
 0x80c   : > { %v3828_v15 = vpop.f32.mrb[23].mxu0  ;;  %v1514_v17 = vsel %vm974_vm3, %v1506_v11, -inf }
 0x80d   : > { %1515 = vmax.xlane.f32.xlu1 %v1514_v17 }
 0x81e   : > { %1535 = vrot.lane.b32.xlu1 %v5416_v13, %s4785_s18 }
 0x822   : > { %1633 = vrot.lane.b32.xlu1 %v5416_v13, %s4786_s3 }
 0x826   : > { %1683 = vrot.lane.b32.xlu1 %v5419_v16, %s4786_s3 }
 0x82a   : > { %1681 = vrot.lane.b32.xlu1 %v5419_v16, %s4787_s21 }
 0x896   : > { %v1513_v18 = vpop.xlane.xlu0 %1512 }
 0x897   : > { %v1517_v19 = vsub.f32 %v1456_v1, %v1513_v18 }
 0x899   : > { %v1519_v20 = vmul.f32 1.442695, %v1517_v19 }
 0x89a   : > { %v1516_v22 = vpop.xlane.xlu1 %1515 }
 0x89b   : > { %4223 = vpow2.f32 %v1519_v20  ;;  %v1518_v23 = vsub.f32 %v1506_v11, %v1516_v22 }
 0x89d   : > { %v1521_v24 = vmul.f32 1.442695, %v1518_v23 }
 0x89e   : > { %v1536_v25 = vpop.permute.xlu1 %1535 }
 0x89f   : > { %4225 = vpow2.f32 %v1521_v24  ;;  %v1541_v27 = vsel %vm1099_vm4, %v1536_v25, 0 }
 0x8a0   : > { %3830 = vmatpush3.bf16.msra.mxu1 %v1541_v27 }
 0x8a1   : > { %3841 = vmatprep.subr.bf16.mxu1 %v4776_v3 }
 0x8a2   : > { %v1634_v37 = vpop.permute.xlu1 %1633 }
 0x8a3   : > { %v1639_v41 = vsel %vm974_vm3, %v1634_v37, 0 }
 0x8a5   : > { %v4224_v28 = vpop.eup %4223 }
 0x8a6   : > { %v1523_v29 = vsel %vm974_vm3, %v4224_v28, 0.0  ;;  %v1684_v43 = vpop.permute.xlu1 %1683 }
 0x8a7   : > { %1524 = vadd.xlane.f32.xlu0 %v1523_v29  ;;  %v1689_v45 = vsel %vm974_vm3, %v1684_v43, 0 }
 0x8a9   : > { %v4226_v30 = vpop.eup %4225 }
 0x8aa   : > { %v1526_v31 = vsel %vm974_vm3, %v4226_v30, 0.0  ;;  %v1682_v47 = vpop.permute.xlu1 %1681 }
 0x8ab   : > { %1527 = vadd.xlane.f32.xlu0 %v1526_v31 }
 0x8c1   : > { %1583 = vrot.lane.b32.xlu0 %v5419_v16, %s4785_s18 }
 0x8c5   : > { %1631 = vrot.lane.b32.xlu0 %v5416_v13, %s4787_s21 }
 0x934   : > { %v1525_v32 = vpop.xlane.xlu0 %1524 }
 0x935   : > { %4227 = vrcp.f32 %v1525_v32  ;;  %v4191_v32 = vld [vmem:[%s736_s24] sm:$0xff]  }
 0x938   : > { %v1528_v33 = vpop.xlane.xlu0 %1527 }
 0x939   : > { %4229 = vrcp.f32 %v1528_v33  ;;  %v4192_v33 = vld [vmem:[%s736_s24 + $0x8] sm:$0xff]  }
 0x93c   : > { %v1584_v34 = vpop.permute.xlu0 %1583 }
 0x93d   : > { %v1589_v35 = vsel %vm1099_vm4, %v1584_v34, 0 }
 0x93e   : > { %3836 = vmatpush3.bf16.msra.mxu0 %v1589_v35 }
 0x93f   : > { %v4228_v36 = vpop.eup %4227  ;;  %3847 = vmatprep.subr.bf16.mxu0 %v4776_v3 }
 0x940   : > { %v1531_v38 = vmul.f32 %v4228_v36, %v4224_v28  ;;  %v1632_v46 = vpop.permute.xlu0 %1631 }
 0x942   : > { %v1533_v39 = vpack.c.bf16 %v1531_v38, %v1531_v38 }
 0x943   : > { %v4230_v40 = vpop.eup %4229 }
 0x944   : > { %v1532_v42 = vmul.f32 %v4230_v40, %v4226_v30  ;;  %3832 = vmatmul.mubr.msk.bf16.vlgmr.msra.gmra.mrb[20].mxu1 %vm974_vm3, %v1533_v39 }
 0x945   : > { %3842 = vmatpush3.bf16.xpose.msra.mxu1 %v1639_v41  ;;  %3843 = vmatprep.mubr.msk.bf16.mxu1 %vm4777_vm1, %v4776_v3 }
 0x946   : > { %v1534_v44 = vpack.c.bf16 %v1532_v42, %v1532_v42  ;;  %3853 = vmatprep.subr.bf16.mxu1 %v4776_v3 }
 0x948   : > { %3838 = vmatmul.mubr.msk.bf16.vlgmr.msra.gmra.mrb[24].mxu0 %vm974_vm3, %v1534_v44 }
 0x949   : > { %3848 = vmatpush3.bf16.xpose.msra.mxu0 %v1689_v45  ;;  %3849 = vmatprep.mubr.msk.bf16.mxu0 %vm4777_vm1, %v4776_v3 }
 0x94a   : > { %3859 = vmatprep.subr.bf16.mxu0 %v4776_v3 }
 0x94c   : > { %3844 = vmatmul.mubr.msk.bf16.vlgmr.msra.gmra.mrb[24].mxu1 %vm974_vm3, %v1632_v46 }
 0x94d   : > { %3855 = vmatprep.mubr.msk.bf16.mxu1 %vm4777_vm1, %v4776_v3 }
 0x950   : > { %3850 = vmatmul.mubr.msk.bf16.vlgmr.msra.gmra.mrb[28].mxu0 %vm974_vm3, %v1682_v47 }
 0x951   : > { %3861 = vmatprep.mubr.msk.bf16.mxu0 %vm4777_vm1, %v4776_v3 }
 0xa17   : > { %v1577_v48 = vpop.f32.mrb[20].mxu1 }
 0xa18   : > { %v3833_v49 = vpop.f32.mrb[21].mxu1 }
 0xa19   : > { %v1580_v50 = vpop.f32.mrb[22].mxu1 }
 0xa1a   : > { %v3834_v51 = vpop.f32.mrb[23].mxu1 }
 0xa1b   : > { %v1625_v52 = vpop.f32.mrb[24].mxu0 }
 0xa1c   : > { %v4164_v53 = vpack.i.bf16 %v1625_v52, %v1577_v48  ;;  %v3839_v55 = vpop.f32.mrb[25].mxu0 }
 0xa1d   : > { %v1628_v56 = vpop.f32.mrb[26].mxu0 }
 0xa1e   : > { %v3840_v57 = vpop.f32.mrb[27].mxu0 }
 0xa1f   : > { %v1675_v60 = vpop.f32.mrb[24].mxu1 }
 0xa20   : > { %v1676_v61 = vadd.f32 %v1675_v60, %v5434_v21  ;;  %v3845_v62 = vpop.f32.mrb[25].mxu1 }
 0xa21   : > { %v1678_v0 = vpop.f32.mrb[26].mxu1 }
 0xa22   : > { %v3846_v1 = vpop.f32.mrb[27].mxu1  ;;  %v1731_v2 = vsel %vm974_vm3, %v1676_v61, -inf  ;;  %v5596_v0 = vld [vmem:[%s789_s14] sm:$0xff] }
 0xa23   : > { %1732 = vmax.xlane.f32.xlu0 %v1731_v2  ;;  %v1725_v7 = vpop.f32.mrb[28].mxu0 }
 0xa24   : > { %v1726_v8 = vadd.f32 %v1725_v7, %v5437_v26  ;;  %v3851_v9 = vpop.f32.mrb[29].mxu0 }
 0xa25   : > { %v1728_v10 = vpop.f32.mrb[30].mxu0 }
 0xa26   : > { %v3852_v11 = vpop.f32.mrb[31].mxu0  ;;  %v1734_v12 = vsel %vm974_vm3, %v1726_v8, -inf }
 0xa27   : > { %1735 = vmax.xlane.f32.xlu1 %v1734_v12 }
 0xa38   : > { %1755 = vrot.lane.b32.xlu1 %v5416_v13, %s4788_s30 }
 0xa3c   : > { %4160 = vrot.lane.b32.xlu1 %v4159_v59, %s4789_s4 }
 0xa40   : > { %4165 = vrot.lane.b32.xlu1 %v4164_v53, %s4790_s13 }
 0xab0   : > { %v1733_v21 = vpop.xlane.xlu0 %1732 }
 0xab1   : > { %v1737_v26 = vsub.f32 %v1676_v61, %v1733_v21 }
 0xab3   : > { %v1739_v14 = vmul.f32 1.442695, %v1737_v26 }
 0xab4   : > { %v1736_v15 = vpop.xlane.xlu1 %1735 }
 0xab5   : > { %4231 = vpow2.f32 %v1739_v14  ;;  %v1738_v17 = vsub.f32 %v1726_v8, %v1736_v15 }
 0xab7   : > { %v1741_v18 = vmul.f32 1.442695, %v1738_v17 }
 0xab8   : > { %v1756_v19 = vpop.permute.xlu1 %1755 }
 0xab9   : > { %4233 = vpow2.f32 %v1741_v18  ;;  %v1761_v13 = vsel %vm1099_vm4, %v1756_v19, 0 }
 0xaba   : > { %3854 = vmatpush3.bf16.msra.mxu1 %v1761_v13 }
 0xabb   : > { %3865 = vmatprep.subr.bf16.mxu1 %v4776_v3 }
 0xabc   : > { %v4161_v43 = vpop.permute.xlu1 %4160 }
 0xabd   : > { %v4163_v45 = vunpack.i.h.bf16 %v4161_v43  ;;  %v4162_v46 = vunpack.i.l.bf16 %v4161_v43 }
 0xabf   : > { %v4232_v20 = vpop.eup %4231  ;;  %v1876_v50 = vsel %vm974_vm3, %v5474_v4, %v4163_v45  ;;  %v1875_v51 = vsel %vm974_vm3, %v5472_v63, %v4162_v46  ;;  %v1884_v4 = vlaneseq }
 0xac0   : > { %v1743_v54 = vsel %vm974_vm3, %v4232_v20, 0.0  ;;  %v4166_v44 = vpop.permute.xlu1 %4165 }
 0xac1   : > { %1744 = vadd.xlane.f32.xlu0 %v1743_v54  ;;  %v4168_v47 = vunpack.i.h.bf16 %v4166_v44  ;;  %v4167_v48 = vunpack.i.l.bf16 %v4166_v44  ;;  %v5591_v62 = vshrl.u32 %v1884_v4, 7  ;;  %v5635_v44 = vld [vmem:[%s701_s5 + $0x8] sm:$0xff]  }
 0xac2   : > { %v2124_v45 = vsel %vm974_vm3, %v5635_v44, 0 }
 0xac3   : > { %v4234_v58 = vpop.eup %4233  ;;  %v1878_v55 = vsel %vm1877_vm5, %v1875_v51, %v4167_v48  ;;  %v1879_v56 = vsel %vm1877_vm5, %v1876_v50, %v4168_v47  ;;  %v1886_v63 = vsub.s32 0, %v5591_v62  ;;  %v1992_v46 = vsub.s32 1, %v5591_v62 }
 0xac4   : > { %v1746_v59 = vsel %vm974_vm3, %v4234_v58, 0.0 }
 0xac5   : > { %1747 = vadd.xlane.f32.xlu0 %v1746_v59  ;;  %v1887_v1 = vrot.slane %v5596_v0, %v1886_v63  ;;  %v4193_v59 = vld [vmem:[%s745_s23] sm:$0xff]   ;;  %v1993_v47 = vrot.slane %v5596_v0, %v1992_v46 }
 0xadb   : > { %1803 = vrot.lane.b32.xlu0 %v5419_v16, %s4788_s30 }
 0xb4e   : > { %v1745_v22 = vpop.xlane.xlu0 %1744 }
 0xb4f   : > { %4235 = vrcp.f32 %v1745_v22  ;;  %v4194_v22 = vld [vmem:[%s745_s23 + $0x8] sm:$0xff]  }
 0xb52   : > { %v1748_v23 = vpop.xlane.xlu0 %1747 }
 0xb53   : > { %4237 = vrcp.f32 %v1748_v23  ;;  %v5615_v23 = vld [vmem:[%s701_s5] sm:$0xff]   ;;  %s4792_s5 = smov [#allocation18]  }
 0xb56   : > { %v1804_v24 = vpop.permute.xlu0 %1803 }
 0xb57   : > { %v1809_v25 = vsel %vm1099_vm4, %v1804_v24, 0  ;;  %v2073_v24 = vsel %vm974_vm3, %v5615_v23, 0 }
 0xb58   : > { %3860 = vmatpush3.bf16.msra.mxu0 %v1809_v25 }
 0xb59   : > { %v4236_v27 = vpop.eup %4235  ;;  %3873 = vmatprep.subr.bf16.mxu0 %v4776_v3 }
 0xb5a   : > { %v1751_v28 = vmul.f32 %v4236_v27, %v4232_v20 }
 0xb5c   : > { %v1753_v29 = vpack.c.bf16 %v1751_v28, %v1751_v28 }
 0xb5d   : > { %v4238_v30 = vpop.eup %4237 }
 0xb5e   : > { %v1752_v31 = vmul.f32 %v4238_v30, %v4234_v58  ;;  %3856 = vmatmul.mubr.msk.bf16.vlgmr.msra.gmra.mrb[28].mxu1 %vm974_vm3, %v1753_v29 }
 0xb5f   : > { %3869 = vmatprep.mubr.msk.bf16.mxu1 %vm4777_vm1, %v4776_v3  ;;  %3866 = vmatpush3.bf16.msra.mxu1 %v4191_v32 }
 0xb60   : > { %v1754_v16 = vpack.c.bf16 %v1752_v31, %v1752_v31  ;;  %3867 = vmatprep.subr.bf16.mxu1 %v4776_v3 }
 0xb62   : > { %3862 = vmatmul.mubr.msk.bf16.vlgmr.msra.gmra.mrb[32].mxu0 %vm974_vm3, %v1754_v16  ;;  %v1975_v16 = vsub.s32 4, %v5591_v62 }
 0xb63   : > { %3877 = vmatprep.mubr.msk.bf16.mxu0 %vm4777_vm1, %v4776_v3  ;;  %3868 = vmatpush3.bf16.msra.mxu1 %v4192_v33  ;;  %v1981_v33 = vsub.s32 5, %v5591_v62 }
 0xb64   : > { %3881 = vmatprep.subr.bf16.mxu1 %v4776_v3  ;;  %3874 = vmatpush3.bf16.msra.mxu0 %v4193_v59  ;;  %v1976_v32 = vrot.slane %v5596_v0, %v1975_v16 }
 0xb65   : > { %3875 = vmatprep.subr.bf16.mxu0 %v4776_v3 }
 0xb68   : > { %3876 = vmatpush3.bf16.msra.mxu0 %v4194_v22 }
 0xb69   : > { %3887 = vmatprep.subr.bf16.mxu0 %v4776_v3 }
 0xc31   : > { %v1797_v34 = vpop.f32.mrb[28].mxu1 }
 0xc32   : > { %v3857_v35 = vpop.f32.mrb[29].mxu1 }
 0xc33   : > { %v1800_v36 = vpop.f32.mrb[30].mxu1 }
 0xc34   : > { %v3858_v37 = vpop.f32.mrb[31].mxu1 }
 0xc35   : > { %v1845_v38 = vpop.f32.mrb[32].mxu0 }
 0xc36   : > { %v4169_v39 = vpack.i.bf16 %v1845_v38, %v1797_v34  ;;  %v3863_v40 = vpop.f32.mrb[33].mxu0 }
 0xc37   : > { %v1848_v41 = vpop.f32.mrb[34].mxu0 }
 0xc38   : > { %4170 = vrot.lane.b32.xlu0 %v4169_v39, %s4791_s27  ;;  %v3864_v42 = vpop.f32.mrb[35].mxu0  ;;  %v1982_v39 = vrot.slane %v5596_v0, %v1981_v33 }
 0xcaa   : > { %v4171_v49 = vpop.permute.xlu0 %4170 }
 0xcab   : > { %v4173_v52 = vunpack.i.h.bf16 %v4171_v49  ;;  %v4172_v53 = vunpack.i.l.bf16 %v4171_v49 }
 0xcad   : > { %v1882_v57 = vsel %vm1880_vm6, %v1879_v56, %v4173_v52  ;;  %v1881_v60 = vsel %vm1880_vm6, %v1878_v55, %v4172_v53 }
 0xcae   : > { %v1883_v61 = vpack.c.bf16 %v1882_v57, %v1881_v60 }
 0xcb0   : > { %3870 = vmatmul.mubr.msk.bf16.vlgmr.msra.gmra.mrb[32].mxu1 %vm920_vm2, %v1883_v61 }
 0xcb1   : > { %3883 = vmatprep.mubr.msk.bf16.mxu1 %vm4777_vm1, %v4776_v3  ;;  %3882 = vmatpush3.bf16.xpose.msra.mxu1 %v2073_v24 }
 0xcb2   : > { %3893 = vmatprep.subr.bf16.mxu1 %v4776_v3 }
 0xd83   : > { %v1937_v2 = vpop.f32.mrb[32].mxu1 }
 0xd84   : > { %v1938_v7 = vadd.f32 %v1937_v2, %v1887_v1  ;;  %v3871_v8 = vpop.f32.mrb[33].mxu1 }
 0xd85   : > { %v1940_v9 = vpop.f32.mrb[34].mxu1 }
 0xd86   : > { %v1941_v10 = vadd.f32 %v1940_v9, %v1887_v1  ;;  %v3872_v11 = vpop.f32.mrb[35].mxu1  ;;  %v1944_v12 = vadd.f32 %v1938_v7, %v5401_v5 }
 0xd88   : > { %v1946_v21 = vsel %vm920_vm2, %v1944_v12, 0.0  ;;  %v1945_v26 = vadd.f32 %v1941_v10, %v5403_v6 }
 0xd89   : > { %1947 = vadd.xlane.f32.xlu1 %v1946_v21 }
 0xd8a   : > { %v1949_v14 = vsel %vm920_vm2, %v1945_v26, 0.0 }
 0xd8b   : > { %1950 = vadd.xlane.f32.xlu0 %v1949_v14 }
 0xe16   : > { %v1948_v15 = vpop.xlane.xlu1 %1947 }
 0xe17   : > { %v1953_v17 = vmul.f32 0.03125, %v1948_v15 }
 0xe18   : > { %v1951_v18 = vpop.xlane.xlu0 %1950 }
 0xe19   : > { %v1955_v19 = vsub.f32 %v1944_v12, %v1953_v17  ;;  %v1954_v13 = vmul.f32 0.03125, %v1951_v18 }
 0xe1b   : > { %v1956_v20 = vsub.f32 %v1945_v26, %v1954_v13  ;;  %v1957_v54 = vmul.f32 %v1955_v19, %v1955_v19 }
 0xe1d   : > { %v1959_v5 = vsel %vm920_vm2, %v1957_v54, 0.0  ;;  %v1958_v58 = vmul.f32 %v1956_v20, %v1956_v20  ;;  %v5671_v54 = vld [vmem:[%s710_s17 + $0x8] sm:$0xff]  }
 0xe1e   : > { %1960 = vadd.xlane.f32.xlu0 %v1959_v5 }
 0xe1f   : > { %v1962_v6 = vsel %vm920_vm2, %v1958_v58, 0.0 }
 0xe20   : > { %1963 = vadd.xlane.f32.xlu1 %v1962_v6 }
 0xeab   : > { %v1961_v25 = vpop.xlane.xlu0 %1960 }
 0xeac   : > { %v1965_v27 = vmul.f32 0.03125, %v1961_v25 }
 0xead   : > { %v1964_v28 = vpop.xlane.xlu1 %1963 }
 0xeae   : > { %v1967_v29 = vadd.f32 1e-05, %v1965_v27  ;;  %v1966_v30 = vmul.f32 0.03125, %v1964_v28 }
 0xeb0   : > { %4239 = vrsqrt.f32 %v1967_v29  ;;  %v1968_v31 = vadd.f32 1e-05, %v1966_v30 }
 0xeb2   : > { %4241 = vrsqrt.f32 %v1968_v31 }
 0xeba   : > { %v4240_v34 = vpop.eup %4239 }
 0xebb   : > { %v1971_v35 = vmul.f32 %v4240_v34, %v1955_v19 }
 0xebc   : > { %v4242_v36 = vpop.eup %4241 }
 0xebd   : > { %v1977_v37 = vmul.f32 %v1976_v32, %v1971_v35  ;;  %v1972_v38 = vmul.f32 %v4242_v36, %v1956_v20  ;;  %v5664_v20 = vld [vmem:[%s710_s17] sm:$0xff]   ;;  %s3272_s17 = sshll.u32 %s4792_s5, 4  ;;  %s3273_s17 = int_to_ptr.vmem [resolvable:$true] %s3272_s17 }
 0xebe   : > { %s4669_s25 = scalar_lea.vmem %s3273_s17, 256  ;;  %p4676_p4 = scmp.lt.s32.totalorder %s3273_s17, %s3273_s17 }
 0xebf   : > { %v1978_v40 = vmul.f32 %v1976_v32, %v1972_v38  ;;  %v5624_v41 = vadd.f32 %v1982_v39, %v1977_v37  ;;  %p4670_p5 = scmp.ne.s32.totalorder %s3273_s17, %s4669_s25  ;;  %p4677_p1 = scmp.lt.s32.totalorder %s4669_s25, %s4669_s25 }
 0xec1   : > { %v5626_v42 = vadd.f32 %v1982_v39, %v1978_v40  ;;  %p4671_p0 = pnand %p4670_p5, %p4085_p6  ;;  %p4678_p9 = por %p4677_p1, %p4676_p4 }
 0xec3   : > { %v1989_v43 = vpack.c.bf16 %v5626_v42, %v5624_v41  ;;  %p4672_p11 = pneg %p4671_p0 }
 0xec5   : > { %3878 = vmatmul.mubr.msk.bf16.vlgmr.msra.gmra.mrb[36].mxu0 %vm920_vm2, %v1989_v43  ;;  %p4679_p10 = pnand %p4678_p9, %p4672_p11 }
 0xec6   : > { %3889 = vmatprep.mubr.msk.bf16.mxu0 %vm4777_vm1, %v4776_v3  ;;  %3888 = vmatpush3.bf16.xpose.msra.mxu0 %v2124_v45 }
 0xec7   : > { %3899 = vmatprep.subr.bf16.mxu0 %v4776_v3 }
 0xf98   : > { %v2043_v48 = vpop.f32.mrb[36].mxu0 }
 0xf99   : > { %v2044_v49 = vadd.f32 %v2043_v48, %v1993_v47  ;;  %v3879_v50 = vpop.f32.mrb[37].mxu0 }
 0xf9a   : > { %v2046_v51 = vpop.f32.mrb[38].mxu0 }
 0xf9b   : > { %v5644_v52 = vpack.c.bf16 %v2044_v49, %v2044_v49  ;;  %v2047_v53 = vadd.f32 %v2046_v51, %v1993_v47  ;;  %v3880_v55 = vpop.f32.mrb[39].mxu0 }
 0xf9d   : > { %v5646_v56 = vpack.c.bf16 %v2047_v53, %v2047_v53  ;;  %3884 = vmatmul.mubr.msk.bf16.vlgmr.msra.gmra.mrb[36].mxu1 %vm974_vm3, %v5644_v52 }
 0xf9e   : > { %3895 = vmatprep.mubr.msk.bf16.mxu1 %vm4777_vm1, %v4776_v3  ;;  %3894 = vmatpush3.bf16.msra.mxu1 %v5664_v20 }
 0xf9f   : > { %3890 = vmatmul.mubr.msk.bf16.vlgmr.msra.gmra.mrb[40].mxu0 %vm974_vm3, %v5646_v56  ;;  %3905 = vmatprep.subr.bf16.mxu1 %v4776_v3 }
 0xfa0   : > { %3901 = vmatprep.mubr.msk.bf16.mxu0 %vm4777_vm1, %v4776_v3  ;;  %3900 = vmatpush3.bf16.msra.mxu0 %v5671_v54 }
 0xfa1   : > { %3911 = vmatprep.subr.bf16.mxu0 %v4776_v3 }
0x1070   : > { %v2109_v57 = vpop.f32.mrb[36].mxu1 }
0x1071   : > { %v3885_v60 = vpop.f32.mrb[37].mxu1  ;;  %v2166_v61 = vsel %vm1877_vm5, %v2109_v57, -inf }
0x1072   : > { %2167 = vmax.xlane.f32.xlu0 %v2166_v61  ;;  %v2112_v4 = vpop.f32.mrb[38].mxu1  ;;  %v2160_v1 = vpop.f32.mrb[40].mxu0 }
0x1073   : > { %v3886_v2 = vpop.f32.mrb[39].mxu1  ;;  %v3891_v7 = vpop.f32.mrb[41].mxu0  ;;  %v2169_v8 = vsel %vm1877_vm5, %v2160_v1, -inf }
0x1074   : > { %2170 = vmax.xlane.f32.xlu1 %v2169_v8  ;;  %v2163_v9 = vpop.f32.mrb[42].mxu0 }
0x1075   : > { %v3892_v10 = vpop.f32.mrb[43].mxu0 }
0x10ff   : > { %v2168_v11 = vpop.xlane.xlu0 %2167 }
0x1100   : > { %v2172_v12 = vsub.f32 %v2109_v57, %v2168_v11 }
0x1101   : > { %v2171_v21 = vpop.xlane.xlu1 %2170 }
0x1102   : > { %v2174_v26 = vmul.f32 1.442695, %v2172_v12  ;;  %v2173_v14 = vsub.f32 %v2160_v1, %v2171_v21 }
0x1104   : > { %4243 = vpow2.f32 %v2174_v26  ;;  %v2176_v15 = vmul.f32 1.442695, %v2173_v14 }
0x1106   : > { %4245 = vpow2.f32 %v2176_v15 }
0x110e   : > { %v4244_v17 = vpop.eup %4243 }
0x110f   : > { %v2178_v18 = vsel %vm1877_vm5, %v4244_v17, 0.0 }
0x1110   : > { %v4246_v19 = vpop.eup %4245  ;;  %2179 = vadd.xlane.f32.xlu0 %v2178_v18 }
0x1111   : > { %v2181_v13 = vsel %vm1877_vm5, %v4246_v19, 0.0 }
0x1112   : > { %2182 = vadd.xlane.f32.xlu1 %v2181_v13 }
0x1123   : > { %2342 = vrot.lane.b32.xlu1 %v5635_v44, %s4781_s19 }
0x1126   : > { %2291 = vrot.lane.b32.xlu0 %v5615_v23, %s4781_s19 }
0x1127   : > { %2289 = vrot.lane.b32.xlu1 %v5644_v52, %s4781_s19 }
0x112a   : > { %2340 = vrot.lane.b32.xlu0 %v5646_v56, %s4781_s19 }
0x119d   : > { %v2180_v5 = vpop.xlane.xlu0 %2179 }
0x119e   : > { %4247 = vrcp.f32 %v2180_v5 }
0x119f   : > { %v2183_v58 = vpop.xlane.xlu1 %2182 }
0x11a0   : > { %4249 = vrcp.f32 %v2183_v58 }
0x11a1   : > { %v2292_v24 = vpop.permute.xlu0 %2291 }
0x11a2   : > { %v2297_v27 = vsel %vm974_vm3, %v2292_v24, 0 }
0x11a3   : > { %v2343_v29 = vpop.permute.xlu1 %2342 }
0x11a4   : > { %v2348_v30 = vsel %vm974_vm3, %v2343_v29, 0 }
0x11a5   : > { %v2341_v32 = vpop.permute.xlu0 %2340 }
0x11a7   : > { %v2290_v16 = vpop.permute.xlu1 %2289 }
0x11a8   : > { %v4248_v6 = vpop.eup %4247 }
0x11a9   : > { %v2186_v59 = vmul.f32 %v4248_v6, %v4244_v17 }
0x11aa   : > { %v4250_v22 = vpop.eup %4249 }
0x11ab   : > { %v2187_v25 = vmul.f32 %v4250_v22, %v4246_v19  ;;  %v2188_v28 = vpack.c.bf16 %v2186_v59, %v2186_v59 }
0x11ad   : > { %3896 = vmatmul.mubr.msk.bf16.vlgmr.msra.gmra.mrb[40].mxu1 %vm1877_vm5, %v2188_v28  ;;  %v2189_v31 = vpack.c.bf16 %v2187_v25, %v2187_v25 }
0x11ae   : > { %3906 = vmatpush3.bf16.xpose.msra.mxu1 %v2297_v27  ;;  %3907 = vmatprep.mubr.msk.bf16.mxu1 %vm4777_vm1, %v4776_v3 }
0x11af   : > { %3902 = vmatmul.mubr.msk.bf16.vlgmr.msra.gmra.mrb[44].mxu0 %vm1877_vm5, %v2189_v31  ;;  %3917 = vmatprep.subr.bf16.mxu1 %v4776_v3 }
0x11b0   : > { %3912 = vmatpush3.bf16.xpose.msra.mxu0 %v2348_v30  ;;  %3913 = vmatprep.mubr.msk.bf16.mxu0 %vm4777_vm1, %v4776_v3 }
0x11b1   : > { %3923 = vmatprep.subr.bf16.mxu0 %v4776_v3 }
0x11b5   : > { %3908 = vmatmul.mubr.msk.bf16.vlgmr.msra.gmra.mrb[44].mxu1 %vm974_vm3, %v2290_v16 }
0x11b6   : > { %3919 = vmatprep.mubr.msk.bf16.mxu1 %vm4777_vm1, %v4776_v3 }
0x11b7   : > { %3914 = vmatmul.mubr.msk.bf16.vlgmr.msra.gmra.mrb[48].mxu0 %vm974_vm3, %v2341_v32 }
0x11b8   : > { %3925 = vmatprep.mubr.msk.bf16.mxu0 %vm4777_vm1, %v4776_v3 }
0x1280   : > { %v5696_v33 = vpop.f32.mrb[40].mxu1 }
0x1281   : > { %v3897_v34 = vpop.f32.mrb[41].mxu1 }
0x1282   : > { %v2236_v35 = vpop.f32.mrb[42].mxu1  ;;  %v5698_v36 = vpop.f32.mrb[44].mxu0 }
0x1283   : > { %v3898_v37 = vpop.f32.mrb[43].mxu1  ;;  %v3903_v38 = vpop.f32.mrb[45].mxu0 }
0x1284   : > { %v2285_v39 = vpop.f32.mrb[46].mxu0 }
0x1285   : > { %v3904_v40 = vpop.f32.mrb[47].mxu0 }
0x1288   : > { %v2333_v43 = vpop.f32.mrb[44].mxu1 }
0x1289   : > { %v3909_v45 = vpop.f32.mrb[45].mxu1  ;;  %v2390_v47 = vsel %vm1877_vm5, %v2333_v43, -inf }
0x128a   : > { %2391 = vmax.xlane.f32.xlu1 %v2390_v47  ;;  %v2336_v48 = vpop.f32.mrb[46].mxu1  ;;  %v2384_v49 = vpop.f32.mrb[48].mxu0 }
0x128b   : > { %v3910_v50 = vpop.f32.mrb[47].mxu1  ;;  %v3915_v51 = vpop.f32.mrb[49].mxu0  ;;  %v2393_v53 = vsel %vm1877_vm5, %v2384_v49, -inf }
0x128c   : > { %2394 = vmax.xlane.f32.xlu0 %v2393_v53  ;;  %v2387_v55 = vpop.f32.mrb[50].mxu0 }
0x128d   : > { %v3916_v57 = vpop.f32.mrb[51].mxu0 }
0x129b   : > { %2460 = vrot.lane.b32.xlu1 %v5671_v54, %s4781_s19 }
0x12a2   : > { %2414 = vrot.lane.b32.xlu0 %v5664_v20, %s4781_s19 }
0x1317   : > { %v2392_v60 = vpop.xlane.xlu1 %2391 }
0x1318   : > { %v2396_v61 = vsub.f32 %v2333_v43, %v2392_v60 }
0x1319   : > { %v2395_v4 = vpop.xlane.xlu0 %2394 }
0x131a   : > { %v2398_v1 = vmul.f32 1.442695, %v2396_v61  ;;  %v2397_v2 = vsub.f32 %v2384_v49, %v2395_v4 }
0x131b   : > { %v2461_v7 = vpop.permute.xlu1 %2460 }
0x131c   : > { %4251 = vpow2.f32 %v2398_v1  ;;  %v2400_v8 = vmul.f32 1.442695, %v2397_v2  ;;  %3924 = vmatpush3.bf16.msra.mxu0 %v2461_v7 }
0x131d   : > { %v2415_v9 = vpop.permute.xlu0 %2414  ;;  %3935 = vmatprep.subr.bf16.mxu0 %v4776_v3 }
0x131e   : > { %4253 = vpow2.f32 %v2400_v8  ;;  %3918 = vmatpush3.bf16.msra.mxu1 %v2415_v9 }
0x131f   : > { %3929 = vmatprep.subr.bf16.mxu1 %v4776_v3 }
0x1326   : > { %v4252_v10 = vpop.eup %4251 }
0x1327   : > { %v2402_v11 = vsel %vm1877_vm5, %v4252_v10, 0.0 }
0x1328   : > { %v4254_v12 = vpop.eup %4253  ;;  %2403 = vadd.xlane.f32.xlu0 %v2402_v11 }
0x1329   : > { %v2405_v21 = vsel %vm1877_vm5, %v4254_v12, 0.0 }
0x132a   : > { %2406 = vadd.xlane.f32.xlu1 %v2405_v21 }
0x133b   : > { %2508 = vrot.lane.b32.xlu1 %v5615_v23, %s4784_s26 }
0x133e   : > { %2558 = vrot.lane.b32.xlu0 %v5635_v44, %s4784_s26 }
0x133f   : > { %2506 = vrot.lane.b32.xlu1 %v5644_v52, %s4784_s26 }
0x1342   : > { %2556 = vrot.lane.b32.xlu0 %v5646_v56, %s4784_s26 }
0x13b5   : > { %v2404_v26 = vpop.xlane.xlu0 %2403 }
0x13b6   : > { %4255 = vrcp.f32 %v2404_v26 }
0x13b7   : > { %v2407_v14 = vpop.xlane.xlu1 %2406 }
0x13b8   : > { %4257 = vrcp.f32 %v2407_v14 }
0x13b9   : > { %v2559_v6 = vpop.permute.xlu0 %2558 }
0x13ba   : > { %v2564_v59 = vsel %vm974_vm3, %v2559_v6, 0 }
0x13bb   : > { %v2509_v19 = vpop.permute.xlu1 %2508 }
0x13bc   : > { %v2514_v5 = vsel %vm974_vm3, %v2509_v19, 0 }
0x13bd   : > { %v2557_v25 = vpop.permute.xlu0 %2556 }
0x13bf   : > { %v2507_v24 = vpop.permute.xlu1 %2506 }
0x13c0   : > { %v4256_v15 = vpop.eup %4255 }
0x13c1   : > { %v2410_v17 = vmul.f32 %v4256_v15, %v4252_v10 }
0x13c2   : > { %v4258_v18 = vpop.eup %4257 }
0x13c3   : > { %v2411_v13 = vmul.f32 %v4258_v18, %v4254_v12  ;;  %v2412_v58 = vpack.c.bf16 %v2410_v17, %v2410_v17 }
0x13c5   : > { %3920 = vmatmul.mubr.msk.bf16.vlgmr.msra.gmra.mrb[48].mxu1 %vm1877_vm5, %v2412_v58  ;;  %v2413_v22 = vpack.c.bf16 %v2411_v13, %v2411_v13 }
0x13c6   : > { %3930 = vmatpush3.bf16.xpose.msra.mxu1 %v2514_v5  ;;  %3931 = vmatprep.mubr.msk.bf16.mxu1 %vm4777_vm1, %v4776_v3 }
0x13c7   : > { %3926 = vmatmul.mubr.msk.bf16.vlgmr.msra.gmra.mrb[52].mxu0 %vm1877_vm5, %v2413_v22  ;;  %3941 = vmatprep.subr.bf16.mxu1 %v4776_v3 }
0x13c8   : > { %3936 = vmatpush3.bf16.xpose.msra.mxu0 %v2564_v59  ;;  %3937 = vmatprep.mubr.msk.bf16.mxu0 %vm4777_vm1, %v4776_v3 }
0x13c9   : > { %3947 = vmatprep.subr.bf16.mxu0 %v4776_v3 }
0x13cd   : > { %3932 = vmatmul.mubr.msk.bf16.vlgmr.msra.gmra.mrb[52].mxu1 %vm974_vm3, %v2507_v24 }
0x13ce   : > { %3943 = vmatprep.mubr.msk.bf16.mxu1 %vm4777_vm1, %v4776_v3 }
0x13cf   : > { %3938 = vmatmul.mubr.msk.bf16.vlgmr.msra.gmra.mrb[56].mxu0 %vm974_vm3, %v2557_v25 }
0x13d0   : > { %3949 = vmatprep.mubr.msk.bf16.mxu0 %vm4777_vm1, %v4776_v3 }
0x1498   : > { %v5734_v27 = vpop.f32.mrb[48].mxu1 }
0x1499   : > { %v3921_v28 = vpop.f32.mrb[49].mxu1 }
0x149a   : > { %v2457_v29 = vpop.f32.mrb[50].mxu1  ;;  %v5736_v30 = vpop.f32.mrb[52].mxu0 }
0x149b   : > { %v4174_v31 = vpack.i.bf16 %v5736_v30, %v5734_v27  ;;  %v3922_v16 = vpop.f32.mrb[51].mxu1  ;;  %v3927_v32 = vpop.f32.mrb[53].mxu0 }
0x149c   : > { %v2503_v34 = vpop.f32.mrb[54].mxu0 }
0x149d   : > { %v3928_v35 = vpop.f32.mrb[55].mxu0 }
0x14a0   : > { %v2550_v37 = vpop.f32.mrb[52].mxu1 }
0x14a1   : > { %v3933_v38 = vpop.f32.mrb[53].mxu1  ;;  %v2606_v39 = vsel %vm1877_vm5, %v2550_v37, -inf }
0x14a2   : > { %2607 = vmax.xlane.f32.xlu1 %v2606_v39  ;;  %v2553_v40 = vpop.f32.mrb[54].mxu1  ;;  %v2600_v43 = vpop.f32.mrb[56].mxu0 }
0x14a3   : > { %v3934_v45 = vpop.f32.mrb[55].mxu1  ;;  %v3939_v47 = vpop.f32.mrb[57].mxu0  ;;  %v2609_v48 = vsel %vm1877_vm5, %v2600_v43, -inf }
0x14a4   : > { %2610 = vmax.xlane.f32.xlu0 %v2609_v48  ;;  %v2603_v49 = vpop.f32.mrb[58].mxu0 }
0x14a5   : > { %v3940_v50 = vpop.f32.mrb[59].mxu0 }
0x14b3   : > { %2676 = vrot.lane.b32.xlu1 %v5671_v54, %s4784_s26 }
0x14ba   : > { %2630 = vrot.lane.b32.xlu0 %v5664_v20, %s4784_s26 }
0x152f   : > { %v2608_v51 = vpop.xlane.xlu1 %2607 }
0x1530   : > { %v2612_v53 = vsub.f32 %v2550_v37, %v2608_v51 }
0x1531   : > { %v2611_v55 = vpop.xlane.xlu0 %2610 }
0x1532   : > { %v2614_v57 = vmul.f32 1.442695, %v2612_v53  ;;  %v2613_v60 = vsub.f32 %v2600_v43, %v2611_v55 }
0x1533   : > { %v2677_v61 = vpop.permute.xlu1 %2676 }
0x1534   : > { %4259 = vpow2.f32 %v2614_v57  ;;  %v2616_v4 = vmul.f32 1.442695, %v2613_v60  ;;  %3948 = vmatpush3.bf16.msra.mxu0 %v2677_v61 }
0x1535   : > { %v2631_v1 = vpop.permute.xlu0 %2630  ;;  %3959 = vmatprep.subr.bf16.mxu0 %v4776_v3 }
0x1536   : > { %4261 = vpow2.f32 %v2616_v4  ;;  %3942 = vmatpush3.bf16.msra.mxu1 %v2631_v1 }
0x1537   : > { %3953 = vmatprep.subr.bf16.mxu1 %v4776_v3 }
0x153e   : > { %v4260_v2 = vpop.eup %4259 }
0x153f   : > { %v2618_v7 = vsel %vm1877_vm5, %v4260_v2, 0.0 }
0x1540   : > { %v4262_v8 = vpop.eup %4261  ;;  %2619 = vadd.xlane.f32.xlu0 %v2618_v7 }
0x1541   : > { %v2621_v9 = vsel %vm1877_vm5, %v4262_v8, 0.0 }
0x1542   : > { %2622 = vadd.xlane.f32.xlu1 %v2621_v9  ;;  %v4200_v9 = vld [vmem:[%s754_s0 + $0x8] sm:$0xff]  }
0x1553   : > { %2724 = vrot.lane.b32.xlu1 %v5615_v23, %s4787_s21 }
0x1556   : > { %2774 = vrot.lane.b32.xlu0 %v5635_v44, %s4787_s21 }
0x1557   : > { %2722 = vrot.lane.b32.xlu1 %v5644_v52, %s4787_s21 }
0x155a   : > { %2772 = vrot.lane.b32.xlu0 %v5646_v56, %s4787_s21 }
0x15cd   : > { %v2620_v10 = vpop.xlane.xlu0 %2619 }
0x15ce   : > { %4263 = vrcp.f32 %v2620_v10 }
0x15cf   : > { %v2623_v11 = vpop.xlane.xlu1 %2622 }
0x15d0   : > { %4265 = vrcp.f32 %v2623_v11 }
0x15d1   : > { %v2775_v18 = vpop.permute.xlu0 %2774 }
0x15d2   : > { %v2780_v44 = vsel %vm974_vm3, %v2775_v18, 0 }
0x15d3   : > { %v2725_v14 = vpop.permute.xlu1 %2724 }
0x15d4   : > { %v2730_v23 = vsel %vm974_vm3, %v2725_v14, 0 }
0x15d5   : > { %v2773_v19 = vpop.permute.xlu0 %2772 }
0x15d7   : > { %v2723_v56 = vpop.permute.xlu1 %2722 }
0x15d8   : > { %v4264_v12 = vpop.eup %4263 }
0x15d9   : > { %v2626_v21 = vmul.f32 %v4264_v12, %v4260_v2 }
0x15da   : > { %v4266_v26 = vpop.eup %4265 }
0x15db   : > { %v2627_v15 = vmul.f32 %v4266_v26, %v4262_v8  ;;  %v2628_v17 = vpack.c.bf16 %v2626_v21, %v2626_v21  ;;  %v4199_v8 = vld [vmem:[%s754_s0] sm:$0xff]  }
0x15dd   : > { %3944 = vmatmul.mubr.msk.bf16.vlgmr.msra.gmra.mrb[56].mxu1 %vm1877_vm5, %v2628_v17  ;;  %v2629_v52 = vpack.c.bf16 %v2627_v15, %v2627_v15 }
0x15de   : > { %3954 = vmatpush3.bf16.xpose.msra.mxu1 %v2730_v23  ;;  %3955 = vmatprep.mubr.msk.bf16.mxu1 %vm4777_vm1, %v4776_v3 }
0x15df   : > { %3950 = vmatmul.mubr.msk.bf16.vlgmr.msra.gmra.mrb[60].mxu0 %vm1877_vm5, %v2629_v52  ;;  %3965 = vmatprep.subr.bf16.mxu1 %v4776_v3 }
0x15e0   : > { %3960 = vmatpush3.bf16.xpose.msra.mxu0 %v2780_v44  ;;  %3961 = vmatprep.mubr.msk.bf16.mxu0 %vm4777_vm1, %v4776_v3 }
0x15e1   : > { %3971 = vmatprep.subr.bf16.mxu0 %v4776_v3 }
0x15e5   : > { %3956 = vmatmul.mubr.msk.bf16.vlgmr.msra.gmra.mrb[60].mxu1 %vm974_vm3, %v2723_v56 }
0x15e6   : > { %3967 = vmatprep.mubr.msk.bf16.mxu1 %vm4777_vm1, %v4776_v3 }
0x15e7   : > { %3962 = vmatmul.mubr.msk.bf16.vlgmr.msra.gmra.mrb[64].mxu0 %vm974_vm3, %v2773_v19 }
0x15e8   : > { %3973 = vmatprep.mubr.msk.bf16.mxu0 %vm4777_vm1, %v4776_v3 }
0x16b0   : > { %v2670_v13 = vpop.f32.mrb[56].mxu1 }
0x16b1   : > { %v3945_v5 = vpop.f32.mrb[57].mxu1 }
0x16b2   : > { %v2673_v58 = vpop.f32.mrb[58].mxu1  ;;  %v2716_v6 = vpop.f32.mrb[60].mxu0 }
0x16b3   : > { %v4179_v59 = vpack.i.bf16 %v2716_v6, %v2670_v13  ;;  %v3946_v22 = vpop.f32.mrb[59].mxu1  ;;  %v3951_v24 = vpop.f32.mrb[61].mxu0 }
0x16b4   : > { %v2719_v25 = vpop.f32.mrb[62].mxu0 }
0x16b5   : > { %v3952_v28 = vpop.f32.mrb[63].mxu0 }
0x16b8   : > { %v2766_v29 = vpop.f32.mrb[60].mxu1 }
0x16b9   : > { %v3957_v16 = vpop.f32.mrb[61].mxu1  ;;  %v2822_v32 = vsel %vm1877_vm5, %v2766_v29, -inf }
0x16ba   : > { %2823 = vmax.xlane.f32.xlu1 %v2822_v32  ;;  %v2769_v34 = vpop.f32.mrb[62].mxu1  ;;  %v2816_v35 = vpop.f32.mrb[64].mxu0 }
0x16bb   : > { %v3958_v37 = vpop.f32.mrb[63].mxu1  ;;  %v3963_v38 = vpop.f32.mrb[65].mxu0  ;;  %v2825_v39 = vsel %vm1877_vm5, %v2816_v35, -inf }
0x16bc   : > { %2826 = vmax.xlane.f32.xlu0 %v2825_v39  ;;  %v2819_v40 = vpop.f32.mrb[66].mxu0 }
0x16bd   : > { %v3964_v43 = vpop.f32.mrb[67].mxu0 }
0x1747   : > { %v2824_v45 = vpop.xlane.xlu1 %2823 }
0x1748   : > { %v2828_v47 = vsub.f32 %v2766_v29, %v2824_v45 }
0x1749   : > { %v2827_v48 = vpop.xlane.xlu0 %2826 }
0x174a   : > { %v2830_v49 = vmul.f32 1.442695, %v2828_v47  ;;  %v2829_v50 = vsub.f32 %v2816_v35, %v2827_v48 }
0x174c   : > { %4267 = vpow2.f32 %v2830_v49  ;;  %v2832_v51 = vmul.f32 1.442695, %v2829_v50 }
0x174e   : > { %4269 = vpow2.f32 %v2832_v51 }
0x1756   : > { %v4268_v53 = vpop.eup %4267 }
0x1757   : > { %v2834_v55 = vsel %vm1877_vm5, %v4268_v53, 0.0 }
0x1758   : > { %v4270_v57 = vpop.eup %4269  ;;  %2835 = vadd.xlane.f32.xlu0 %v2834_v55 }
0x1759   : > { %v2837_v60 = vsel %vm1877_vm5, %v4270_v57, 0.0 }
0x175a   : > { %2838 = vadd.xlane.f32.xlu1 %v2837_v60 }
0x176b   : > { %2892 = vrot.lane.b32.xlu1 %v5671_v54, %s4787_s21 }
0x176e   : > { %2846 = vrot.lane.b32.xlu0 %v5664_v20, %s4787_s21 }
0x176f   : > { %4175 = vrot.lane.b32.xlu1 %v4174_v31, %s4789_s4 }
0x1772   : > { %4180 = vrot.lane.b32.xlu0 %v4179_v59, %s4790_s13 }
0x17e5   : > { %v2836_v61 = vpop.xlane.xlu0 %2835 }
0x17e6   : > { %4271 = vrcp.f32 %v2836_v61  ;;  %v4201_v61 = vld [vmem:[%s763_s1] sm:$0xff]  }
0x17e7   : > { %v2839_v4 = vpop.xlane.xlu1 %2838 }
0x17e8   : > { %4273 = vrcp.f32 %v2839_v4  ;;  %v4202_v4 = vld [vmem:[%s763_s1 + $0x8] sm:$0xff]  }
0x17e9   : > { %v2847_v1 = vpop.permute.xlu0 %2846 }
0x17ea   : > { %3966 = vmatpush3.bf16.msra.mxu1 %v2847_v1  ;;  %v4203_v1 = vld [vmem:[%s5393_s22] sm:$0xff]  }
0x17eb   : > { %v2893_v2 = vpop.permute.xlu1 %2892  ;;  %3977 = vmatprep.subr.bf16.mxu1 %v4776_v3 }
0x17ec   : > { %3972 = vmatpush3.bf16.msra.mxu0 %v2893_v2  ;;  %v4204_v2 = vld [vmem:[%s5393_s22 + $0x8] sm:$0xff]  }
0x17ed   : > { %3985 = vmatprep.subr.bf16.mxu0 %v4776_v3  ;;  %v4181_v56 = vpop.permute.xlu0 %4180 }
0x17ee   : > { %v4183_v5 = vunpack.i.h.bf16 %v4181_v56  ;;  %v4182_v58 = vunpack.i.l.bf16 %v4181_v56  ;;  %v4206_v56 = vld [vmem:[%s5393_s22 + $0x18] sm:$0xff]  }
0x17ef   : > { %v4176_v18 = vpop.permute.xlu1 %4175 }
0x17f0   : > { %v4272_v20 = vpop.eup %4271  ;;  %v4178_v44 = vunpack.i.h.bf16 %v4176_v18  ;;  %v4177_v52 = vunpack.i.l.bf16 %v4176_v18 }
0x17f1   : > { %v2842_v54 = vmul.f32 %v4272_v20, %v4268_v53 }
0x17f2   : > { %v4274_v27 = vpop.eup %4273  ;;  %v2963_v19 = vsel %vm974_vm3, %v5698_v36, %v4178_v44  ;;  %v2962_v13 = vsel %vm974_vm3, %v5696_v33, %v4177_v52  ;;  %v2971_v33 = vsub.s32 2, %v5591_v62  ;;  %v4205_v52 = vld [vmem:[%s5393_s22 + $0x10] sm:$0xff]  }
0x17f3   : > { %v2843_v30 = vmul.f32 %v4274_v27, %v4270_v57  ;;  %v2844_v31 = vpack.c.bf16 %v2842_v54, %v2842_v54  ;;  %v2964_v24 = vsel %vm1877_vm5, %v2962_v13, %v4182_v58  ;;  %v2965_v25 = vsel %vm1877_vm5, %v2963_v19, %v4183_v5  ;;  %v3655_v19 = vld [vmem:[%s771_s2] ss:$0 sm:$0xff] }
0x17f4   : > { %v2972_v36 = vrot.slane %v5596_v0, %v2971_v33 }
0x17f5   : > { %3968 = vmatmul.mubr.msk.bf16.vlgmr.msra.gmra.mrb[64].mxu1 %vm1877_vm5, %v2844_v31  ;;  %v2845_v7 = vpack.c.bf16 %v2843_v30, %v2843_v30 }
0x17f6   : > { %3981 = vmatprep.mubr.msk.bf16.mxu1 %vm4777_vm1, %v4776_v3  ;;  %3978 = vmatpush3.bf16.msra.mxu1 %v4199_v8  ;;  %v3059_v8 = vsub.s32 6, %v5591_v62 }
0x17f7   : > { %3974 = vmatmul.mubr.msk.bf16.vlgmr.msra.gmra.mrb[68].mxu0 %vm1877_vm5, %v2845_v7  ;;  %3979 = vmatprep.subr.bf16.mxu1 %v4776_v3 }
0x17f8   : > { %3989 = vmatprep.mubr.msk.bf16.mxu0 %vm4777_vm1, %v4776_v3  ;;  %3986 = vmatpush3.bf16.msra.mxu0 %v4201_v61 }
0x17f9   : > { %3987 = vmatprep.subr.bf16.mxu0 %v4776_v3 }
0x17fa   : > { %3980 = vmatpush3.bf16.msra.mxu1 %v4200_v9 }
0x17fb   : > { %3993 = vmatprep.subr.bf16.mxu1 %v4776_v3 }
0x17fc   : > { %3988 = vmatpush3.bf16.msra.mxu0 %v4202_v4 }
0x18c8   : > { %v2886_v10 = vpop.f32.mrb[64].mxu1 }
0x18c9   : > { %v3969_v11 = vpop.f32.mrb[65].mxu1 }
0x18ca   : > { %v2889_v12 = vpop.f32.mrb[66].mxu1  ;;  %v2932_v21 = vpop.f32.mrb[68].mxu0 }
0x18cb   : > { %v4184_v26 = vpack.i.bf16 %v2932_v21, %v2886_v10  ;;  %v3970_v14 = vpop.f32.mrb[67].mxu1  ;;  %v3975_v15 = vpop.f32.mrb[69].mxu0  ;;  %v3060_v10 = vrot.slane %v5596_v0, %v3059_v8  ;;  %v3065_v12 = vsub.s32 7, %v5591_v62 }
0x18cc   : > { %v2935_v23 = vpop.f32.mrb[70].mxu0 }
0x18cd   : > { %4185 = vrot.lane.b32.xlu1 %v4184_v26, %s4791_s27  ;;  %v3976_v17 = vpop.f32.mrb[71].mxu0  ;;  %v3066_v15 = vrot.slane %v5596_v0, %v3065_v12 }
0x193f   : > { %v4186_v6 = vpop.permute.xlu1 %4185 }
0x1940   : > { %v4188_v59 = vunpack.i.h.bf16 %v4186_v6  ;;  %v4187_v22 = vunpack.i.l.bf16 %v4186_v6 }
0x1942   : > { %v2967_v28 = vsel %vm1880_vm6, %v2965_v25, %v4188_v59  ;;  %v2966_v29 = vsel %vm1880_vm6, %v2964_v24, %v4187_v22 }
0x1943   : > { %v2968_v16 = vpack.c.bf16 %v2967_v28, %v2966_v29  ;;  %v3150_v29 = vsub.s32 3, %v5591_v62 }
0x1945   : > { %3982 = vmatmul.mubr.msk.bf16.vlgmr.msra.gmra.mrb[68].mxu1 %vm920_vm2, %v2968_v16  ;;  %v3151_v16 = vrot.slane %v5596_v0, %v3150_v29 }
0x1946   : > { %4001 = vmatprep.mubr.msk.bf16.mxu1 %vm4777_vm1, %v4776_v3  ;;  %3994 = vmatpush3.bf16.msra.mxu1 %v4203_v1  ;;  %v895_v1 = vld [vmem:[%s789_s14 + $0x8] sm:$0x3] }
0x1947   : > { %3995 = vmatprep.subr.bf16.mxu1 %v4776_v3 }
0x194a   : > { %3996 = vmatpush3.bf16.msra.mxu1 %v4204_v2  ;;  %v3252_v2 = vrot.slane %v895_v1, %v1886_v63 }
0x194b   : > { %3997 = vmatprep.subr.bf16.mxu1 %v4776_v3 }
0x194e   : > { %3998 = vmatpush3.bf16.msra.mxu1 %v4205_v52 }
0x194f   : > { %3999 = vmatprep.subr.bf16.mxu1 %v4776_v3 }
0x1952   : > { %4000 = vmatpush3.bf16.msra.mxu1 %v4206_v56 }
0x1a18   : > { %v3022_v32 = vpop.f32.mrb[68].mxu1 }
0x1a19   : > { %v3023_v34 = vadd.f32 %v3022_v32, %v2972_v36  ;;  %v3983_v35 = vpop.f32.mrb[69].mxu1 }
0x1a1a   : > { %v3025_v37 = vpop.f32.mrb[70].mxu1 }
0x1a1b   : > { %v3026_v38 = vadd.f32 %v3025_v37, %v2972_v36  ;;  %v3984_v39 = vpop.f32.mrb[71].mxu1  ;;  %v3029_v40 = vadd.f32 %v3023_v34, %v5624_v41 }
0x1a1d   : > { %v3031_v43 = vsel %vm920_vm2, %v3029_v40, 0.0  ;;  %v3030_v45 = vadd.f32 %v3026_v38, %v5626_v42 }
0x1a1e   : > { %3032 = vadd.xlane.f32.xlu0 %v3031_v43 }
0x1a1f   : > { %v3034_v47 = vsel %vm920_vm2, %v3030_v45, 0.0 }
0x1a20   : > { %3035 = vadd.xlane.f32.xlu1 %v3034_v47 }
0x1aab   : > { %v3033_v48 = vpop.xlane.xlu0 %3032 }
0x1aac   : > { %v3037_v49 = vmul.f32 0.03125, %v3033_v48 }
0x1aad   : > { %v3036_v50 = vpop.xlane.xlu1 %3035 }
0x1aae   : > { %v3039_v51 = vsub.f32 %v3029_v40, %v3037_v49  ;;  %v3038_v53 = vmul.f32 0.03125, %v3036_v50 }
0x1ab0   : > { %v3040_v55 = vsub.f32 %v3030_v45, %v3038_v53  ;;  %v3041_v57 = vmul.f32 %v3039_v51, %v3039_v51 }
0x1ab2   : > { %v3043_v41 = vsel %vm920_vm2, %v3041_v57, 0.0  ;;  %v3042_v60 = vmul.f32 %v3040_v55, %v3040_v55 }
0x1ab3   : > { %3044 = vadd.xlane.f32.xlu0 %v3043_v41 }
0x1ab4   : > { %v3046_v42 = vsel %vm920_vm2, %v3042_v60, 0.0 }
0x1ab7   : > { %3047 = vadd.xlane.f32.xlu0 %v3046_v42 }
0x1b40   : > { %v3045_v20 = vpop.xlane.xlu0 %3044 }
0x1b41   : > { %v3049_v54 = vmul.f32 0.03125, %v3045_v20 }
0x1b43   : > { %v3051_v27 = vadd.f32 1e-05, %v3049_v54  ;;  %v3258_v54 = vrot.slane %v895_v1, %v1992_v46 }
0x1b44   : > { %v3048_v30 = vpop.xlane.xlu0 %3047 }
0x1b45   : > { %4275 = vrsqrt.f32 %v3051_v27  ;;  %v3050_v31 = vmul.f32 0.03125, %v3048_v30 }
0x1b47   : > { %v3052_v7 = vadd.f32 1e-05, %v3050_v31 }
0x1b49   : > { %4277 = vrsqrt.f32 %v3052_v7 }
0x1b4f   : > { %v4276_v9 = vpop.eup %4275 }
0x1b50   : > { %v3055_v11 = vmul.f32 %v4276_v9, %v3039_v51 }
0x1b52   : > { %v3061_v26 = vmul.f32 %v3060_v10, %v3055_v11 }
0x1b53   : > { %v4278_v21 = vpop.eup %4277 }
0x1b54   : > { %v3056_v14 = vmul.f32 %v4278_v21, %v3040_v55  ;;  %v3067_v17 = vadd.f32 %v3066_v15, %v3061_v26 }
0x1b56   : > { %v3062_v23 = vmul.f32 %v3060_v10, %v3056_v14 }
0x1b58   : > { %v3068_v18 = vadd.f32 %v3066_v15, %v3062_v23 }
0x1b5a   : > { %v3073_v44 = vpack.c.bf16 %v3068_v18, %v3067_v17 }
0x1b5c   : > { %3990 = vmatmul.mubr.msk.bf16.vlgmr.msra.gmra.mrb[72].mxu0 %vm920_vm2, %v3073_v44 }
0x1c2f   : > { %v3130_v13 = vpop.f32.mrb[72].mxu0 }
0x1c30   : > { %v3131_v5 = vadd.f32 %v3655_v19, %v3130_v13  ;;  %v3991_v58 = vpop.f32.mrb[73].mxu0 }
0x1c31   : > { %v3133_v6 = vpop.f32.mrb[74].mxu0 }
0x1c32   : > { %v3134_v59 = vadd.f32 %v3655_v19, %v3133_v6  ;;  %v3992_v22 = vpop.f32.mrb[75].mxu0  ;;  %v3137_v24 = vmax.f32 %v3131_v5, 0.0 }
0x1c34   : > { %v3138_v25 = vmax.f32 %v3134_v59, 0.0 }
0x1c36   : > { %v3147_v28 = vpack.c.bf16 %v3138_v25, %v3137_v24 }
0x1c38   : > { %4002 = vmatmul.mubr.msk.bf16.vlgmr.msra.gmra.mrb[72].mxu1 %vm3176_vm7, %v3147_v28 }
0x1d0b   : > { %v3214_v3 = vpop.f32.mrb[72].mxu1 }
0x1d0c   : > { %v3215_v33 = vadd.f32 %v3214_v3, %v3151_v16  ;;  %v4003_v36 = vpop.f32.mrb[73].mxu1 }
0x1d0d   : > { %v3217_v32 = vpop.f32.mrb[74].mxu1 }
0x1d0e   : > { %v3218_v34 = vadd.f32 %v3217_v32, %v3151_v16  ;;  %v4004_v35 = vpop.f32.mrb[75].mxu1  ;;  %v3221_v37 = vadd.f32 %v3215_v33, %v3067_v17 }
0x1d10   : > { %v3223_v38 = vsel %vm920_vm2, %v3221_v37, 0.0  ;;  %v3222_v39 = vadd.f32 %v3218_v34, %v3068_v18 }
0x1d11   : > { %3224 = vadd.xlane.f32.xlu1 %v3223_v38 }
0x1d12   : > { %v3226_v40 = vsel %vm920_vm2, %v3222_v39, 0.0 }
0x1d13   : > { %3227 = vadd.xlane.f32.xlu0 %v3226_v40 }
0x1d9e   : > { %v3225_v43 = vpop.xlane.xlu1 %3224 }
0x1d9f   : > { %v3229_v45 = vmul.f32 0.03125, %v3225_v43 }
0x1da0   : > { %v3228_v47 = vpop.xlane.xlu0 %3227 }
0x1da1   : > { %v3231_v48 = vsub.f32 %v3221_v37, %v3229_v45  ;;  %v3230_v49 = vmul.f32 0.03125, %v3228_v47 }
0x1da3   : > { %v3232_v0 = vsub.f32 %v3222_v39, %v3230_v49  ;;  %v3233_v50 = vmul.f32 %v3231_v48, %v3231_v48 }
0x1da5   : > { %v3235_v51 = vsel %vm920_vm2, %v3233_v50, 0.0  ;;  %v3234_v53 = vmul.f32 %v3232_v0, %v3232_v0 }
0x1da6   : > { %3236 = vadd.xlane.f32.xlu1 %v3235_v51 }
0x1da7   : > { %v3238_v55 = vsel %vm920_vm2, %v3234_v53, 0.0 }
0x1da8   : > { %3239 = vadd.xlane.f32.xlu0 %v3238_v55 }
0x1e33   : > { %v3237_v57 = vpop.xlane.xlu1 %3236 }
0x1e34   : > { %v3241_v41 = vmul.f32 0.03125, %v3237_v57 }
0x1e35   : > { %v3240_v60 = vpop.xlane.xlu0 %3239 }
0x1e36   : > { %v3243_v42 = vadd.f32 1e-05, %v3241_v41  ;;  %v3242_v61 = vmul.f32 0.03125, %v3240_v60 }
0x1e38   : > { %4279 = vrsqrt.f32 %v3243_v42  ;;  %v3244_v4 = vadd.f32 1e-05, %v3242_v61 }
0x1e3a   : > { %4281 = vrsqrt.f32 %v3244_v4 }
0x1e42   : > { %v4280_v20 = vpop.eup %4279 }
0x1e43   : > { %v3247_v27 = vmul.f32 %v4280_v20, %v3231_v48 }
0x1e44   : > { %v4282_v30 = vpop.eup %4281 }
0x1e45   : > { %v3253_v31 = vmul.f32 %v3252_v2, %v3247_v27  ;;  %v3248_v7 = vmul.f32 %v4282_v30, %v3232_v0 }
0x1e47   : > { %v3254_v8 = vmul.f32 %v3252_v2, %v3248_v7  ;;  %v3259_v9 = vadd.f32 %v3258_v54, %v3253_v31 }
0x1e49   : > { %v3260_v10 = vadd.f32 %v3258_v54, %v3254_v8  ;;  %3261 = vst.msk [vmem:[#allocation18] sm:$0xff] %vm920_vm2, %v3259_v9 }
0x1e4b   : > { %3262 = vst.msk [vmem:[#allocation18 + $0x8] sm:$0xff] %vm920_vm2, %v3260_v10 }
0x1e4c   : > { %4682 = shalt.err (!%p4679_p10)
}
0x1e4d   : > { %s5991_s0 = sld [smem:[#allocation38_spill]] }
0x1e53   : > { %s4683_s1 = scalar_lea.hbm %s5991_s0, 256 }
0x1e54   : > { %p4684_p7 = scmp.ne.s32.totalorder %s5991_s0, %s4683_s1  ;;  %p4689_p12 = scmp.lt.u32.totalorder %s4683_s1, %s5991_s0 }
0x1e56   : > { %p4685_p2 = pnand %p4684_p7, %p4085_p6 }
0x1e58   : > { %p4686_p3 = pneg %p4685_p2 }
0x1e5a   : > { %p4691_p13 = pnand %p4689_p12, %p4686_p3 }
0x1e5c   : > { %4694 = shalt.err (!%p4691_p13)
}
0x1e5d   : > { %s4793_s15 = smov 128  }
0x1e5e   : > { %4036 = dma.vmem_to_hbm [thread:$0]  (%p4085_p6), %s3273_s17, 256, %s5991_s0, [#allocation4], %s4793_s15, %s4793_s15, %s4789_s4  }
0x1e5f   : > { %4732 = dma.done.wait (%p4085_p6), [#allocation4], 256  }
0x1e60   : > { %4734 = vsyncadd (%p4085_p6), [#allocation4], 4294967040 }
0x1e61 PF: > { %s5992_s18 = sld [smem:[#allocation26_spill]]  ;;  %s5993_s25 = sld [smem:[#allocation23_spill]] }
0x1e62   : > { %s5994_s26 = sld [smem:[#allocation24_spill]]  ;;  %s5995_s27 = sld [smem:[#allocation30_spill]] }
0x1e63   : > { %s5996_s3 = sld [smem:[#allocation28_spill]]  ;;  %s5997_s28 = smov %s4753_s29 }
0x1e67   : > { %s26_s30 = sadd.s32 1, %s5992_s18  }
0x1e68   : > { %p23_p8 = scmp.ge.s32.totalorder %s26_s30, 4  }
0x1e69   : > { %s5998_s29 = smov %s5996_s3 }
0x1e6a   :  { %25 = sbr.rel (!%p23_p8) target bundleno = 13 (0xd), region = 233 }
0x1e71   :  { %3288 = vsyncpa [#allocation3], 1 }
0x1e72   :  { %3290 = vsyncpa [#allocation3 + $0x1], 1 }
0x1e73   :  { %3291 = vsyncpa [#allocation6], 1 }
0x1e74   :  { %3292 = vsyncpa [#allocation4], 1 }
0x1e75   :  { %3294 = vsyncpa [#allocation4 + $0x1], 1 }

</bundles_post_ra>
